<compile_context>
chip_gen: v5e
topology: v5e:2x2
jax: 0.10.0
libtpu: 0.0.40
codegen_flags: <defaults>
</compile_context>

<pallas_src>
import functools
import math

import jax
import jax.numpy as jnp
from jax import lax
from jax.experimental import pallas as pl
from jax.experimental.pallas import tpu as pltpu

# ----------------------------- configuration (small, synthetic) -----------------------------
LAYER_NORM_EPS = 1e-12          # config.layer_norm_eps = 1e-12 (forced in __init__)
INIT_STD = 0.02                 # config.initializer_range = 0.02
D_LATENTS = 32                  # config.latent.dim (== config.encoder.d_latents)
NUM_LATENTS = 16                # config.latent.num_latents
D_MODEL = 32                    # channel dim of the input embeddings
NUM_BLOCKS = 1                  # config.encoder.num_blocks
NUM_SELF_ATTENDS_PER_BLOCK = 2  # config.encoder.num_self_attends_per_block
NUM_CROSS_HEADS = 2             # config.encoder.num_cross_attention_heads
NUM_SELF_HEADS = 4              # config.encoder.num_self_attention_heads
CROSS_WIDENING = 1              # cross_attention_widening_factor
SELF_WIDENING = 1               # self_attention_widening_factor
QK_CHANNELS = D_LATENTS         # HF default: qk_channels = q_dim
V_CHANNELS = QK_CHANNELS        # HF default: v_channels = qk_channels
USE_QUERY_RESIDUAL = True

LANES = 128                     # vreg lane width (slab is packed lane-aligned)
SUBLANES = 8                    # sublane alignment for slab row offsets


# ----------------------------- in-kernel math helpers (traced) ------------------------------
def _ln(x, g, b):
    mean = jnp.mean(x, axis=-1, keepdims=True)
    var = jnp.mean(jnp.square(x - mean), axis=-1, keepdims=True)
    return (x - mean) * lax.rsqrt(var + LAYER_NORM_EPS) * g + b


def _gelu_tanh(x):
    # TODO(synk): reference uses exact-erf GELU; tanh approximation (EUP slot) differs by ~1e-3.
    c = 0.7978845608028654  # sqrt(2/pi)
    return 0.5 * x * (1.0 + jnp.tanh(c * (x + 0.044715 * x * x * x)))


def _mha(q, k, v, *, heads, bb, lq, lk, shared_q, mask):
    """Per-batch, per-head attention on lane-fused (already scaled) q / k / v.

    q: (lq, QK) if shared_q else (bb*lq, QK);  k: (bb*lk, QK);  v: (bb*lk, V).
    mask: None or (bb, 1, lk) additive mask.  Returns (bb*lq, V).
    """
    dq = q.shape[-1] // heads
    dv = v.shape[-1] // heads
    ctx_batches = []
    for b in range(bb):                      # tiny, fully unrolled
        qb = q if shared_q else q[b * lq:(b + 1) * lq, :]
        kb = k[b * lk:(b + 1) * lk, :]
        vb = v[b * lk:(b + 1) * lk, :]
        head_ctx = []
        for h in range(heads):
            qh = qb[:, h * dq:(h + 1) * dq]
            kh = kb[:, h * dq:(h + 1) * dq]
            vh = vb[:, h * dv:(h + 1) * dv]
            # NT matmul: contract last dims of q and k (no k.T relayout).
            s = lax.dot_general(qh, kh, (((1,), (1,)), ((), ())),
                                preferred_element_type=jnp.float32)
            if mask is not None:
                s = s + mask[b]              # (1, lk) additive mask broadcast over queries
            s = s - jnp.max(s, axis=-1, keepdims=True)
            e = jnp.exp(s)
            # approx reciprocal on EUP: probs sum to 1 within ~1e-4 rel.; fine for inference.
            p = e * pl.reciprocal(jnp.sum(e, axis=-1, keepdims=True), approx=True)
            head_ctx.append(jnp.dot(p, vh, preferred_element_type=jnp.float32))
        ctx_batches.append(jnp.concatenate(head_ctx, axis=-1))   # heads along lanes
    return jnp.concatenate(ctx_batches, axis=0)                  # batch along sublanes


# ------------------------------------ fused encoder kernel ----------------------------------
def _encoder_kernel(*refs, slab_index, has_mask, bb, seq_len, num_self_layers, num_blocks):
    if has_mask:
        emb_ref, slab_ref, mask_ref, out_ref = refs
    else:
        emb_ref, slab_ref, out_ref = refs
        mask_ref = None

    # --- static slab unpackers (free .at-style slicing; offsets are Python ints) ---
    def get(name):
        r0, r, c = slab_index[name]
        return slab_ref[r0:r0 + r, 0:c]

    def get_wb(name):                                   # weight rows 0:r-1, bias row r-1
        r0, r, c = slab_index[name]
        return slab_ref[r0:r0 + r - 1, 0:c], slab_ref[r0 + r - 1:r0 + r, 0:c]

    def get_ln(name):                                   # gamma row 0, beta row 1
        r0, _, c = slab_index[name]
        return slab_ref[r0:r0 + 1, 0:c], slab_ref[r0 + 1:r0 + 2, 0:c]

    def mlp_and_residual(prefix, att):
        g, b = get_ln(prefix + ".lnm")
        m_ln = _ln(att, g, b)
        w1, b1 = get_wb(prefix + ".m1")
        w2, b2 = get_wb(prefix + ".m2")
        h1 = _gelu_tanh(jnp.dot(m_ln, w1, preferred_element_type=jnp.float32) + b1)
        h2 = jnp.dot(h1, w2, preferred_element_type=jnp.float32) + b2
        return h2 + att

    emb = emb_ref[...]                                  # (bb*L, D_MODEL), batch folded in rows
    mask = mask_ref[...] if has_mask else None          # (bb, 1, L) additive mask
    latents = get("latents")                            # (NUM_LATENTS, D_LATENTS)
    hidden = jnp.concatenate([latents] * bb, axis=0)    # (bb*NUM_LATENTS, D_LATENTS)

    # ---------------- cross-attention layer: latents <- inputs ----------------
    g2, b2 = get_ln("c.ln2")
    kv_in = _ln(emb, g2, b2)
    wkv, bkv = get_wb("c.kv")                           # fused K|V projection (32, 64)
    kv = jnp.dot(kv_in, wkv, preferred_element_type=jnp.float32) + bkv
    k = kv[:, :QK_CHANNELS]
    v = kv[:, QK_CHANNELS:QK_CHANNELS + V_CHANNELS]
    q = get("c.q")                                      # LN(latents)@Wq, pre-scaled, shared
    ctx = _mha(q, k, v, heads=NUM_CROSS_HEADS, bb=bb, lq=NUM_LATENTS,
               lk=seq_len, shared_q=True, mask=mask)
    ow, ob = get_wb("c.o")
    att = jnp.dot(ctx, ow, preferred_element_type=jnp.float32) + ob
    if USE_QUERY_RESIDUAL:
        att = att + hidden
    hidden = mlp_and_residual("c", att)

    # ---------------- self-attention blocks (same weights reused per block, HF) ----------------
    for _ in range(num_blocks):
        for i in range(num_self_layers):
            pre = f"s{i}"
            g1, b1 = get_ln(pre + ".ln1")
            h_ln = _ln(hidden, g1, b1)
            wqkv, bqkv = get_wb(pre + ".qkv")           # fused Q|K|V projection (32, 96)
            qkv = jnp.dot(h_ln, wqkv, preferred_element_type=jnp.float32) + bqkv
            q = qkv[:, :QK_CHANNELS]                    # already 1/sqrt(dh)-scaled at pack time
            kk = qkv[:, QK_CHANNELS:2 * QK_CHANNELS]
            vv = qkv[:, 2 * QK_CHANNELS:2 * QK_CHANNELS + V_CHANNELS]
            ctx = _mha(q, kk, vv, heads=NUM_SELF_HEADS, bb=bb, lq=NUM_LATENTS,
                       lk=NUM_LATENTS, shared_q=False, mask=None)
            ow, ob = get_wb(pre + ".o")
            att = jnp.dot(ctx, ow, preferred_element_type=jnp.float32) + ob + hidden
            hidden = mlp_and_residual(pre, att)

    out_ref[...] = hidden                               # one dense (bb*NUM_LATENTS, 32) store


# ------------------------------- parameter construction -------------------------------------
def make_linear_params(key, din, dout):
    # matches init_weights: weight ~ N(0, 0.02), bias = 0  (stored transposed: x @ w)
    return {"w": INIT_STD * jax.random.normal(key, (din, dout), jnp.float32),
            "b": jnp.zeros((dout,), jnp.float32)}


def make_layer_params(key, q_dim, kv_dim, widening, is_cross):
    keys = jax.random.split(key, 6)
    p = {
        "ln1_g": jnp.ones((q_dim,), jnp.float32),
        "ln1_b": jnp.zeros((q_dim,), jnp.float32),
        "q": make_linear_params(keys[0], q_dim, QK_CHANNELS),
        "k": make_linear_params(keys[1], kv_dim, QK_CHANNELS),
        "v": make_linear_params(keys[2], kv_dim, V_CHANNELS),
        "o": make_linear_params(keys[3], V_CHANNELS, q_dim),
        "ln_mlp_g": jnp.ones((q_dim,), jnp.float32),
        "ln_mlp_b": jnp.zeros((q_dim,), jnp.float32),
        "mlp1": make_linear_params(keys[4], q_dim, widening * q_dim),
        "mlp2": make_linear_params(keys[5], widening * q_dim, q_dim),
    }
    if is_cross:
        p["ln2_g"] = jnp.ones((kv_dim,), jnp.float32)
        p["ln2_b"] = jnp.zeros((kv_dim,), jnp.float32)
    return p


def make_model_params(key):
    k_lat, k_cross, k_self = jax.random.split(key, 3)
    self_keys = jax.random.split(k_self, NUM_SELF_ATTENDS_PER_BLOCK)
    return {
        # PerceiverEmbeddings: learned latents ~ N(0, 0.02)
        "latents": INIT_STD * jax.random.normal(k_lat, (NUM_LATENTS, D_LATENTS), jnp.float32),
        "cross": make_layer_params(k_cross, D_LATENTS, D_MODEL, CROSS_WIDENING, is_cross=True),
        "self": [
            make_layer_params(self_keys[i], D_LATENTS, D_LATENTS, SELF_WIDENING, is_cross=False)
            for i in range(NUM_SELF_ATTENDS_PER_BLOCK)
        ],
    }


# ------------------- one-time host-side packing into a single VMEM slab ---------------------
class _SlabPacker:
    """Packs many small 2-D params into one lane-aligned (rows, 128) f32 slab."""

    def __init__(self):
        self._chunks = []
        self._rows = 0
        self.index = {}          # name -> (row_offset, rows, cols)

    def add(self, name, arr):
        arr = jnp.asarray(arr, jnp.float32)
        if arr.ndim == 1:
            arr = arr.reshape(1, -1)
        r, c = arr.shape
        assert c <= LANES, (name, arr.shape)
        block = jnp.zeros((r, LANES), jnp.float32).at[:, :c].set(arr)
        self.index[name] = (self._rows, r, c)
        pad = (-r) % SUBLANES                     # keep every entry sublane-aligned
        if pad:
            block = jnp.concatenate([block, jnp.zeros((pad, LANES), jnp.float32)], axis=0)
        self._chunks.append(block)
        self._rows += r + pad

    def finalize(self):
        return jnp.concatenate(self._chunks, axis=0)


def _ln_host(x, g, b):
    mean = jnp.mean(x, axis=-1, keepdims=True)
    var = jnp.mean(jnp.square(x - mean), axis=-1, keepdims=True)
    return (x - mean) / jnp.sqrt(var + LAYER_NORM_EPS) * g + b


def _wb(lin):
    return jnp.concatenate([lin["w"], lin["b"].reshape(1, -1)], axis=0)


def pack_model_params(params):
    packer = _SlabPacker()
    packer.add("latents", params["latents"])

    cross = params["cross"]
    # Cross-attention query path depends only on the (batch-invariant) learned latents:
    # precompute LN(latents) @ Wq + bq once, with the 1/sqrt(d_head) score scale folded in.
    scale_c = 1.0 / math.sqrt(QK_CHANNELS // NUM_CROSS_HEADS)
    q_cross = (_ln_host(params["latents"], cross["ln1_g"], cross["ln1_b"])
               @ cross["q"]["w"] + cross["q"]["b"]) * scale_c
    packer.add("c.q", q_cross)
    packer.add("c.ln2", jnp.stack([cross["ln2_g"], cross["ln2_b"]], axis=0))
    packer.add("c.kv", jnp.concatenate(
        [jnp.concatenate([cross["k"]["w"], cross["v"]["w"]], axis=1),
         jnp.concatenate([cross["k"]["b"], cross["v"]["b"]]).reshape(1, -1)], axis=0))
    packer.add("c.o", _wb(cross["o"]))
    packer.add("c.lnm", jnp.stack([cross["ln_mlp_g"], cross["ln_mlp_b"]], axis=0))
    packer.add("c.m1", _wb(cross["mlp1"]))
    packer.add("c.m2", _wb(cross["mlp2"]))

    scale_s = 1.0 / math.sqrt(QK_CHANNELS // NUM_SELF_HEADS)
    for i, sp in enumerate(params["self"]):
        pre = f"s{i}"
        packer.add(pre + ".ln1", jnp.stack([sp["ln1_g"], sp["ln1_b"]], axis=0))
        wqkv = jnp.concatenate([sp["q"]["w"] * scale_s, sp["k"]["w"], sp["v"]["w"]], axis=1)
        bqkv = jnp.concatenate([sp["q"]["b"] * scale_s, sp["k"]["b"], sp["v"]["b"]]).reshape(1, -1)
        packer.add(pre + ".qkv", jnp.concatenate([wqkv, bqkv], axis=0))
        packer.add(pre + ".o", _wb(sp["o"]))
        packer.add(pre + ".lnm", jnp.stack([sp["ln_mlp_g"], sp["ln_mlp_b"]], axis=0))
        packer.add(pre + ".m1", _wb(sp["mlp1"]))
        packer.add(pre + ".m2", _wb(sp["mlp2"]))

    return {"slab": packer.finalize(), "index": packer.index,
            "num_self": len(params["self"])}


# ----------------------------------- pallas_call wrapper ------------------------------------
def perceiver_encoder(packed, emb, extended_mask=None, batch_blocks=1):
    """emb: (B, L, D_MODEL) f32; extended_mask: (B,1,1,L) additive mask or None.

    batch_blocks: number of grid steps the batch is split into.  Default 1: the whole
    batch is folded into the sublane dimension and runs in one grid step (best on
    single-TC v5e/v6e).  Use 2 on v7x for larger batches so both TensorCores get work.
    """
    B, L, D = emb.shape
    assert B % batch_blocks == 0
    bb = B // batch_blocks

    emb2 = emb.reshape(B * L, D).astype(jnp.float32)
    slab = packed["slab"]
    inputs = [emb2, slab]
    in_specs = [
        pl.BlockSpec((bb * L, D), lambda g: (g, 0)),
        pl.BlockSpec(slab.shape, lambda g: (0, 0)),     # same block every step: no re-DMA
    ]
    has_mask = extended_mask is not None
    if has_mask:
        inputs.append(extended_mask.reshape(B, 1, L).astype(jnp.float32))
        in_specs.append(pl.BlockSpec((bb, 1, L), lambda g: (g, 0, 0)))

    kernel = functools.partial(
        _encoder_kernel,
        slab_index=packed["index"],
        has_mask=has_mask,
        bb=bb,
        seq_len=L,
        num_self_layers=packed["num_self"],
        num_blocks=NUM_BLOCKS,
    )

    out = pl.pallas_call(
        kernel,
        out_shape=jax.ShapeDtypeStruct((B * NUM_LATENTS, D_LATENTS), jnp.float32),
        grid=(batch_blocks,),
        in_specs=in_specs,
        out_specs=pl.BlockSpec((bb * NUM_LATENTS, D_LATENTS), lambda g: (g, 0)),
        compiler_params=pltpu.CompilerParams(dimension_semantics=("parallel",)),
    )(*inputs)
    return out.reshape(B, NUM_LATENTS, D_LATENTS)


# --------------------------------- model forward (JAX glue) ---------------------------------
def invert_attention_mask(attention_mask):
    """(B, Lk) {0,1} float32 -> additive mask (B,1,1,Lk) with 0 / -1e9 (float32 branch)."""
    ext = attention_mask[:, None, None, :].astype(jnp.float32)
    return (1.0 - ext) * -1000000000.0


def perceiver_model_forward(packed_params, embeddings, attention_mask=None):
    """PerceiverModel.default(): concat embeddings, build mask, run fused encoder kernel."""
    emb = jnp.concatenate([v for v in embeddings.values()], axis=1)
    if emb.ndim == 4:
        b, n, k, d = emb.shape
        emb = emb.reshape(b, n * k, d)

    # attention_mask=None -> all-ones mask -> additive mask is identically zero -> skip it.
    ext = invert_attention_mask(attention_mask) if attention_mask is not None else None

    hidden = perceiver_encoder(packed_params, emb.astype(jnp.float32), ext)
    return {"last_hidden_state": hidden}


# ------------------------------------------ main --------------------------------------------
if __name__ == "__main__":
    key = jax.random.PRNGKey(0)
    k_params, k_rgb, k_depth = jax.random.split(key, 3)

    params = make_model_params(k_params)
    packed = pack_model_params(params)   # one-time packing into a single lane-aligned slab

    # two input modalities (the `embeddings` dict argument of forward), each (B, Ni, D_MODEL)
    embeddings = {
        "rgb": jax.random.normal(k_rgb, (2, 4, D_MODEL), jnp.float32),
        "depth": jax.random.normal(k_depth, (2, 4, D_MODEL), jnp.float32),
    }

    out = perceiver_model_forward(packed, embeddings, attention_mask=None)
    last = jax.block_until_ready(out["last_hidden_state"])

    assert last.shape == (2, NUM_LATENTS, D_LATENTS), last.shape
    assert bool(jnp.all(jnp.isfinite(last)))
    print("KERNEL_OK")
</pallas_src>

<mosaic_0001>
module attributes {stable_mosaic.version = 11 : i64} {
  func.func @_encoder_kernel(%arg0: i32, %arg1: memref<16x32xf32, #tpu.memory_space<vmem>>, %arg2: memref<560x128xf32, #tpu.memory_space<vmem>>, %arg3: memref<32x32xf32, #tpu.memory_space<vmem>>) attributes {dimension_semantics = [#tpu.dimension_semantics<parallel>], iteration_bounds = array<i64: 1>, scalar_prefetch = 0 : i64, scratch_operands = 0 : i64, tpu.core_type = #tpu.core_type<tc>, window_params = [{transform_indices = @transform_0, window_bounds = array<i64: 16, 32>}, {pipeline_mode = #tpu.pipeline_mode<synchronous>, transform_indices = @transform_1, window_bounds = array<i64: 560, 128>}, {transform_indices = @transform_2, window_bounds = array<i64: 32, 32>}]} {
    %c0 = arith.constant 0 : index
    %c0_0 = arith.constant 0 : index
    %0 = vector.load %arg1[%c0, %c0_0] : memref<16x32xf32, #tpu.memory_space<vmem>>, vector<16x32xf32>
    %c0_1 = arith.constant 0 : index
    %c0_2 = arith.constant 0 : index
    %1 = vector.load %arg2[%c0_1, %c0_2] : memref<560x128xf32, #tpu.memory_space<vmem>>, vector<16x32xf32>
    %2 = tpu.concatenate %1, %1 in 0 : vector<16x32xf32>, vector<16x32xf32> -> vector<32x32xf32>
    %c32 = arith.constant 32 : index
    %c0_3 = arith.constant 0 : index
    %3 = vector.load %arg2[%c32, %c0_3] : memref<560x128xf32, #tpu.memory_space<vmem>>, vector<1x32xf32>
    %c33 = arith.constant 33 : index
    %c0_4 = arith.constant 0 : index
    %4 = vector.load %arg2[%c33, %c0_4] : memref<560x128xf32, #tpu.memory_space<vmem>>, vector<1x32xf32>
    %cst = arith.constant dense<0.000000e+00> : vector<16xf32>
    %5 = vector.multi_reduction <add>, %0, %cst [1] : vector<16x32xf32> to vector<16xf32>
    %6 = vector.shape_cast %5 : vector<16xf32> to vector<16x1xf32>
    %cst_5 = arith.constant 3.200000e+01 : f32
    %7 = vector.broadcast %cst_5 : f32 to vector<16x1xf32>
    %8 = arith.divf %6, %7 : vector<16x1xf32>
    %9 = vector.broadcast %8 : vector<16x1xf32> to vector<16x32xf32>
    %10 = arith.subf %0, %9 : vector<16x32xf32>
    %11 = arith.mulf %10, %10 : vector<16x32xf32>
    %cst_6 = arith.constant dense<0.000000e+00> : vector<16xf32>
    %12 = vector.multi_reduction <add>, %11, %cst_6 [1] : vector<16x32xf32> to vector<16xf32>
    %13 = vector.shape_cast %12 : vector<16xf32> to vector<16x1xf32>
    %cst_7 = arith.constant 3.200000e+01 : f32
    %14 = vector.broadcast %cst_7 : f32 to vector<16x1xf32>
    %15 = arith.divf %13, %14 : vector<16x1xf32>
    %16 = vector.broadcast %8 : vector<16x1xf32> to vector<16x32xf32>
    %17 = arith.subf %0, %16 : vector<16x32xf32>
    %cst_8 = arith.constant 9.99999996E-13 : f32
    %18 = vector.broadcast %cst_8 : f32 to vector<16x1xf32>
    %19 = arith.addf %15, %18 : vector<16x1xf32>
    %20 = math.rsqrt %19 : vector<16x1xf32>
    %21 = vector.broadcast %20 : vector<16x1xf32> to vector<16x32xf32>
    %22 = arith.mulf %17, %21 : vector<16x32xf32>
    %23 = vector.broadcast %3 : vector<1x32xf32> to vector<16x32xf32>
    %24 = arith.mulf %22, %23 : vector<16x32xf32>
    %25 = vector.broadcast %4 : vector<1x32xf32> to vector<16x32xf32>
    %26 = arith.addf %24, %25 : vector<16x32xf32>
    %c40 = arith.constant 40 : index
    %c0_9 = arith.constant 0 : index
    %27 = vector.load %arg2[%c40, %c0_9] : memref<560x128xf32, #tpu.memory_space<vmem>>, vector<32x64xf32>
    %c72 = arith.constant 72 : index
    %c0_10 = arith.constant 0 : index
    %28 = vector.load %arg2[%c72, %c0_10] : memref<560x128xf32, #tpu.memory_space<vmem>>, vector<1x64xf32>
    %cst_11 = arith.constant dense<0.000000e+00> : vector<16x64xf32>
    %29 = tpu.matmul %26, %27, %cst_11 {dimension_numbers = #tpu.dot_dimension_numbers<[1], [0], [0], [1], [0, 0, 1, 1], [], []>} : vector<16x32xf32>, vector<32x64xf32>, vector<16x64xf32> -> vector<16x64xf32>
    %30 = vector.broadcast %28 : vector<1x64xf32> to vector<16x64xf32>
    %31 = arith.addf %29, %30 : vector<16x64xf32>
    %32 = vector.extract_strided_slice %31 {offsets = [0, 0], sizes = [16, 32], strides = [1, 1]} : vector<16x64xf32> to vector<16x32xf32>
    %33 = vector.extract_strided_slice %31 {offsets = [0, 32], sizes = [16, 32], strides = [1, 1]} : vector<16x64xf32> to vector<16x32xf32>
    %c16 = arith.constant 16 : index
    %c0_12 = arith.constant 0 : index
    %34 = vector.load %arg2[%c16, %c0_12] : memref<560x128xf32, #tpu.memory_space<vmem>>, vector<16x32xf32>
    %35 = vector.extract_strided_slice %32 {offsets = [0, 0], sizes = [8, 32], strides = [1, 1]} : vector<16x32xf32> to vector<8x32xf32>
    %36 = vector.extract_strided_slice %33 {offsets = [0, 0], sizes = [8, 32], strides = [1, 1]} : vector<16x32xf32> to vector<8x32xf32>
    %37 = vector.extract_strided_slice %34 {offsets = [0, 0], sizes = [16, 16], strides = [1, 1]} : vector<16x32xf32> to vector<16x16xf32>
    %38 = vector.extract_strided_slice %35 {offsets = [0, 0], sizes = [8, 16], strides = [1, 1]} : vector<8x32xf32> to vector<8x16xf32>
    %39 = vector.extract_strided_slice %36 {offsets = [0, 0], sizes = [8, 16], strides = [1, 1]} : vector<8x32xf32> to vector<8x16xf32>
    %cst_13 = arith.constant dense<0.000000e+00> : vector<16x8xf32>
    %40 = tpu.matmul %37, %38, %cst_13 {dimension_numbers = #tpu.dot_dimension_numbers<[1], [1], [0], [0], [0, 0, 1, 0], [], []>} : vector<16x16xf32>, vector<8x16xf32>, vector<16x8xf32> -> vector<16x8xf32>
    %cst_14 = arith.constant dense<0xFF800000> : vector<16xf32>
    %41 = vector.multi_reduction <maximumf>, %40, %cst_14 [1] : vector<16x8xf32> to vector<16xf32>
    %42 = vector.shape_cast %41 : vector<16xf32> to vector<16x1xf32>
    %43 = vector.broadcast %42 : vector<16x1xf32> to vector<16x8xf32>
    %44 = arith.subf %40, %43 : vector<16x8xf32>
    %45 = math.exp %44 : vector<16x8xf32>
    %cst_15 = arith.constant dense<0.000000e+00> : vector<16xf32>
    %46 = vector.multi_reduction <add>, %45, %cst_15 [1] : vector<16x8xf32> to vector<16xf32>
    %47 = vector.shape_cast %46 : vector<16xf32> to vector<16x1xf32>
    %48 = tpu.reciprocal %47 {approx = true} : vector<16x1xf32> -> vector<16x1xf32>
    %49 = vector.broadcast %48 : vector<16x1xf32> to vector<16x8xf32>
    %50 = arith.mulf %45, %49 : vector<16x8xf32>
    %cst_16 = arith.constant dense<0.000000e+00> : vector<16x16xf32>
    %51 = tpu.matmul %50, %39, %cst_16 {dimension_numbers = #tpu.dot_dimension_numbers<[1], [0], [0], [1], [0, 0, 1, 1], [], []>} : vector<16x8xf32>, vector<8x16xf32>, vector<16x16xf32> -> vector<16x16xf32>
    %52 = vector.extract_strided_slice %34 {offsets = [0, 16], sizes = [16, 16], strides = [1, 1]} : vector<16x32xf32> to vector<16x16xf32>
    %53 = vector.extract_strided_slice %35 {offsets = [0, 16], sizes = [8, 16], strides = [1, 1]} : vector<8x32xf32> to vector<8x16xf32>
    %54 = vector.extract_strided_slice %36 {offsets = [0, 16], sizes = [8, 16], strides = [1, 1]} : vector<8x32xf32> to vector<8x16xf32>
    %cst_17 = arith.constant dense<0.000000e+00> : vector<16x8xf32>
    %55 = tpu.matmul %52, %53, %cst_17 {dimension_numbers = #tpu.dot_dimension_numbers<[1], [1], [0], [0], [0, 0, 1, 0], [], []>} : vector<16x16xf32>, vector<8x16xf32>, vector<16x8xf32> -> vector<16x8xf32>
    %cst_18 = arith.constant dense<0xFF800000> : vector<16xf32>
    %56 = vector.multi_reduction <maximumf>, %55, %cst_18 [1] : vector<16x8xf32> to vector<16xf32>
    %57 = vector.shape_cast %56 : vector<16xf32> to vector<16x1xf32>
    %58 = vector.broadcast %57 : vector<16x1xf32> to vector<16x8xf32>
    %59 = arith.subf %55, %58 : vector<16x8xf32>
    %60 = math.exp %59 : vector<16x8xf32>
    %cst_19 = arith.constant dense<0.000000e+00> : vector<16xf32>
    %61 = vector.multi_reduction <add>, %60, %cst_19 [1] : vector<16x8xf32> to vector<16xf32>
    %62 = vector.shape_cast %61 : vector<16xf32> to vector<16x1xf32>
    %63 = tpu.reciprocal %62 {approx = true} : vector<16x1xf32> -> vector<16x1xf32>
    %64 = vector.broadcast %63 : vector<16x1xf32> to vector<16x8xf32>
    %65 = arith.mulf %60, %64 : vector<16x8xf32>
    %cst_20 = arith.constant dense<0.000000e+00> : vector<16x16xf32>
    %66 = tpu.matmul %65, %54, %cst_20 {dimension_numbers = #tpu.dot_dimension_numbers<[1], [0], [0], [1], [0, 0, 1, 1], [], []>} : vector<16x8xf32>, vector<8x16xf32>, vector<16x16xf32> -> vector<16x16xf32>
    %67 = tpu.concatenate %51, %66 in 1 : vector<16x16xf32>, vector<16x16xf32> -> vector<16x32xf32>
    %68 = vector.extract_strided_slice %32 {offsets = [8, 0], sizes = [8, 32], strides = [1, 1]} : vector<16x32xf32> to vector<8x32xf32>
    %69 = vector.extract_strided_slice %33 {offsets = [8, 0], sizes = [8, 32], strides = [1, 1]} : vector<16x32xf32> to vector<8x32xf32>
    %70 = vector.extract_strided_slice %34 {offsets = [0, 0], sizes = [16, 16], strides = [1, 1]} : vector<16x32xf32> to vector<16x16xf32>
    %71 = vector.extract_strided_slice %68 {offsets = [0, 0], sizes = [8, 16], strides = [1, 1]} : vector<8x32xf32> to vector<8x16xf32>
    %72 = vector.extract_strided_slice %69 {offsets = [0, 0], sizes = [8, 16], strides = [1, 1]} : vector<8x32xf32> to vector<8x16xf32>
    %cst_21 = arith.constant dense<0.000000e+00> : vector<16x8xf32>
    %73 = tpu.matmul %70, %71, %cst_21 {dimension_numbers = #tpu.dot_dimension_numbers<[1], [1], [0], [0], [0, 0, 1, 0], [], []>} : vector<16x16xf32>, vector<8x16xf32>, vector<16x8xf32> -> vector<16x8xf32>
    %cst_22 = arith.constant dense<0xFF800000> : vector<16xf32>
    %74 = vector.multi_reduction <maximumf>, %73, %cst_22 [1] : vector<16x8xf32> to vector<16xf32>
    %75 = vector.shape_cast %74 : vector<16xf32> to vector<16x1xf32>
    %76 = vector.broadcast %75 : vector<16x1xf32> to vector<16x8xf32>
    %77 = arith.subf %73, %76 : vector<16x8xf32>
    %78 = math.exp %77 : vector<16x8xf32>
    %cst_23 = arith.constant dense<0.000000e+00> : vector<16xf32>
    %79 = vector.multi_reduction <add>, %78, %cst_23 [1] : vector<16x8xf32> to vector<16xf32>
    %80 = vector.shape_cast %79 : vector<16xf32> to vector<16x1xf32>
    %81 = tpu.reciprocal %80 {approx = true} : vector<16x1xf32> -> vector<16x1xf32>
    %82 = vector.broadcast %81 : vector<16x1xf32> to vector<16x8xf32>
    %83 = arith.mulf %78, %82 : vector<16x8xf32>
    %cst_24 = arith.constant dense<0.000000e+00> : vector<16x16xf32>
    %84 = tpu.matmul %83, %72, %cst_24 {dimension_numbers = #tpu.dot_dimension_numbers<[1], [0], [0], [1], [0, 0, 1, 1], [], []>} : vector<16x8xf32>, vector<8x16xf32>, vector<16x16xf32> -> vector<16x16xf32>
    %85 = vector.extract_strided_slice %34 {offsets = [0, 16], sizes = [16, 16], strides = [1, 1]} : vector<16x32xf32> to vector<16x16xf32>
    %86 = vector.extract_strided_slice %68 {offsets = [0, 16], sizes = [8, 16], strides = [1, 1]} : vector<8x32xf32> to vector<8x16xf32>
    %87 = vector.extract_strided_slice %69 {offsets = [0, 16], sizes = [8, 16], strides = [1, 1]} : vector<8x32xf32> to vector<8x16xf32>
    %cst_25 = arith.constant dense<0.000000e+00> : vector<16x8xf32>
    %88 = tpu.matmul %85, %86, %cst_25 {dimension_numbers = #tpu.dot_dimension_numbers<[1], [1], [0], [0], [0, 0, 1, 0], [], []>} : vector<16x16xf32>, vector<8x16xf32>, vector<16x8xf32> -> vector<16x8xf32>
    %cst_26 = arith.constant dense<0xFF800000> : vector<16xf32>
    %89 = vector.multi_reduction <maximumf>, %88, %cst_26 [1] : vector<16x8xf32> to vector<16xf32>
    %90 = vector.shape_cast %89 : vector<16xf32> to vector<16x1xf32>
    %91 = vector.broadcast %90 : vector<16x1xf32> to vector<16x8xf32>
    %92 = arith.subf %88, %91 : vector<16x8xf32>
    %93 = math.exp %92 : vector<16x8xf32>
    %cst_27 = arith.constant dense<0.000000e+00> : vector<16xf32>
    %94 = vector.multi_reduction <add>, %93, %cst_27 [1] : vector<16x8xf32> to vector<16xf32>
    %95 = vector.shape_cast %94 : vector<16xf32> to vector<16x1xf32>
    %96 = tpu.reciprocal %95 {approx = true} : vector<16x1xf32> -> vector<16x1xf32>
    %97 = vector.broadcast %96 : vector<16x1xf32> to vector<16x8xf32>
    %98 = arith.mulf %93, %97 : vector<16x8xf32>
    %cst_28 = arith.constant dense<0.000000e+00> : vector<16x16xf32>
    %99 = tpu.matmul %98, %87, %cst_28 {dimension_numbers = #tpu.dot_dimension_numbers<[1], [0], [0], [1], [0, 0, 1, 1], [], []>} : vector<16x8xf32>, vector<8x16xf32>, vector<16x16xf32> -> vector<16x16xf32>
    %100 = tpu.concatenate %84, %99 in 1 : vector<16x16xf32>, vector<16x16xf32> -> vector<16x32xf32>
    %101 = tpu.concatenate %67, %100 in 0 : vector<16x32xf32>, vector<16x32xf32> -> vector<32x32xf32>
    %c80 = arith.constant 80 : index
    %c0_29 = arith.constant 0 : index
    %102 = vector.load %arg2[%c80, %c0_29] : memref<560x128xf32, #tpu.memory_space<vmem>>, vector<32x32xf32>
    %c112 = arith.constant 112 : index
    %c0_30 = arith.constant 0 : index
    %103 = vector.load %arg2[%c112, %c0_30] : memref<560x128xf32, #tpu.memory_space<vmem>>, vector<1x32xf32>
    %cst_31 = arith.constant dense<0.000000e+00> : vector<32x32xf32>
    %104 = tpu.matmul %101, %102, %cst_31 {dimension_numbers = #tpu.dot_dimension_numbers<[1], [0], [0], [1], [0, 0, 1, 1], [], []>} : vector<32x32xf32>, vector<32x32xf32>, vector<32x32xf32> -> vector<32x32xf32>
    %105 = vector.broadcast %103 : vector<1x32xf32> to vector<32x32xf32>
    %106 = arith.addf %104, %105 : vector<32x32xf32>
    %107 = arith.addf %106, %2 : vector<32x32xf32>
    %c120 = arith.constant 120 : index
    %c0_32 = arith.constant 0 : index
    %108 = vector.load %arg2[%c120, %c0_32] : memref<560x128xf32, #tpu.memory_space<vmem>>, vector<1x32xf32>
    %c121 = arith.constant 121 : index
    %c0_33 = arith.constant 0 : index
    %109 = vector.load %arg2[%c121, %c0_33] : memref<560x128xf32, #tpu.memory_space<vmem>>, vector<1x32xf32>
    %cst_34 = arith.constant dense<0.000000e+00> : vector<32xf32>
    %110 = vector.multi_reduction <add>, %107, %cst_34 [1] : vector<32x32xf32> to vector<32xf32>
    %111 = vector.shape_cast %110 : vector<32xf32> to vector<32x1xf32>
    %cst_35 = arith.constant 3.200000e+01 : f32
    %112 = vector.broadcast %cst_35 : f32 to vector<32x1xf32>
    %113 = arith.divf %111, %112 : vector<32x1xf32>
    %114 = vector.broadcast %113 : vector<32x1xf32> to vector<32x32xf32>
    %115 = arith.subf %107, %114 : vector<32x32xf32>
    %116 = arith.mulf %115, %115 : vector<32x32xf32>
    %cst_36 = arith.constant dense<0.000000e+00> : vector<32xf32>
    %117 = vector.multi_reduction <add>, %116, %cst_36 [1] : vector<32x32xf32> to vector<32xf32>
    %118 = vector.shape_cast %117 : vector<32xf32> to vector<32x1xf32>
    %cst_37 = arith.constant 3.200000e+01 : f32
    %119 = vector.broadcast %cst_37 : f32 to vector<32x1xf32>
    %120 = arith.divf %118, %119 : vector<32x1xf32>
    %121 = vector.broadcast %113 : vector<32x1xf32> to vector<32x32xf32>
    %122 = arith.subf %107, %121 : vector<32x32xf32>
    %cst_38 = arith.constant 9.99999996E-13 : f32
    %123 = vector.broadcast %cst_38 : f32 to vector<32x1xf32>
    %124 = arith.addf %120, %123 : vector<32x1xf32>
    %125 = math.rsqrt %124 : vector<32x1xf32>
    %126 = vector.broadcast %125 : vector<32x1xf32> to vector<32x32xf32>
    %127 = arith.mulf %122, %126 : vector<32x32xf32>
    %128 = vector.broadcast %108 : vector<1x32xf32> to vector<32x32xf32>
    %129 = arith.mulf %127, %128 : vector<32x32xf32>
    %130 = vector.broadcast %109 : vector<1x32xf32> to vector<32x32xf32>
    %131 = arith.addf %129, %130 : vector<32x32xf32>
    %c128 = arith.constant 128 : index
    %c0_39 = arith.constant 0 : index
    %132 = vector.load %arg2[%c128, %c0_39] : memref<560x128xf32, #tpu.memory_space<vmem>>, vector<32x32xf32>
    %c160 = arith.constant 160 : index
    %c0_40 = arith.constant 0 : index
    %133 = vector.load %arg2[%c160, %c0_40] : memref<560x128xf32, #tpu.memory_space<vmem>>, vector<1x32xf32>
    %c168 = arith.constant 168 : index
    %c0_41 = arith.constant 0 : index
    %134 = vector.load %arg2[%c168, %c0_41] : memref<560x128xf32, #tpu.memory_space<vmem>>, vector<32x32xf32>
    %c200 = arith.constant 200 : index
    %c0_42 = arith.constant 0 : index
    %135 = vector.load %arg2[%c200, %c0_42] : memref<560x128xf32, #tpu.memory_space<vmem>>, vector<1x32xf32>
    %cst_43 = arith.constant dense<0.000000e+00> : vector<32x32xf32>
    %136 = tpu.matmul %131, %132, %cst_43 {dimension_numbers = #tpu.dot_dimension_numbers<[1], [0], [0], [1], [0, 0, 1, 1], [], []>} : vector<32x32xf32>, vector<32x32xf32>, vector<32x32xf32> -> vector<32x32xf32>
    %137 = vector.broadcast %133 : vector<1x32xf32> to vector<32x32xf32>
    %138 = arith.addf %136, %137 : vector<32x32xf32>
    %cst_44 = arith.constant 5.000000e-01 : f32
    %139 = vector.broadcast %cst_44 : f32 to vector<32x32xf32>
    %140 = arith.mulf %139, %138 : vector<32x32xf32>
    %cst_45 = arith.constant 4.471500e-02 : f32
    %141 = vector.broadcast %cst_45 : f32 to vector<32x32xf32>
    %142 = arith.mulf %141, %138 : vector<32x32xf32>
    %143 = arith.mulf %142, %138 : vector<32x32xf32>
    %144 = arith.mulf %143, %138 : vector<32x32xf32>
    %145 = arith.addf %138, %144 : vector<32x32xf32>
    %cst_46 = arith.constant 0.797884583 : f32
    %146 = vector.broadcast %cst_46 : f32 to vector<32x32xf32>
    %147 = arith.mulf %146, %145 : vector<32x32xf32>
    %148 = math.tanh %147 : vector<32x32xf32>
    %cst_47 = arith.constant 1.000000e+00 : f32
    %149 = vector.broadcast %cst_47 : f32 to vector<32x32xf32>
    %150 = arith.addf %149, %148 : vector<32x32xf32>
    %151 = arith.mulf %140, %150 : vector<32x32xf32>
    %cst_48 = arith.constant dense<0.000000e+00> : vector<32x32xf32>
    %152 = tpu.matmul %151, %134, %cst_48 {dimension_numbers = #tpu.dot_dimension_numbers<[1], [0], [0], [1], [0, 0, 1, 1], [], []>} : vector<32x32xf32>, vector<32x32xf32>, vector<32x32xf32> -> vector<32x32xf32>
    %153 = vector.broadcast %135 : vector<1x32xf32> to vector<32x32xf32>
    %154 = arith.addf %152, %153 : vector<32x32xf32>
    %155 = arith.addf %154, %107 : vector<32x32xf32>
    %c208 = arith.constant 208 : index
    %c0_49 = arith.constant 0 : index
    %156 = vector.load %arg2[%c208, %c0_49] : memref<560x128xf32, #tpu.memory_space<vmem>>, vector<1x32xf32>
    %c209 = arith.constant 209 : index
    %c0_50 = arith.constant 0 : index
    %157 = vector.load %arg2[%c209, %c0_50] : memref<560x128xf32, #tpu.memory_space<vmem>>, vector<1x32xf32>
    %cst_51 = arith.constant dense<0.000000e+00> : vector<32xf32>
    %158 = vector.multi_reduction <add>, %155, %cst_51 [1] : vector<32x32xf32> to vector<32xf32>
    %159 = vector.shape_cast %158 : vector<32xf32> to vector<32x1xf32>
    %cst_52 = arith.constant 3.200000e+01 : f32
    %160 = vector.broadcast %cst_52 : f32 to vector<32x1xf32>
    %161 = arith.divf %159, %160 : vector<32x1xf32>
    %162 = vector.broadcast %161 : vector<32x1xf32> to vector<32x32xf32>
    %163 = arith.subf %155, %162 : vector<32x32xf32>
    %164 = arith.mulf %163, %163 : vector<32x32xf32>
    %cst_53 = arith.constant dense<0.000000e+00> : vector<32xf32>
    %165 = vector.multi_reduction <add>, %164, %cst_53 [1] : vector<32x32xf32> to vector<32xf32>
    %166 = vector.shape_cast %165 : vector<32xf32> to vector<32x1xf32>
    %cst_54 = arith.constant 3.200000e+01 : f32
    %167 = vector.broadcast %cst_54 : f32 to vector<32x1xf32>
    %168 = arith.divf %166, %167 : vector<32x1xf32>
    %169 = vector.broadcast %161 : vector<32x1xf32> to vector<32x32xf32>
    %170 = arith.subf %155, %169 : vector<32x32xf32>
    %cst_55 = arith.constant 9.99999996E-13 : f32
    %171 = vector.broadcast %cst_55 : f32 to vector<32x1xf32>
    %172 = arith.addf %168, %171 : vector<32x1xf32>
    %173 = math.rsqrt %172 : vector<32x1xf32>
    %174 = vector.broadcast %173 : vector<32x1xf32> to vector<32x32xf32>
    %175 = arith.mulf %170, %174 : vector<32x32xf32>
    %176 = vector.broadcast %156 : vector<1x32xf32> to vector<32x32xf32>
    %177 = arith.mulf %175, %176 : vector<32x32xf32>
    %178 = vector.broadcast %157 : vector<1x32xf32> to vector<32x32xf32>
    %179 = arith.addf %177, %178 : vector<32x32xf32>
    %c216 = arith.constant 216 : index
    %c0_56 = arith.constant 0 : index
    %180 = vector.load %arg2[%c216, %c0_56] : memref<560x128xf32, #tpu.memory_space<vmem>>, vector<32x96xf32>
    %c248 = arith.constant 248 : index
    %c0_57 = arith.constant 0 : index
    %181 = vector.load %arg2[%c248, %c0_57] : memref<560x128xf32, #tpu.memory_space<vmem>>, vector<1x96xf32>
    %cst_58 = arith.constant dense<0.000000e+00> : vector<32x96xf32>
    %182 = tpu.matmul %179, %180, %cst_58 {dimension_numbers = #tpu.dot_dimension_numbers<[1], [0], [0], [1], [0, 0, 1, 1], [], []>} : vector<32x32xf32>, vector<32x96xf32>, vector<32x96xf32> -> vector<32x96xf32>
    %183 = vector.broadcast %181 : vector<1x96xf32> to vector<32x96xf32>
    %184 = arith.addf %182, %183 : vector<32x96xf32>
    %185 = vector.extract_strided_slice %184 {offsets = [0, 0], sizes = [32, 32], strides = [1, 1]} : vector<32x96xf32> to vector<32x32xf32>
    %186 = vector.extract_strided_slice %184 {offsets = [0, 32], sizes = [32, 32], strides = [1, 1]} : vector<32x96xf32> to vector<32x32xf32>
    %187 = vector.extract_strided_slice %184 {offsets = [0, 64], sizes = [32, 32], strides = [1, 1]} : vector<32x96xf32> to vector<32x32xf32>
    %188 = vector.extract_strided_slice %185 {offsets = [0, 0], sizes = [16, 32], strides = [1, 1]} : vector<32x32xf32> to vector<16x32xf32>
    %189 = vector.extract_strided_slice %186 {offsets = [0, 0], sizes = [16, 32], strides = [1, 1]} : vector<32x32xf32> to vector<16x32xf32>
    %190 = vector.extract_strided_slice %187 {offsets = [0, 0], sizes = [16, 32], strides = [1, 1]} : vector<32x32xf32> to vector<16x32xf32>
    %191 = vector.extract_strided_slice %188 {offsets = [0, 0], sizes = [16, 8], strides = [1, 1]} : vector<16x32xf32> to vector<16x8xf32>
    %192 = vector.extract_strided_slice %189 {offsets = [0, 0], sizes = [16, 8], strides = [1, 1]} : vector<16x32xf32> to vector<16x8xf32>
    %193 = vector.extract_strided_slice %190 {offsets = [0, 0], sizes = [16, 8], strides = [1, 1]} : vector<16x32xf32> to vector<16x8xf32>
    %cst_59 = arith.constant dense<0.000000e+00> : vector<16x16xf32>
    %194 = tpu.matmul %191, %192, %cst_59 {dimension_numbers = #tpu.dot_dimension_numbers<[1], [1], [0], [0], [0, 0, 1, 0], [], []>} : vector<16x8xf32>, vector<16x8xf32>, vector<16x16xf32> -> vector<16x16xf32>
    %cst_60 = arith.constant dense<0xFF800000> : vector<16xf32>
    %195 = vector.multi_reduction <maximumf>, %194, %cst_60 [1] : vector<16x16xf32> to vector<16xf32>
    %196 = vector.shape_cast %195 : vector<16xf32> to vector<16x1xf32>
    %197 = vector.broadcast %196 : vector<16x1xf32> to vector<16x16xf32>
    %198 = arith.subf %194, %197 : vector<16x16xf32>
    %199 = math.exp %198 : vector<16x16xf32>
    %cst_61 = arith.constant dense<0.000000e+00> : vector<16xf32>
    %200 = vector.multi_reduction <add>, %199, %cst_61 [1] : vector<16x16xf32> to vector<16xf32>
    %201 = vector.shape_cast %200 : vector<16xf32> to vector<16x1xf32>
    %202 = tpu.reciprocal %201 {approx = true} : vector<16x1xf32> -> vector<16x1xf32>
    %203 = vector.broadcast %202 : vector<16x1xf32> to vector<16x16xf32>
    %204 = arith.mulf %199, %203 : vector<16x16xf32>
    %cst_62 = arith.constant dense<0.000000e+00> : vector<16x8xf32>
    %205 = tpu.matmul %204, %193, %cst_62 {dimension_numbers = #tpu.dot_dimension_numbers<[1], [0], [0], [1], [0, 0, 1, 1], [], []>} : vector<16x16xf32>, vector<16x8xf32>, vector<16x8xf32> -> vector<16x8xf32>
    %206 = vector.extract_strided_slice %188 {offsets = [0, 8], sizes = [16, 8], strides = [1, 1]} : vector<16x32xf32> to vector<16x8xf32>
    %207 = vector.extract_strided_slice %189 {offsets = [0, 8], sizes = [16, 8], strides = [1, 1]} : vector<16x32xf32> to vector<16x8xf32>
    %208 = vector.extract_strided_slice %190 {offsets = [0, 8], sizes = [16, 8], strides = [1, 1]} : vector<16x32xf32> to vector<16x8xf32>
    %cst_63 = arith.constant dense<0.000000e+00> : vector<16x16xf32>
    %209 = tpu.matmul %206, %207, %cst_63 {dimension_numbers = #tpu.dot_dimension_numbers<[1], [1], [0], [0], [0, 0, 1, 0], [], []>} : vector<16x8xf32>, vector<16x8xf32>, vector<16x16xf32> -> vector<16x16xf32>
    %cst_64 = arith.constant dense<0xFF800000> : vector<16xf32>
    %210 = vector.multi_reduction <maximumf>, %209, %cst_64 [1] : vector<16x16xf32> to vector<16xf32>
    %211 = vector.shape_cast %210 : vector<16xf32> to vector<16x1xf32>
    %212 = vector.broadcast %211 : vector<16x1xf32> to vector<16x16xf32>
    %213 = arith.subf %209, %212 : vector<16x16xf32>
    %214 = math.exp %213 : vector<16x16xf32>
    %cst_65 = arith.constant dense<0.000000e+00> : vector<16xf32>
    %215 = vector.multi_reduction <add>, %214, %cst_65 [1] : vector<16x16xf32> to vector<16xf32>
    %216 = vector.shape_cast %215 : vector<16xf32> to vector<16x1xf32>
    %217 = tpu.reciprocal %216 {approx = true} : vector<16x1xf32> -> vector<16x1xf32>
    %218 = vector.broadcast %217 : vector<16x1xf32> to vector<16x16xf32>
    %219 = arith.mulf %214, %218 : vector<16x16xf32>
    %cst_66 = arith.constant dense<0.000000e+00> : vector<16x8xf32>
    %220 = tpu.matmul %219, %208, %cst_66 {dimension_numbers = #tpu.dot_dimension_numbers<[1], [0], [0], [1], [0, 0, 1, 1], [], []>} : vector<16x16xf32>, vector<16x8xf32>, vector<16x8xf32> -> vector<16x8xf32>
    %221 = vector.extract_strided_slice %188 {offsets = [0, 16], sizes = [16, 8], strides = [1, 1]} : vector<16x32xf32> to vector<16x8xf32>
    %222 = vector.extract_strided_slice %189 {offsets = [0, 16], sizes = [16, 8], strides = [1, 1]} : vector<16x32xf32> to vector<16x8xf32>
    %223 = vector.extract_strided_slice %190 {offsets = [0, 16], sizes = [16, 8], strides = [1, 1]} : vector<16x32xf32> to vector<16x8xf32>
    %cst_67 = arith.constant dense<0.000000e+00> : vector<16x16xf32>
    %224 = tpu.matmul %221, %222, %cst_67 {dimension_numbers = #tpu.dot_dimension_numbers<[1], [1], [0], [0], [0, 0, 1, 0], [], []>} : vector<16x8xf32>, vector<16x8xf32>, vector<16x16xf32> -> vector<16x16xf32>
    %cst_68 = arith.constant dense<0xFF800000> : vector<16xf32>
    %225 = vector.multi_reduction <maximumf>, %224, %cst_68 [1] : vector<16x16xf32> to vector<16xf32>
    %226 = vector.shape_cast %225 : vector<16xf32> to vector<16x1xf32>
    %227 = vector.broadcast %226 : vector<16x1xf32> to vector<16x16xf32>
    %228 = arith.subf %224, %227 : vector<16x16xf32>
    %229 = math.exp %228 : vector<16x16xf32>
    %cst_69 = arith.constant dense<0.000000e+00> : vector<16xf32>
    %230 = vector.multi_reduction <add>, %229, %cst_69 [1] : vector<16x16xf32> to vector<16xf32>
    %231 = vector.shape_cast %230 : vector<16xf32> to vector<16x1xf32>
    %232 = tpu.reciprocal %231 {approx = true} : vector<16x1xf32> -> vector<16x1xf32>
    %233 = vector.broadcast %232 : vector<16x1xf32> to vector<16x16xf32>
    %234 = arith.mulf %229, %233 : vector<16x16xf32>
    %cst_70 = arith.constant dense<0.000000e+00> : vector<16x8xf32>
    %235 = tpu.matmul %234, %223, %cst_70 {dimension_numbers = #tpu.dot_dimension_numbers<[1], [0], [0], [1], [0, 0, 1, 1], [], []>} : vector<16x16xf32>, vector<16x8xf32>, vector<16x8xf32> -> vector<16x8xf32>
    %236 = vector.extract_strided_slice %188 {offsets = [0, 24], sizes = [16, 8], strides = [1, 1]} : vector<16x32xf32> to vector<16x8xf32>
    %237 = vector.extract_strided_slice %189 {offsets = [0, 24], sizes = [16, 8], strides = [1, 1]} : vector<16x32xf32> to vector<16x8xf32>
    %238 = vector.extract_strided_slice %190 {offsets = [0, 24], sizes = [16, 8], strides = [1, 1]} : vector<16x32xf32> to vector<16x8xf32>
    %cst_71 = arith.constant dense<0.000000e+00> : vector<16x16xf32>
    %239 = tpu.matmul %236, %237, %cst_71 {dimension_numbers = #tpu.dot_dimension_numbers<[1], [1], [0], [0], [0, 0, 1, 0], [], []>} : vector<16x8xf32>, vector<16x8xf32>, vector<16x16xf32> -> vector<16x16xf32>
    %cst_72 = arith.constant dense<0xFF800000> : vector<16xf32>
    %240 = vector.multi_reduction <maximumf>, %239, %cst_72 [1] : vector<16x16xf32> to vector<16xf32>
    %241 = vector.shape_cast %240 : vector<16xf32> to vector<16x1xf32>
    %242 = vector.broadcast %241 : vector<16x1xf32> to vector<16x16xf32>
    %243 = arith.subf %239, %242 : vector<16x16xf32>
    %244 = math.exp %243 : vector<16x16xf32>
    %cst_73 = arith.constant dense<0.000000e+00> : vector<16xf32>
    %245 = vector.multi_reduction <add>, %244, %cst_73 [1] : vector<16x16xf32> to vector<16xf32>
    %246 = vector.shape_cast %245 : vector<16xf32> to vector<16x1xf32>
    %247 = tpu.reciprocal %246 {approx = true} : vector<16x1xf32> -> vector<16x1xf32>
    %248 = vector.broadcast %247 : vector<16x1xf32> to vector<16x16xf32>
    %249 = arith.mulf %244, %248 : vector<16x16xf32>
    %cst_74 = arith.constant dense<0.000000e+00> : vector<16x8xf32>
    %250 = tpu.matmul %249, %238, %cst_74 {dimension_numbers = #tpu.dot_dimension_numbers<[1], [0], [0], [1], [0, 0, 1, 1], [], []>} : vector<16x16xf32>, vector<16x8xf32>, vector<16x8xf32> -> vector<16x8xf32>
    %251 = tpu.concatenate %205, %220, %235, %250 in 1 : vector<16x8xf32>, vector<16x8xf32>, vector<16x8xf32>, vector<16x8xf32> -> vector<16x32xf32>
    %252 = vector.extract_strided_slice %185 {offsets = [16, 0], sizes = [16, 32], strides = [1, 1]} : vector<32x32xf32> to vector<16x32xf32>
    %253 = vector.extract_strided_slice %186 {offsets = [16, 0], sizes = [16, 32], strides = [1, 1]} : vector<32x32xf32> to vector<16x32xf32>
    %254 = vector.extract_strided_slice %187 {offsets = [16, 0], sizes = [16, 32], strides = [1, 1]} : vector<32x32xf32> to vector<16x32xf32>
    %255 = vector.extract_strided_slice %252 {offsets = [0, 0], sizes = [16, 8], strides = [1, 1]} : vector<16x32xf32> to vector<16x8xf32>
    %256 = vector.extract_strided_slice %253 {offsets = [0, 0], sizes = [16, 8], strides = [1, 1]} : vector<16x32xf32> to vector<16x8xf32>
    %257 = vector.extract_strided_slice %254 {offsets = [0, 0], sizes = [16, 8], strides = [1, 1]} : vector<16x32xf32> to vector<16x8xf32>
    %cst_75 = arith.constant dense<0.000000e+00> : vector<16x16xf32>
    %258 = tpu.matmul %255, %256, %cst_75 {dimension_numbers = #tpu.dot_dimension_numbers<[1], [1], [0], [0], [0, 0, 1, 0], [], []>} : vector<16x8xf32>, vector<16x8xf32>, vector<16x16xf32> -> vector<16x16xf32>
    %cst_76 = arith.constant dense<0xFF800000> : vector<16xf32>
    %259 = vector.multi_reduction <maximumf>, %258, %cst_76 [1] : vector<16x16xf32> to vector<16xf32>
    %260 = vector.shape_cast %259 : vector<16xf32> to vector<16x1xf32>
    %261 = vector.broadcast %260 : vector<16x1xf32> to vector<16x16xf32>
    %262 = arith.subf %258, %261 : vector<16x16xf32>
    %263 = math.exp %262 : vector<16x16xf32>
    %cst_77 = arith.constant dense<0.000000e+00> : vector<16xf32>
    %264 = vector.multi_reduction <add>, %263, %cst_77 [1] : vector<16x16xf32> to vector<16xf32>
    %265 = vector.shape_cast %264 : vector<16xf32> to vector<16x1xf32>
    %266 = tpu.reciprocal %265 {approx = true} : vector<16x1xf32> -> vector<16x1xf32>
    %267 = vector.broadcast %266 : vector<16x1xf32> to vector<16x16xf32>
    %268 = arith.mulf %263, %267 : vector<16x16xf32>
    %cst_78 = arith.constant dense<0.000000e+00> : vector<16x8xf32>
    %269 = tpu.matmul %268, %257, %cst_78 {dimension_numbers = #tpu.dot_dimension_numbers<[1], [0], [0], [1], [0, 0, 1, 1], [], []>} : vector<16x16xf32>, vector<16x8xf32>, vector<16x8xf32> -> vector<16x8xf32>
    %270 = vector.extract_strided_slice %252 {offsets = [0, 8], sizes = [16, 8], strides = [1, 1]} : vector<16x32xf32> to vector<16x8xf32>
    %271 = vector.extract_strided_slice %253 {offsets = [0, 8], sizes = [16, 8], strides = [1, 1]} : vector<16x32xf32> to vector<16x8xf32>
    %272 = vector.extract_strided_slice %254 {offsets = [0, 8], sizes = [16, 8], strides = [1, 1]} : vector<16x32xf32> to vector<16x8xf32>
    %cst_79 = arith.constant dense<0.000000e+00> : vector<16x16xf32>
    %273 = tpu.matmul %270, %271, %cst_79 {dimension_numbers = #tpu.dot_dimension_numbers<[1], [1], [0], [0], [0, 0, 1, 0], [], []>} : vector<16x8xf32>, vector<16x8xf32>, vector<16x16xf32> -> vector<16x16xf32>
    %cst_80 = arith.constant dense<0xFF800000> : vector<16xf32>
    %274 = vector.multi_reduction <maximumf>, %273, %cst_80 [1] : vector<16x16xf32> to vector<16xf32>
    %275 = vector.shape_cast %274 : vector<16xf32> to vector<16x1xf32>
    %276 = vector.broadcast %275 : vector<16x1xf32> to vector<16x16xf32>
    %277 = arith.subf %273, %276 : vector<16x16xf32>
    %278 = math.exp %277 : vector<16x16xf32>
    %cst_81 = arith.constant dense<0.000000e+00> : vector<16xf32>
    %279 = vector.multi_reduction <add>, %278, %cst_81 [1] : vector<16x16xf32> to vector<16xf32>
    %280 = vector.shape_cast %279 : vector<16xf32> to vector<16x1xf32>
    %281 = tpu.reciprocal %280 {approx = true} : vector<16x1xf32> -> vector<16x1xf32>
    %282 = vector.broadcast %281 : vector<16x1xf32> to vector<16x16xf32>
    %283 = arith.mulf %278, %282 : vector<16x16xf32>
    %cst_82 = arith.constant dense<0.000000e+00> : vector<16x8xf32>
    %284 = tpu.matmul %283, %272, %cst_82 {dimension_numbers = #tpu.dot_dimension_numbers<[1], [0], [0], [1], [0, 0, 1, 1], [], []>} : vector<16x16xf32>, vector<16x8xf32>, vector<16x8xf32> -> vector<16x8xf32>
    %285 = vector.extract_strided_slice %252 {offsets = [0, 16], sizes = [16, 8], strides = [1, 1]} : vector<16x32xf32> to vector<16x8xf32>
    %286 = vector.extract_strided_slice %253 {offsets = [0, 16], sizes = [16, 8], strides = [1, 1]} : vector<16x32xf32> to vector<16x8xf32>
    %287 = vector.extract_strided_slice %254 {offsets = [0, 16], sizes = [16, 8], strides = [1, 1]} : vector<16x32xf32> to vector<16x8xf32>
    %cst_83 = arith.constant dense<0.000000e+00> : vector<16x16xf32>
    %288 = tpu.matmul %285, %286, %cst_83 {dimension_numbers = #tpu.dot_dimension_numbers<[1], [1], [0], [0], [0, 0, 1, 0], [], []>} : vector<16x8xf32>, vector<16x8xf32>, vector<16x16xf32> -> vector<16x16xf32>
    %cst_84 = arith.constant dense<0xFF800000> : vector<16xf32>
    %289 = vector.multi_reduction <maximumf>, %288, %cst_84 [1] : vector<16x16xf32> to vector<16xf32>
    %290 = vector.shape_cast %289 : vector<16xf32> to vector<16x1xf32>
    %291 = vector.broadcast %290 : vector<16x1xf32> to vector<16x16xf32>
    %292 = arith.subf %288, %291 : vector<16x16xf32>
    %293 = math.exp %292 : vector<16x16xf32>
    %cst_85 = arith.constant dense<0.000000e+00> : vector<16xf32>
    %294 = vector.multi_reduction <add>, %293, %cst_85 [1] : vector<16x16xf32> to vector<16xf32>
    %295 = vector.shape_cast %294 : vector<16xf32> to vector<16x1xf32>
    %296 = tpu.reciprocal %295 {approx = true} : vector<16x1xf32> -> vector<16x1xf32>
    %297 = vector.broadcast %296 : vector<16x1xf32> to vector<16x16xf32>
    %298 = arith.mulf %293, %297 : vector<16x16xf32>
    %cst_86 = arith.constant dense<0.000000e+00> : vector<16x8xf32>
    %299 = tpu.matmul %298, %287, %cst_86 {dimension_numbers = #tpu.dot_dimension_numbers<[1], [0], [0], [1], [0, 0, 1, 1], [], []>} : vector<16x16xf32>, vector<16x8xf32>, vector<16x8xf32> -> vector<16x8xf32>
    %300 = vector.extract_strided_slice %252 {offsets = [0, 24], sizes = [16, 8], strides = [1, 1]} : vector<16x32xf32> to vector<16x8xf32>
    %301 = vector.extract_strided_slice %253 {offsets = [0, 24], sizes = [16, 8], strides = [1, 1]} : vector<16x32xf32> to vector<16x8xf32>
    %302 = vector.extract_strided_slice %254 {offsets = [0, 24], sizes = [16, 8], strides = [1, 1]} : vector<16x32xf32> to vector<16x8xf32>
    %cst_87 = arith.constant dense<0.000000e+00> : vector<16x16xf32>
    %303 = tpu.matmul %300, %301, %cst_87 {dimension_numbers = #tpu.dot_dimension_numbers<[1], [1], [0], [0], [0, 0, 1, 0], [], []>} : vector<16x8xf32>, vector<16x8xf32>, vector<16x16xf32> -> vector<16x16xf32>
    %cst_88 = arith.constant dense<0xFF800000> : vector<16xf32>
    %304 = vector.multi_reduction <maximumf>, %303, %cst_88 [1] : vector<16x16xf32> to vector<16xf32>
    %305 = vector.shape_cast %304 : vector<16xf32> to vector<16x1xf32>
    %306 = vector.broadcast %305 : vector<16x1xf32> to vector<16x16xf32>
    %307 = arith.subf %303, %306 : vector<16x16xf32>
    %308 = math.exp %307 : vector<16x16xf32>
    %cst_89 = arith.constant dense<0.000000e+00> : vector<16xf32>
    %309 = vector.multi_reduction <add>, %308, %cst_89 [1] : vector<16x16xf32> to vector<16xf32>
    %310 = vector.shape_cast %309 : vector<16xf32> to vector<16x1xf32>
    %311 = tpu.reciprocal %310 {approx = true} : vector<16x1xf32> -> vector<16x1xf32>
    %312 = vector.broadcast %311 : vector<16x1xf32> to vector<16x16xf32>
    %313 = arith.mulf %308, %312 : vector<16x16xf32>
    %cst_90 = arith.constant dense<0.000000e+00> : vector<16x8xf32>
    %314 = tpu.matmul %313, %302, %cst_90 {dimension_numbers = #tpu.dot_dimension_numbers<[1], [0], [0], [1], [0, 0, 1, 1], [], []>} : vector<16x16xf32>, vector<16x8xf32>, vector<16x8xf32> -> vector<16x8xf32>
    %315 = tpu.concatenate %269, %284, %299, %314 in 1 : vector<16x8xf32>, vector<16x8xf32>, vector<16x8xf32>, vector<16x8xf32> -> vector<16x32xf32>
    %316 = tpu.concatenate %251, %315 in 0 : vector<16x32xf32>, vector<16x32xf32> -> vector<32x32xf32>
    %c256 = arith.constant 256 : index
    %c0_91 = arith.constant 0 : index
    %317 = vector.load %arg2[%c256, %c0_91] : memref<560x128xf32, #tpu.memory_space<vmem>>, vector<32x32xf32>
    %c288 = arith.constant 288 : index
    %c0_92 = arith.constant 0 : index
    %318 = vector.load %arg2[%c288, %c0_92] : memref<560x128xf32, #tpu.memory_space<vmem>>, vector<1x32xf32>
    %cst_93 = arith.constant dense<0.000000e+00> : vector<32x32xf32>
    %319 = tpu.matmul %316, %317, %cst_93 {dimension_numbers = #tpu.dot_dimension_numbers<[1], [0], [0], [1], [0, 0, 1, 1], [], []>} : vector<32x32xf32>, vector<32x32xf32>, vector<32x32xf32> -> vector<32x32xf32>
    %320 = vector.broadcast %318 : vector<1x32xf32> to vector<32x32xf32>
    %321 = arith.addf %319, %320 : vector<32x32xf32>
    %322 = arith.addf %321, %155 : vector<32x32xf32>
    %c296 = arith.constant 296 : index
    %c0_94 = arith.constant 0 : index
    %323 = vector.load %arg2[%c296, %c0_94] : memref<560x128xf32, #tpu.memory_space<vmem>>, vector<1x32xf32>
    %c297 = arith.constant 297 : index
    %c0_95 = arith.constant 0 : index
    %324 = vector.load %arg2[%c297, %c0_95] : memref<560x128xf32, #tpu.memory_space<vmem>>, vector<1x32xf32>
    %cst_96 = arith.constant dense<0.000000e+00> : vector<32xf32>
    %325 = vector.multi_reduction <add>, %322, %cst_96 [1] : vector<32x32xf32> to vector<32xf32>
    %326 = vector.shape_cast %325 : vector<32xf32> to vector<32x1xf32>
    %cst_97 = arith.constant 3.200000e+01 : f32
    %327 = vector.broadcast %cst_97 : f32 to vector<32x1xf32>
    %328 = arith.divf %326, %327 : vector<32x1xf32>
    %329 = vector.broadcast %328 : vector<32x1xf32> to vector<32x32xf32>
    %330 = arith.subf %322, %329 : vector<32x32xf32>
    %331 = arith.mulf %330, %330 : vector<32x32xf32>
    %cst_98 = arith.constant dense<0.000000e+00> : vector<32xf32>
    %332 = vector.multi_reduction <add>, %331, %cst_98 [1] : vector<32x32xf32> to vector<32xf32>
    %333 = vector.shape_cast %332 : vector<32xf32> to vector<32x1xf32>
    %cst_99 = arith.constant 3.200000e+01 : f32
    %334 = vector.broadcast %cst_99 : f32 to vector<32x1xf32>
    %335 = arith.divf %333, %334 : vector<32x1xf32>
    %336 = vector.broadcast %328 : vector<32x1xf32> to vector<32x32xf32>
    %337 = arith.subf %322, %336 : vector<32x32xf32>
    %cst_100 = arith.constant 9.99999996E-13 : f32
    %338 = vector.broadcast %cst_100 : f32 to vector<32x1xf32>
    %339 = arith.addf %335, %338 : vector<32x1xf32>
    %340 = math.rsqrt %339 : vector<32x1xf32>
    %341 = vector.broadcast %340 : vector<32x1xf32> to vector<32x32xf32>
    %342 = arith.mulf %337, %341 : vector<32x32xf32>
    %343 = vector.broadcast %323 : vector<1x32xf32> to vector<32x32xf32>
    %344 = arith.mulf %342, %343 : vector<32x32xf32>
    %345 = vector.broadcast %324 : vector<1x32xf32> to vector<32x32xf32>
    %346 = arith.addf %344, %345 : vector<32x32xf32>
    %c304 = arith.constant 304 : index
    %c0_101 = arith.constant 0 : index
    %347 = vector.load %arg2[%c304, %c0_101] : memref<560x128xf32, #tpu.memory_space<vmem>>, vector<32x32xf32>
    %c336 = arith.constant 336 : index
    %c0_102 = arith.constant 0 : index
    %348 = vector.load %arg2[%c336, %c0_102] : memref<560x128xf32, #tpu.memory_space<vmem>>, vector<1x32xf32>
    %c344 = arith.constant 344 : index
    %c0_103 = arith.constant 0 : index
    %349 = vector.load %arg2[%c344, %c0_103] : memref<560x128xf32, #tpu.memory_space<vmem>>, vector<32x32xf32>
    %c376 = arith.constant 376 : index
    %c0_104 = arith.constant 0 : index
    %350 = vector.load %arg2[%c376, %c0_104] : memref<560x128xf32, #tpu.memory_space<vmem>>, vector<1x32xf32>
    %cst_105 = arith.constant dense<0.000000e+00> : vector<32x32xf32>
    %351 = tpu.matmul %346, %347, %cst_105 {dimension_numbers = #tpu.dot_dimension_numbers<[1], [0], [0], [1], [0, 0, 1, 1], [], []>} : vector<32x32xf32>, vector<32x32xf32>, vector<32x32xf32> -> vector<32x32xf32>
    %352 = vector.broadcast %348 : vector<1x32xf32> to vector<32x32xf32>
    %353 = arith.addf %351, %352 : vector<32x32xf32>
    %cst_106 = arith.constant 5.000000e-01 : f32
    %354 = vector.broadcast %cst_106 : f32 to vector<32x32xf32>
    %355 = arith.mulf %354, %353 : vector<32x32xf32>
    %cst_107 = arith.constant 4.471500e-02 : f32
    %356 = vector.broadcast %cst_107 : f32 to vector<32x32xf32>
    %357 = arith.mulf %356, %353 : vector<32x32xf32>
    %358 = arith.mulf %357, %353 : vector<32x32xf32>
    %359 = arith.mulf %358, %353 : vector<32x32xf32>
    %360 = arith.addf %353, %359 : vector<32x32xf32>
    %cst_108 = arith.constant 0.797884583 : f32
    %361 = vector.broadcast %cst_108 : f32 to vector<32x32xf32>
    %362 = arith.mulf %361, %360 : vector<32x32xf32>
    %363 = math.tanh %362 : vector<32x32xf32>
    %cst_109 = arith.constant 1.000000e+00 : f32
    %364 = vector.broadcast %cst_109 : f32 to vector<32x32xf32>
    %365 = arith.addf %364, %363 : vector<32x32xf32>
    %366 = arith.mulf %355, %365 : vector<32x32xf32>
    %cst_110 = arith.constant dense<0.000000e+00> : vector<32x32xf32>
    %367 = tpu.matmul %366, %349, %cst_110 {dimension_numbers = #tpu.dot_dimension_numbers<[1], [0], [0], [1], [0, 0, 1, 1], [], []>} : vector<32x32xf32>, vector<32x32xf32>, vector<32x32xf32> -> vector<32x32xf32>
    %368 = vector.broadcast %350 : vector<1x32xf32> to vector<32x32xf32>
    %369 = arith.addf %367, %368 : vector<32x32xf32>
    %370 = arith.addf %369, %322 : vector<32x32xf32>
    %c384 = arith.constant 384 : index
    %c0_111 = arith.constant 0 : index
    %371 = vector.load %arg2[%c384, %c0_111] : memref<560x128xf32, #tpu.memory_space<vmem>>, vector<1x32xf32>
    %c385 = arith.constant 385 : index
    %c0_112 = arith.constant 0 : index
    %372 = vector.load %arg2[%c385, %c0_112] : memref<560x128xf32, #tpu.memory_space<vmem>>, vector<1x32xf32>
    %cst_113 = arith.constant dense<0.000000e+00> : vector<32xf32>
    %373 = vector.multi_reduction <add>, %370, %cst_113 [1] : vector<32x32xf32> to vector<32xf32>
    %374 = vector.shape_cast %373 : vector<32xf32> to vector<32x1xf32>
    %cst_114 = arith.constant 3.200000e+01 : f32
    %375 = vector.broadcast %cst_114 : f32 to vector<32x1xf32>
    %376 = arith.divf %374, %375 : vector<32x1xf32>
    %377 = vector.broadcast %376 : vector<32x1xf32> to vector<32x32xf32>
    %378 = arith.subf %370, %377 : vector<32x32xf32>
    %379 = arith.mulf %378, %378 : vector<32x32xf32>
    %cst_115 = arith.constant dense<0.000000e+00> : vector<32xf32>
    %380 = vector.multi_reduction <add>, %379, %cst_115 [1] : vector<32x32xf32> to vector<32xf32>
    %381 = vector.shape_cast %380 : vector<32xf32> to vector<32x1xf32>
    %cst_116 = arith.constant 3.200000e+01 : f32
    %382 = vector.broadcast %cst_116 : f32 to vector<32x1xf32>
    %383 = arith.divf %381, %382 : vector<32x1xf32>
    %384 = vector.broadcast %376 : vector<32x1xf32> to vector<32x32xf32>
    %385 = arith.subf %370, %384 : vector<32x32xf32>
    %cst_117 = arith.constant 9.99999996E-13 : f32
    %386 = vector.broadcast %cst_117 : f32 to vector<32x1xf32>
    %387 = arith.addf %383, %386 : vector<32x1xf32>
    %388 = math.rsqrt %387 : vector<32x1xf32>
    %389 = vector.broadcast %388 : vector<32x1xf32> to vector<32x32xf32>
    %390 = arith.mulf %385, %389 : vector<32x32xf32>
    %391 = vector.broadcast %371 : vector<1x32xf32> to vector<32x32xf32>
    %392 = arith.mulf %390, %391 : vector<32x32xf32>
    %393 = vector.broadcast %372 : vector<1x32xf32> to vector<32x32xf32>
    %394 = arith.addf %392, %393 : vector<32x32xf32>
    %c392 = arith.constant 392 : index
    %c0_118 = arith.constant 0 : index
    %395 = vector.load %arg2[%c392, %c0_118] : memref<560x128xf32, #tpu.memory_space<vmem>>, vector<32x96xf32>
    %c424 = arith.constant 424 : index
    %c0_119 = arith.constant 0 : index
    %396 = vector.load %arg2[%c424, %c0_119] : memref<560x128xf32, #tpu.memory_space<vmem>>, vector<1x96xf32>
    %cst_120 = arith.constant dense<0.000000e+00> : vector<32x96xf32>
    %397 = tpu.matmul %394, %395, %cst_120 {dimension_numbers = #tpu.dot_dimension_numbers<[1], [0], [0], [1], [0, 0, 1, 1], [], []>} : vector<32x32xf32>, vector<32x96xf32>, vector<32x96xf32> -> vector<32x96xf32>
    %398 = vector.broadcast %396 : vector<1x96xf32> to vector<32x96xf32>
    %399 = arith.addf %397, %398 : vector<32x96xf32>
    %400 = vector.extract_strided_slice %399 {offsets = [0, 0], sizes = [32, 32], strides = [1, 1]} : vector<32x96xf32> to vector<32x32xf32>
    %401 = vector.extract_strided_slice %399 {offsets = [0, 32], sizes = [32, 32], strides = [1, 1]} : vector<32x96xf32> to vector<32x32xf32>
    %402 = vector.extract_strided_slice %399 {offsets = [0, 64], sizes = [32, 32], strides = [1, 1]} : vector<32x96xf32> to vector<32x32xf32>
    %403 = vector.extract_strided_slice %400 {offsets = [0, 0], sizes = [16, 32], strides = [1, 1]} : vector<32x32xf32> to vector<16x32xf32>
    %404 = vector.extract_strided_slice %401 {offsets = [0, 0], sizes = [16, 32], strides = [1, 1]} : vector<32x32xf32> to vector<16x32xf32>
    %405 = vector.extract_strided_slice %402 {offsets = [0, 0], sizes = [16, 32], strides = [1, 1]} : vector<32x32xf32> to vector<16x32xf32>
    %406 = vector.extract_strided_slice %403 {offsets = [0, 0], sizes = [16, 8], strides = [1, 1]} : vector<16x32xf32> to vector<16x8xf32>
    %407 = vector.extract_strided_slice %404 {offsets = [0, 0], sizes = [16, 8], strides = [1, 1]} : vector<16x32xf32> to vector<16x8xf32>
    %408 = vector.extract_strided_slice %405 {offsets = [0, 0], sizes = [16, 8], strides = [1, 1]} : vector<16x32xf32> to vector<16x8xf32>
    %cst_121 = arith.constant dense<0.000000e+00> : vector<16x16xf32>
    %409 = tpu.matmul %406, %407, %cst_121 {dimension_numbers = #tpu.dot_dimension_numbers<[1], [1], [0], [0], [0, 0, 1, 0], [], []>} : vector<16x8xf32>, vector<16x8xf32>, vector<16x16xf32> -> vector<16x16xf32>
    %cst_122 = arith.constant dense<0xFF800000> : vector<16xf32>
    %410 = vector.multi_reduction <maximumf>, %409, %cst_122 [1] : vector<16x16xf32> to vector<16xf32>
    %411 = vector.shape_cast %410 : vector<16xf32> to vector<16x1xf32>
    %412 = vector.broadcast %411 : vector<16x1xf32> to vector<16x16xf32>
    %413 = arith.subf %409, %412 : vector<16x16xf32>
    %414 = math.exp %413 : vector<16x16xf32>
    %cst_123 = arith.constant dense<0.000000e+00> : vector<16xf32>
    %415 = vector.multi_reduction <add>, %414, %cst_123 [1] : vector<16x16xf32> to vector<16xf32>
    %416 = vector.shape_cast %415 : vector<16xf32> to vector<16x1xf32>
    %417 = tpu.reciprocal %416 {approx = true} : vector<16x1xf32> -> vector<16x1xf32>
    %418 = vector.broadcast %417 : vector<16x1xf32> to vector<16x16xf32>
    %419 = arith.mulf %414, %418 : vector<16x16xf32>
    %cst_124 = arith.constant dense<0.000000e+00> : vector<16x8xf32>
    %420 = tpu.matmul %419, %408, %cst_124 {dimension_numbers = #tpu.dot_dimension_numbers<[1], [0], [0], [1], [0, 0, 1, 1], [], []>} : vector<16x16xf32>, vector<16x8xf32>, vector<16x8xf32> -> vector<16x8xf32>
    %421 = vector.extract_strided_slice %403 {offsets = [0, 8], sizes = [16, 8], strides = [1, 1]} : vector<16x32xf32> to vector<16x8xf32>
    %422 = vector.extract_strided_slice %404 {offsets = [0, 8], sizes = [16, 8], strides = [1, 1]} : vector<16x32xf32> to vector<16x8xf32>
    %423 = vector.extract_strided_slice %405 {offsets = [0, 8], sizes = [16, 8], strides = [1, 1]} : vector<16x32xf32> to vector<16x8xf32>
    %cst_125 = arith.constant dense<0.000000e+00> : vector<16x16xf32>
    %424 = tpu.matmul %421, %422, %cst_125 {dimension_numbers = #tpu.dot_dimension_numbers<[1], [1], [0], [0], [0, 0, 1, 0], [], []>} : vector<16x8xf32>, vector<16x8xf32>, vector<16x16xf32> -> vector<16x16xf32>
    %cst_126 = arith.constant dense<0xFF800000> : vector<16xf32>
    %425 = vector.multi_reduction <maximumf>, %424, %cst_126 [1] : vector<16x16xf32> to vector<16xf32>
    %426 = vector.shape_cast %425 : vector<16xf32> to vector<16x1xf32>
    %427 = vector.broadcast %426 : vector<16x1xf32> to vector<16x16xf32>
    %428 = arith.subf %424, %427 : vector<16x16xf32>
    %429 = math.exp %428 : vector<16x16xf32>
    %cst_127 = arith.constant dense<0.000000e+00> : vector<16xf32>
    %430 = vector.multi_reduction <add>, %429, %cst_127 [1] : vector<16x16xf32> to vector<16xf32>
    %431 = vector.shape_cast %430 : vector<16xf32> to vector<16x1xf32>
    %432 = tpu.reciprocal %431 {approx = true} : vector<16x1xf32> -> vector<16x1xf32>
    %433 = vector.broadcast %432 : vector<16x1xf32> to vector<16x16xf32>
    %434 = arith.mulf %429, %433 : vector<16x16xf32>
    %cst_128 = arith.constant dense<0.000000e+00> : vector<16x8xf32>
    %435 = tpu.matmul %434, %423, %cst_128 {dimension_numbers = #tpu.dot_dimension_numbers<[1], [0], [0], [1], [0, 0, 1, 1], [], []>} : vector<16x16xf32>, vector<16x8xf32>, vector<16x8xf32> -> vector<16x8xf32>
    %436 = vector.extract_strided_slice %403 {offsets = [0, 16], sizes = [16, 8], strides = [1, 1]} : vector<16x32xf32> to vector<16x8xf32>
    %437 = vector.extract_strided_slice %404 {offsets = [0, 16], sizes = [16, 8], strides = [1, 1]} : vector<16x32xf32> to vector<16x8xf32>
    %438 = vector.extract_strided_slice %405 {offsets = [0, 16], sizes = [16, 8], strides = [1, 1]} : vector<16x32xf32> to vector<16x8xf32>
    %cst_129 = arith.constant dense<0.000000e+00> : vector<16x16xf32>
    %439 = tpu.matmul %436, %437, %cst_129 {dimension_numbers = #tpu.dot_dimension_numbers<[1], [1], [0], [0], [0, 0, 1, 0], [], []>} : vector<16x8xf32>, vector<16x8xf32>, vector<16x16xf32> -> vector<16x16xf32>
    %cst_130 = arith.constant dense<0xFF800000> : vector<16xf32>
    %440 = vector.multi_reduction <maximumf>, %439, %cst_130 [1] : vector<16x16xf32> to vector<16xf32>
    %441 = vector.shape_cast %440 : vector<16xf32> to vector<16x1xf32>
    %442 = vector.broadcast %441 : vector<16x1xf32> to vector<16x16xf32>
    %443 = arith.subf %439, %442 : vector<16x16xf32>
    %444 = math.exp %443 : vector<16x16xf32>
    %cst_131 = arith.constant dense<0.000000e+00> : vector<16xf32>
    %445 = vector.multi_reduction <add>, %444, %cst_131 [1] : vector<16x16xf32> to vector<16xf32>
    %446 = vector.shape_cast %445 : vector<16xf32> to vector<16x1xf32>
    %447 = tpu.reciprocal %446 {approx = true} : vector<16x1xf32> -> vector<16x1xf32>
    %448 = vector.broadcast %447 : vector<16x1xf32> to vector<16x16xf32>
    %449 = arith.mulf %444, %448 : vector<16x16xf32>
    %cst_132 = arith.constant dense<0.000000e+00> : vector<16x8xf32>
    %450 = tpu.matmul %449, %438, %cst_132 {dimension_numbers = #tpu.dot_dimension_numbers<[1], [0], [0], [1], [0, 0, 1, 1], [], []>} : vector<16x16xf32>, vector<16x8xf32>, vector<16x8xf32> -> vector<16x8xf32>
    %451 = vector.extract_strided_slice %403 {offsets = [0, 24], sizes = [16, 8], strides = [1, 1]} : vector<16x32xf32> to vector<16x8xf32>
    %452 = vector.extract_strided_slice %404 {offsets = [0, 24], sizes = [16, 8], strides = [1, 1]} : vector<16x32xf32> to vector<16x8xf32>
    %453 = vector.extract_strided_slice %405 {offsets = [0, 24], sizes = [16, 8], strides = [1, 1]} : vector<16x32xf32> to vector<16x8xf32>
    %cst_133 = arith.constant dense<0.000000e+00> : vector<16x16xf32>
    %454 = tpu.matmul %451, %452, %cst_133 {dimension_numbers = #tpu.dot_dimension_numbers<[1], [1], [0], [0], [0, 0, 1, 0], [], []>} : vector<16x8xf32>, vector<16x8xf32>, vector<16x16xf32> -> vector<16x16xf32>
    %cst_134 = arith.constant dense<0xFF800000> : vector<16xf32>
    %455 = vector.multi_reduction <maximumf>, %454, %cst_134 [1] : vector<16x16xf32> to vector<16xf32>
    %456 = vector.shape_cast %455 : vector<16xf32> to vector<16x1xf32>
    %457 = vector.broadcast %456 : vector<16x1xf32> to vector<16x16xf32>
    %458 = arith.subf %454, %457 : vector<16x16xf32>
    %459 = math.exp %458 : vector<16x16xf32>
    %cst_135 = arith.constant dense<0.000000e+00> : vector<16xf32>
    %460 = vector.multi_reduction <add>, %459, %cst_135 [1] : vector<16x16xf32> to vector<16xf32>
    %461 = vector.shape_cast %460 : vector<16xf32> to vector<16x1xf32>
    %462 = tpu.reciprocal %461 {approx = true} : vector<16x1xf32> -> vector<16x1xf32>
    %463 = vector.broadcast %462 : vector<16x1xf32> to vector<16x16xf32>
    %464 = arith.mulf %459, %463 : vector<16x16xf32>
    %cst_136 = arith.constant dense<0.000000e+00> : vector<16x8xf32>
    %465 = tpu.matmul %464, %453, %cst_136 {dimension_numbers = #tpu.dot_dimension_numbers<[1], [0], [0], [1], [0, 0, 1, 1], [], []>} : vector<16x16xf32>, vector<16x8xf32>, vector<16x8xf32> -> vector<16x8xf32>
    %466 = tpu.concatenate %420, %435, %450, %465 in 1 : vector<16x8xf32>, vector<16x8xf32>, vector<16x8xf32>, vector<16x8xf32> -> vector<16x32xf32>
    %467 = vector.extract_strided_slice %400 {offsets = [16, 0], sizes = [16, 32], strides = [1, 1]} : vector<32x32xf32> to vector<16x32xf32>
    %468 = vector.extract_strided_slice %401 {offsets = [16, 0], sizes = [16, 32], strides = [1, 1]} : vector<32x32xf32> to vector<16x32xf32>
    %469 = vector.extract_strided_slice %402 {offsets = [16, 0], sizes = [16, 32], strides = [1, 1]} : vector<32x32xf32> to vector<16x32xf32>
    %470 = vector.extract_strided_slice %467 {offsets = [0, 0], sizes = [16, 8], strides = [1, 1]} : vector<16x32xf32> to vector<16x8xf32>
    %471 = vector.extract_strided_slice %468 {offsets = [0, 0], sizes = [16, 8], strides = [1, 1]} : vector<16x32xf32> to vector<16x8xf32>
    %472 = vector.extract_strided_slice %469 {offsets = [0, 0], sizes = [16, 8], strides = [1, 1]} : vector<16x32xf32> to vector<16x8xf32>
    %cst_137 = arith.constant dense<0.000000e+00> : vector<16x16xf32>
    %473 = tpu.matmul %470, %471, %cst_137 {dimension_numbers = #tpu.dot_dimension_numbers<[1], [1], [0], [0], [0, 0, 1, 0], [], []>} : vector<16x8xf32>, vector<16x8xf32>, vector<16x16xf32> -> vector<16x16xf32>
    %cst_138 = arith.constant dense<0xFF800000> : vector<16xf32>
    %474 = vector.multi_reduction <maximumf>, %473, %cst_138 [1] : vector<16x16xf32> to vector<16xf32>
    %475 = vector.shape_cast %474 : vector<16xf32> to vector<16x1xf32>
    %476 = vector.broadcast %475 : vector<16x1xf32> to vector<16x16xf32>
    %477 = arith.subf %473, %476 : vector<16x16xf32>
    %478 = math.exp %477 : vector<16x16xf32>
    %cst_139 = arith.constant dense<0.000000e+00> : vector<16xf32>
    %479 = vector.multi_reduction <add>, %478, %cst_139 [1] : vector<16x16xf32> to vector<16xf32>
    %480 = vector.shape_cast %479 : vector<16xf32> to vector<16x1xf32>
    %481 = tpu.reciprocal %480 {approx = true} : vector<16x1xf32> -> vector<16x1xf32>
    %482 = vector.broadcast %481 : vector<16x1xf32> to vector<16x16xf32>
    %483 = arith.mulf %478, %482 : vector<16x16xf32>
    %cst_140 = arith.constant dense<0.000000e+00> : vector<16x8xf32>
    %484 = tpu.matmul %483, %472, %cst_140 {dimension_numbers = #tpu.dot_dimension_numbers<[1], [0], [0], [1], [0, 0, 1, 1], [], []>} : vector<16x16xf32>, vector<16x8xf32>, vector<16x8xf32> -> vector<16x8xf32>
    %485 = vector.extract_strided_slice %467 {offsets = [0, 8], sizes = [16, 8], strides = [1, 1]} : vector<16x32xf32> to vector<16x8xf32>
    %486 = vector.extract_strided_slice %468 {offsets = [0, 8], sizes = [16, 8], strides = [1, 1]} : vector<16x32xf32> to vector<16x8xf32>
    %487 = vector.extract_strided_slice %469 {offsets = [0, 8], sizes = [16, 8], strides = [1, 1]} : vector<16x32xf32> to vector<16x8xf32>
    %cst_141 = arith.constant dense<0.000000e+00> : vector<16x16xf32>
    %488 = tpu.matmul %485, %486, %cst_141 {dimension_numbers = #tpu.dot_dimension_numbers<[1], [1], [0], [0], [0, 0, 1, 0], [], []>} : vector<16x8xf32>, vector<16x8xf32>, vector<16x16xf32> -> vector<16x16xf32>
    %cst_142 = arith.constant dense<0xFF800000> : vector<16xf32>
    %489 = vector.multi_reduction <maximumf>, %488, %cst_142 [1] : vector<16x16xf32> to vector<16xf32>
    %490 = vector.shape_cast %489 : vector<16xf32> to vector<16x1xf32>
    %491 = vector.broadcast %490 : vector<16x1xf32> to vector<16x16xf32>
    %492 = arith.subf %488, %491 : vector<16x16xf32>
    %493 = math.exp %492 : vector<16x16xf32>
    %cst_143 = arith.constant dense<0.000000e+00> : vector<16xf32>
    %494 = vector.multi_reduction <add>, %493, %cst_143 [1] : vector<16x16xf32> to vector<16xf32>
    %495 = vector.shape_cast %494 : vector<16xf32> to vector<16x1xf32>
    %496 = tpu.reciprocal %495 {approx = true} : vector<16x1xf32> -> vector<16x1xf32>
    %497 = vector.broadcast %496 : vector<16x1xf32> to vector<16x16xf32>
    %498 = arith.mulf %493, %497 : vector<16x16xf32>
    %cst_144 = arith.constant dense<0.000000e+00> : vector<16x8xf32>
    %499 = tpu.matmul %498, %487, %cst_144 {dimension_numbers = #tpu.dot_dimension_numbers<[1], [0], [0], [1], [0, 0, 1, 1], [], []>} : vector<16x16xf32>, vector<16x8xf32>, vector<16x8xf32> -> vector<16x8xf32>
    %500 = vector.extract_strided_slice %467 {offsets = [0, 16], sizes = [16, 8], strides = [1, 1]} : vector<16x32xf32> to vector<16x8xf32>
    %501 = vector.extract_strided_slice %468 {offsets = [0, 16], sizes = [16, 8], strides = [1, 1]} : vector<16x32xf32> to vector<16x8xf32>
    %502 = vector.extract_strided_slice %469 {offsets = [0, 16], sizes = [16, 8], strides = [1, 1]} : vector<16x32xf32> to vector<16x8xf32>
    %cst_145 = arith.constant dense<0.000000e+00> : vector<16x16xf32>
    %503 = tpu.matmul %500, %501, %cst_145 {dimension_numbers = #tpu.dot_dimension_numbers<[1], [1], [0], [0], [0, 0, 1, 0], [], []>} : vector<16x8xf32>, vector<16x8xf32>, vector<16x16xf32> -> vector<16x16xf32>
    %cst_146 = arith.constant dense<0xFF800000> : vector<16xf32>
    %504 = vector.multi_reduction <maximumf>, %503, %cst_146 [1] : vector<16x16xf32> to vector<16xf32>
    %505 = vector.shape_cast %504 : vector<16xf32> to vector<16x1xf32>
    %506 = vector.broadcast %505 : vector<16x1xf32> to vector<16x16xf32>
    %507 = arith.subf %503, %506 : vector<16x16xf32>
    %508 = math.exp %507 : vector<16x16xf32>
    %cst_147 = arith.constant dense<0.000000e+00> : vector<16xf32>
    %509 = vector.multi_reduction <add>, %508, %cst_147 [1] : vector<16x16xf32> to vector<16xf32>
    %510 = vector.shape_cast %509 : vector<16xf32> to vector<16x1xf32>
    %511 = tpu.reciprocal %510 {approx = true} : vector<16x1xf32> -> vector<16x1xf32>
    %512 = vector.broadcast %511 : vector<16x1xf32> to vector<16x16xf32>
    %513 = arith.mulf %508, %512 : vector<16x16xf32>
    %cst_148 = arith.constant dense<0.000000e+00> : vector<16x8xf32>
    %514 = tpu.matmul %513, %502, %cst_148 {dimension_numbers = #tpu.dot_dimension_numbers<[1], [0], [0], [1], [0, 0, 1, 1], [], []>} : vector<16x16xf32>, vector<16x8xf32>, vector<16x8xf32> -> vector<16x8xf32>
    %515 = vector.extract_strided_slice %467 {offsets = [0, 24], sizes = [16, 8], strides = [1, 1]} : vector<16x32xf32> to vector<16x8xf32>
    %516 = vector.extract_strided_slice %468 {offsets = [0, 24], sizes = [16, 8], strides = [1, 1]} : vector<16x32xf32> to vector<16x8xf32>
    %517 = vector.extract_strided_slice %469 {offsets = [0, 24], sizes = [16, 8], strides = [1, 1]} : vector<16x32xf32> to vector<16x8xf32>
    %cst_149 = arith.constant dense<0.000000e+00> : vector<16x16xf32>
    %518 = tpu.matmul %515, %516, %cst_149 {dimension_numbers = #tpu.dot_dimension_numbers<[1], [1], [0], [0], [0, 0, 1, 0], [], []>} : vector<16x8xf32>, vector<16x8xf32>, vector<16x16xf32> -> vector<16x16xf32>
    %cst_150 = arith.constant dense<0xFF800000> : vector<16xf32>
    %519 = vector.multi_reduction <maximumf>, %518, %cst_150 [1] : vector<16x16xf32> to vector<16xf32>
    %520 = vector.shape_cast %519 : vector<16xf32> to vector<16x1xf32>
    %521 = vector.broadcast %520 : vector<16x1xf32> to vector<16x16xf32>
    %522 = arith.subf %518, %521 : vector<16x16xf32>
    %523 = math.exp %522 : vector<16x16xf32>
    %cst_151 = arith.constant dense<0.000000e+00> : vector<16xf32>
    %524 = vector.multi_reduction <add>, %523, %cst_151 [1] : vector<16x16xf32> to vector<16xf32>
    %525 = vector.shape_cast %524 : vector<16xf32> to vector<16x1xf32>
    %526 = tpu.reciprocal %525 {approx = true} : vector<16x1xf32> -> vector<16x1xf32>
    %527 = vector.broadcast %526 : vector<16x1xf32> to vector<16x16xf32>
    %528 = arith.mulf %523, %527 : vector<16x16xf32>
    %cst_152 = arith.constant dense<0.000000e+00> : vector<16x8xf32>
    %529 = tpu.matmul %528, %517, %cst_152 {dimension_numbers = #tpu.dot_dimension_numbers<[1], [0], [0], [1], [0, 0, 1, 1], [], []>} : vector<16x16xf32>, vector<16x8xf32>, vector<16x8xf32> -> vector<16x8xf32>
    %530 = tpu.concatenate %484, %499, %514, %529 in 1 : vector<16x8xf32>, vector<16x8xf32>, vector<16x8xf32>, vector<16x8xf32> -> vector<16x32xf32>
    %531 = tpu.concatenate %466, %530 in 0 : vector<16x32xf32>, vector<16x32xf32> -> vector<32x32xf32>
    %c432 = arith.constant 432 : index
    %c0_153 = arith.constant 0 : index
    %532 = vector.load %arg2[%c432, %c0_153] : memref<560x128xf32, #tpu.memory_space<vmem>>, vector<32x32xf32>
    %c464 = arith.constant 464 : index
    %c0_154 = arith.constant 0 : index
    %533 = vector.load %arg2[%c464, %c0_154] : memref<560x128xf32, #tpu.memory_space<vmem>>, vector<1x32xf32>
    %cst_155 = arith.constant dense<0.000000e+00> : vector<32x32xf32>
    %534 = tpu.matmul %531, %532, %cst_155 {dimension_numbers = #tpu.dot_dimension_numbers<[1], [0], [0], [1], [0, 0, 1, 1], [], []>} : vector<32x32xf32>, vector<32x32xf32>, vector<32x32xf32> -> vector<32x32xf32>
    %535 = vector.broadcast %533 : vector<1x32xf32> to vector<32x32xf32>
    %536 = arith.addf %534, %535 : vector<32x32xf32>
    %537 = arith.addf %536, %370 : vector<32x32xf32>
    %c472 = arith.constant 472 : index
    %c0_156 = arith.constant 0 : index
    %538 = vector.load %arg2[%c472, %c0_156] : memref<560x128xf32, #tpu.memory_space<vmem>>, vector<1x32xf32>
    %c473 = arith.constant 473 : index
    %c0_157 = arith.constant 0 : index
    %539 = vector.load %arg2[%c473, %c0_157] : memref<560x128xf32, #tpu.memory_space<vmem>>, vector<1x32xf32>
    %cst_158 = arith.constant dense<0.000000e+00> : vector<32xf32>
    %540 = vector.multi_reduction <add>, %537, %cst_158 [1] : vector<32x32xf32> to vector<32xf32>
    %541 = vector.shape_cast %540 : vector<32xf32> to vector<32x1xf32>
    %cst_159 = arith.constant 3.200000e+01 : f32
    %542 = vector.broadcast %cst_159 : f32 to vector<32x1xf32>
    %543 = arith.divf %541, %542 : vector<32x1xf32>
    %544 = vector.broadcast %543 : vector<32x1xf32> to vector<32x32xf32>
    %545 = arith.subf %537, %544 : vector<32x32xf32>
    %546 = arith.mulf %545, %545 : vector<32x32xf32>
    %cst_160 = arith.constant dense<0.000000e+00> : vector<32xf32>
    %547 = vector.multi_reduction <add>, %546, %cst_160 [1] : vector<32x32xf32> to vector<32xf32>
    %548 = vector.shape_cast %547 : vector<32xf32> to vector<32x1xf32>
    %cst_161 = arith.constant 3.200000e+01 : f32
    %549 = vector.broadcast %cst_161 : f32 to vector<32x1xf32>
    %550 = arith.divf %548, %549 : vector<32x1xf32>
    %551 = vector.broadcast %543 : vector<32x1xf32> to vector<32x32xf32>
    %552 = arith.subf %537, %551 : vector<32x32xf32>
    %cst_162 = arith.constant 9.99999996E-13 : f32
    %553 = vector.broadcast %cst_162 : f32 to vector<32x1xf32>
    %554 = arith.addf %550, %553 : vector<32x1xf32>
    %555 = math.rsqrt %554 : vector<32x1xf32>
    %556 = vector.broadcast %555 : vector<32x1xf32> to vector<32x32xf32>
    %557 = arith.mulf %552, %556 : vector<32x32xf32>
    %558 = vector.broadcast %538 : vector<1x32xf32> to vector<32x32xf32>
    %559 = arith.mulf %557, %558 : vector<32x32xf32>
    %560 = vector.broadcast %539 : vector<1x32xf32> to vector<32x32xf32>
    %561 = arith.addf %559, %560 : vector<32x32xf32>
    %c480 = arith.constant 480 : index
    %c0_163 = arith.constant 0 : index
    %562 = vector.load %arg2[%c480, %c0_163] : memref<560x128xf32, #tpu.memory_space<vmem>>, vector<32x32xf32>
    %c512 = arith.constant 512 : index
    %c0_164 = arith.constant 0 : index
    %563 = vector.load %arg2[%c512, %c0_164] : memref<560x128xf32, #tpu.memory_space<vmem>>, vector<1x32xf32>
    %c520 = arith.constant 520 : index
    %c0_165 = arith.constant 0 : index
    %564 = vector.load %arg2[%c520, %c0_165] : memref<560x128xf32, #tpu.memory_space<vmem>>, vector<32x32xf32>
    %c552 = arith.constant 552 : index
    %c0_166 = arith.constant 0 : index
    %565 = vector.load %arg2[%c552, %c0_166] : memref<560x128xf32, #tpu.memory_space<vmem>>, vector<1x32xf32>
    %cst_167 = arith.constant dense<0.000000e+00> : vector<32x32xf32>
    %566 = tpu.matmul %561, %562, %cst_167 {dimension_numbers = #tpu.dot_dimension_numbers<[1], [0], [0], [1], [0, 0, 1, 1], [], []>} : vector<32x32xf32>, vector<32x32xf32>, vector<32x32xf32> -> vector<32x32xf32>
    %567 = vector.broadcast %563 : vector<1x32xf32> to vector<32x32xf32>
    %568 = arith.addf %566, %567 : vector<32x32xf32>
    %cst_168 = arith.constant 5.000000e-01 : f32
    %569 = vector.broadcast %cst_168 : f32 to vector<32x32xf32>
    %570 = arith.mulf %569, %568 : vector<32x32xf32>
    %cst_169 = arith.constant 4.471500e-02 : f32
    %571 = vector.broadcast %cst_169 : f32 to vector<32x32xf32>
    %572 = arith.mulf %571, %568 : vector<32x32xf32>
    %573 = arith.mulf %572, %568 : vector<32x32xf32>
    %574 = arith.mulf %573, %568 : vector<32x32xf32>
    %575 = arith.addf %568, %574 : vector<32x32xf32>
    %cst_170 = arith.constant 0.797884583 : f32
    %576 = vector.broadcast %cst_170 : f32 to vector<32x32xf32>
    %577 = arith.mulf %576, %575 : vector<32x32xf32>
    %578 = math.tanh %577 : vector<32x32xf32>
    %cst_171 = arith.constant 1.000000e+00 : f32
    %579 = vector.broadcast %cst_171 : f32 to vector<32x32xf32>
    %580 = arith.addf %579, %578 : vector<32x32xf32>
    %581 = arith.mulf %570, %580 : vector<32x32xf32>
    %cst_172 = arith.constant dense<0.000000e+00> : vector<32x32xf32>
    %582 = tpu.matmul %581, %564, %cst_172 {dimension_numbers = #tpu.dot_dimension_numbers<[1], [0], [0], [1], [0, 0, 1, 1], [], []>} : vector<32x32xf32>, vector<32x32xf32>, vector<32x32xf32> -> vector<32x32xf32>
    %583 = vector.broadcast %565 : vector<1x32xf32> to vector<32x32xf32>
    %584 = arith.addf %582, %583 : vector<32x32xf32>
    %585 = arith.addf %584, %537 : vector<32x32xf32>
    %c0_173 = arith.constant 0 : index
    %c0_174 = arith.constant 0 : index
    %586 = vector.load %arg3[%c0_173, %c0_174] : memref<32x32xf32, #tpu.memory_space<vmem>>, vector<32x32xf32>
    tpu.vector_store %arg3[%c0_173, %c0_174], %585 {strides = array<i32>} : memref<32x32xf32, #tpu.memory_space<vmem>>, vector<32x32xf32>,
    return
  }
  func.func @transform_0(%arg0: i32) -> (i32, i32) {
    %c0_i32 = arith.constant 0 : i32
    %c0_i32_0 = arith.constant 0 : i32
    return %arg0, %c0_i32 : i32, i32
  }
  func.func @transform_1(%arg0: i32) -> (i32, i32) {
    %c0_i32 = arith.constant 0 : i32
    %c0_i32_0 = arith.constant 0 : i32
    %c0_i32_1 = arith.constant 0 : i32
    return %c0_i32, %c0_i32_0 : i32, i32
  }
  func.func @transform_2(%arg0: i32) -> (i32, i32) {
    %c0_i32 = arith.constant 0 : i32
    %c0_i32_0 = arith.constant 0 : i32
    return %arg0, %c0_i32 : i32, i32
  }
}

</mosaic_0001>

<bundles_post_ra>
// kernel: tpu_custom_call.1
= control target key start
LH: loop header
LB: loop body
LE: loop exit
PB: predicated region body
PF: predicated region fallthrough
CT: control target
= control target key end

     0   :  { %7 = vsyncpa [#allocation3], 0  ;;  %s4987_s0 = inlined_call_operand.hbm [shape: f32[16,32], index: 0, kind: input, shape index: {}]   ;;  %s4988_s1 = inlined_call_operand.hbm [shape: f32[560,128], index: 1, kind: input, shape index: {}]   ;;  %s4989_s2 = inlined_call_operand.hbm [shape: f32[32,32], index: 2, kind: output, shape index: {}]  }
   0x1   :  { %8 = vsyncpa [#allocation6], 0 }
   0x2   :  { %9 = vsyncpa [#allocation4], 0  ;;  %s14_s11 = sshll.u32 %s4987_s0, 4  ;;  %s3922_s12 = smov [#allocation2]   ;;  %s15_s11 = int_to_ptr.hbm [resolvable:$true] %s14_s11 }
   0x3   :  { %s16_s13 = sshll.u32 %s3922_s12, 4  ;;  %s27_s16 = sshll.u32 %s4988_s1, 4  ;;  %s17_s13 = int_to_ptr.vmem [resolvable:$true] %s16_s13  ;;  %s28_s16 = int_to_ptr.hbm [resolvable:$true] %s27_s16 }
   0x4   :  { %s3923_s17 = smov 128   ;;  %s3924_s18 = smov 8  }
   0x5   :  { %22 = dma.hbm_to_vmem [thread:$0]  %s15_s11, 256, %s17_s13, [#allocation3], %s3923_s17, %s3923_s17, %s3924_s18  }
   0x6   :  { %s3925_s19 = smov [#allocation5]  }
   0x7   :  { %s29_s20 = sshll.u32 %s3925_s19, 4  ;;  %s30_s20 = int_to_ptr.vmem [resolvable:$true] %s29_s20 }
   0x8   :  { %35 = dma.hbm_to_vmem [thread:$0]  %s28_s16, 8960, %s30_s20, [#allocation6], %s3923_s17, %s3923_s17, %s3924_s18  }
   0x9   :  { %3916 = dma.done.wait [#allocation3], 256  }
   0xa   :  { %3917 = vsyncadd [#allocation3], 4294967040 }
   0xb   :  { %3918 = dma.done.wait [#allocation6], 8960  }
   0xc   :  { %3919 = vsyncadd [#allocation6], 4294958336  ;;  %vm50_vm0 = vcmask 261120   ;;  %v44_v0 = vld [vmem:[#allocation2] sm:$0xff]  ;;  %v45_v1 = vld [vmem:[#allocation2 + $0x8] sm:$0xff]  ;;  %v3926_v4 = vmov 32.0  }
   0xd   :  { %v51_v2 = vsel %vm50_vm0, %v44_v0, 0.0  ;;  %v54_v3 = vsel %vm50_vm0, %v45_v1, 0.0  ;;  %3614 = vrcp.f32 %v3926_v4  ;;  %v111_v21 = vld [vmem:[#allocation5 + $0x40] sm:$0xff]  ;;  %v110_v22 = vld [vmem:[#allocation5 + $0x38] sm:$0xff]  ;;  %v109_v23 = vld [vmem:[#allocation5 + $0x30] sm:$0xff]  ;;  %s3927_s0 = smov 112  }
   0xe   :  { %52 = vadd.xlane.f32.xlu0 %v51_v2  ;;  %132 = vmatpush.msra.mxu0 %v111_v21  ;;  %v108_v24 = vld [vmem:[#allocation5 + $0x28] sm:$0xff]  ;;  %v144_v28 = vld [vmem:[#allocation5 + $0x18] sm:$0xff]  ;;  %v3590_v40 = vld [vmem:[#allocation5 + $0x20] ss:$0 sm:$0xff]  ;;  %vm145_vm8 = vcmask 130048   ;;  %vm178_vm9 = vcmask 64512  }
   0xf   :  { %3487 = vmatpush.msra.mxu2 %v111_v21  ;;  %v3591_v44 = vld [vmem:[#allocation5 + $0x21] ss:$0 sm:$0xff]  ;;  %v3592_v54 = vld [vmem:[#allocation5 + $0x48] ss:$0 sm:$0xff]  ;;  %v143_v57 = vld [vmem:[#allocation5 + $0x10] sm:$0xff]  ;;  %s3928_s1 = smov 96  }
  0x10   :  { %133 = vmatpush.msra.mxu0 %v110_v22  ;;  %s3929_s21 = smov 80   ;;  %s3930_s22 = smov 16  }
  0x11   :  { %3488 = vmatpush.msra.mxu2 %v110_v22  ;;  %s3931_s23 = smov 88   ;;  %s3932_s24 = smov 120  }
  0x12   :  { %134 = vmatpush.msra.mxu0 %v109_v23  ;;  %s3933_s25 = smov 72   ;;  %s3934_s26 = smov 104  }
  0x13   :  { %v3615_v5 = vpop.eup %3614  ;;  %3489 = vmatpush.msra.mxu2 %v109_v23  ;;  %s3935_s27 = smov 56   ;;  %s3936_s28 = smov 64  }
  0x14   :  { %v58_v6 = vmul.f32 32.0, %v3615_v5  ;;  %vm62_vm1 = vweird.f32 %v3615_v5  ;;  %135 = vmatpush.msra.mxu0 %v108_v24  ;;  %s3937_s29 = smov 48   ;;  %s3938_s30 = smov 40  }
  0x15   :  { %3490 = vmatpush.msra.mxu2 %v108_v24  ;;  %s3939_s3 = smov 24   ;;  %s3940_s4 = smov [#allocation7]  }
  0x16   :  { %55 = vadd.xlane.f32.xlu0 %v54_v3  ;;  %v59_v7 = vsub.f32 1.0, %v58_v6  ;;  %s3309_s5 = sshll.u32 %s3940_s4, 4  ;;  %s3311_s8 = sshll.u32 %s4989_s2, 4  ;;  %s3310_s5 = int_to_ptr.vmem [resolvable:$true] %s3309_s5  ;;  %s3312_s8 = int_to_ptr.hbm [resolvable:$true] %s3311_s8 }
  0x18   :  { %v60_v8 = vmul.f32 %v3615_v5, %v59_v7 }
  0x1a   :  { %v61_v9 = vadd.f32 %v3615_v5, %v60_v8 }
  0x1c   :  { %v3970_v10 = vsel %vm62_vm1, %v3615_v5, %v61_v9 }
  0x2a   :  { %235 = vrot.lane.b32.xlu0 %v144_v28, %s3927_s0 }
  0x81   :  { %v53_v11 = vpop.xlane.xlu0 %52 }
  0x82   :  { %v64_v12 = vmul.f32 %v3970_v10, %v53_v11 }
  0x84   :  { %v66_v13 = vsub.f32 %v44_v0, %v64_v12 }
  0x86   :  { %v68_v14 = vmul.f32 %v66_v13, %v66_v13 }
  0x88   :  { %v70_v15 = vsel %vm50_vm0, %v68_v14, 0.0 }
  0x89   :  { %71 = vadd.xlane.f32.xlu1 %v70_v15  ;;  %v56_v16 = vpop.xlane.xlu0 %55 }
  0x8a   :  { %v65_v17 = vmul.f32 %v3970_v10, %v56_v16 }
  0x8c   :  { %v67_v18 = vsub.f32 %v45_v1, %v65_v17 }
  0x8e   :  { %v69_v19 = vmul.f32 %v67_v18, %v67_v18 }
  0x90   :  { %v73_v20 = vsel %vm50_vm0, %v69_v19, 0.0 }
  0x91   :  { %74 = vadd.xlane.f32.xlu1 %v73_v20 }
  0x9c   :  { %v236_v62 = vpop.permute.xlu0 %235 }
  0xfc   :  { %v72_v25 = vpop.xlane.xlu1 %71 }
  0xfd   :  { %v76_v26 = vmul.f32 %v72_v25, %v3970_v10 }
  0xff   :  { %v78_v27 = vadd.f32 1e-12, %v76_v26 }
 0x101   :  { %3616 = vrsqrt.f32 %v78_v27  ;;  %vm86_vm3 = vweird.f32 %v78_v27 }
 0x104   :  { %v75_v29 = vpop.xlane.xlu1 %74 }
 0x105   :  { %v77_v30 = vmul.f32 %v75_v29, %v3970_v10 }
 0x107   :  { %v3617_v31 = vpop.eup %3616  ;;  %v79_v32 = vadd.f32 1e-12, %v77_v30 }
 0x108   :  { %v81_v33 = vmul.f32 %v3617_v31, %v78_v27  ;;  %vm87_vm2 = vweird.f32 %v3617_v31 }
 0x109   :  { %3618 = vrsqrt.f32 %v79_v32  ;;  %vm88_vm4 = vmor %vm86_vm3, %vm87_vm2  ;;  %vm96_vm5 = vweird.f32 %v79_v32 }
 0x10a   :  { %v82_v34 = vmul.f32 %v3617_v31, %v81_v33 }
 0x10c   :  { %v83_v35 = vmul.f32 0.5, %v82_v34 }
 0x10e   :  { %v84_v36 = vsub.f32 1.5, %v83_v35 }
 0x10f   :  { %v3619_v37 = vpop.eup %3618 }
 0x110   :  { %v85_v38 = vmul.f32 %v3617_v31, %v84_v36  ;;  %v91_v39 = vmul.f32 %v3619_v37, %v79_v32  ;;  %vm97_vm6 = vweird.f32 %v3619_v37 }
 0x111   :  { %vm98_vm7 = vmor %vm96_vm5, %vm97_vm6 }
 0x112   :  { %v92_v41 = vmul.f32 %v3619_v37, %v91_v39  ;;  %v89_v42 = vsel %vm88_vm4, %v3617_v31, %v85_v38 }
 0x113   :  { %v100_v43 = vmul.f32 %v89_v42, %v66_v13 }
 0x114   :  { %v93_v45 = vmul.f32 0.5, %v92_v41 }
 0x115   :  { %v103_v46 = vmul.f32 %v3590_v40, %v100_v43 }
 0x116   :  { %v94_v47 = vsub.f32 1.5, %v93_v45 }
 0x117   :  { %v106_v48 = vadd.f32 %v3591_v44, %v103_v46 }
 0x118   :  { %v95_v49 = vmul.f32 %v3619_v37, %v94_v47 }
 0x119   :  { %3325 = vmatmul.msk.f32.vlgmr.msra.gmra.mxu0 %vm50_vm0, %v106_v48 }
 0x11a   :  { %v99_v50 = vsel %vm98_vm7, %v3619_v37, %v95_v49 }
 0x11b   :  { %v101_v51 = vmul.f32 %v99_v50, %v67_v18 }
 0x11d   :  { %v104_v52 = vmul.f32 %v3590_v40, %v101_v51 }
 0x11f   :  { %v107_v53 = vadd.f32 %v3591_v44, %v104_v52 }
 0x121   :  { %3326 = vmatmul.msk.f32.vlgmr.msra.gmra.mxu2 %vm50_vm0, %v107_v53 }
 0x196   :  { %v137_v55 = vpop.f32.mrf.mxu0 }
 0x197   :  { %v138_v56 = vadd.f32 %v3592_v54, %v137_v55 }
 0x199   :  { %237 = vrot.lane.b32.xlu2 %v138_v56, %s3927_s0  ;;  %3327 = vmatpush.xpose.msk.msra.mxu1 %vm145_vm8, %v138_v56 }
 0x19c   :  { %3328 = vmatmul.msk.f32.vlgmr.msra.gmra.mxu1 %vm145_vm8, %v143_v57 }
 0x1a1   :  { %233 = vrot.lane.b32.xlu2 %v143_v57, %s3927_s0 }
 0x1a4   :  { %v140_v58 = vpop.f32.mrf.mxu2  ;;  %3329 = vmatmul.msk.f32.gmra.mxu1 %vm145_vm8, %v144_v28 }
 0x1a5   :  { %v3986_v59 = vadd.f32 %v3592_v54, %v140_v58 }
 0x1a7   :  { %412 = vrot.lane.b32.xlu1 %v3986_v59, %s3927_s0  ;;  %3337 = vmatpush.xpose.msk.msrb.mxu1 %vm145_vm8, %v3986_v59 }
 0x1ac   :  { %3338 = vmatmul.msk.f32.vlgmr.msrb.gmra.mxu1 %vm145_vm8, %v143_v57 }
 0x1b4   :  { %3339 = vmatmul.msk.f32.gmra.mxu1 %vm145_vm8, %v144_v28 }
 0x1f3   :  { %v238_v60 = vpop.permute.xlu2 %237 }
 0x1f4   :  { %3332 = vmatpush.xpose.msk.msra.mxu3 %vm145_vm8, %v238_v60 }
 0x1fb   :  { %v234_v61 = vpop.permute.xlu2 %233 }
 0x1fc   :  { %3333 = vmatmul.msk.f32.vlgmr.msra.gmra.mxu3 %vm145_vm8, %v234_v61 }
 0x204   :  { %3334 = vmatmul.msk.f32.gmra.mxu3 %vm145_vm8, %v236_v62 }
 0x219   :  { %v172_v63 = vpop.f32.mrf.mxu1  ;;  %v413_v0 = vpop.permute.xlu1 %412 }
 0x21a   :  { %3342 = vmatpush.xpose.msk.msrb.mxu0 %vm145_vm8, %v413_v0  ;;  %v179_v1 = vsel %vm178_vm9, %v172_v63, -inf }
 0x21b   :  { %180 = vmax.xlane.f32.xlu2 %v179_v1 }
 0x21d   :  { %3343 = vmatmul.msk.f32.vlgmr.msrb.gmra.mxu0 %vm145_vm8, %v234_v61 }
 0x221   :  { %v175_v2 = vpop.f32.mrf.mxu1 }
 0x222   :  { %v182_v3 = vsel %vm178_vm9, %v175_v2, -inf }
 0x223   :  { %183 = vmax.xlane.f32.xlu0 %v182_v3 }
 0x225   :  { %3344 = vmatmul.msk.f32.gmra.mxu0 %vm145_vm8, %v236_v62 }
 0x229   :  { %v352_v33 = vpop.f32.mrf.mxu1 }
 0x22a   :  { %v358_v35 = vsel %vm178_vm9, %v352_v33, -inf }
 0x231   :  { %v355_v39 = vpop.f32.mrf.mxu1 }
 0x232   :  { %v361_v40 = vsel %vm178_vm9, %v355_v39, -inf }
 0x27f   :  { %v262_v4 = vpop.f32.mrf.mxu3 }
 0x280   :  { %v268_v5 = vsel %vm178_vm9, %v262_v4, -inf }
 0x281   :  { %269 = vmax.xlane.f32.xlu1 %v268_v5 }
 0x287   :  { %v265_v6 = vpop.f32.mrf.mxu3 }
 0x288   :  { %v271_v7 = vsel %vm178_vm9, %v265_v6, -inf }
 0x289   :  { %272 = vmax.xlane.f32.xlu2 %v271_v7 }
 0x28e   :  { %v181_v8 = vpop.xlane.xlu2 %180 }
 0x28f   :  { %v185_v9 = vsub.f32 %v172_v63, %v181_v8 }
 0x291   :  { %v187_v11 = vmul.f32 1.442695, %v185_v9 }
 0x293   :  { %3620 = vpow2.f32 %v187_v11 }
 0x296   :  { %v184_v12 = vpop.xlane.xlu0 %183 }
 0x297   :  { %v186_v13 = vsub.f32 %v175_v2, %v184_v12 }
 0x299   :  { %v189_v16 = vmul.f32 1.442695, %v186_v13  ;;  %v3621_v17 = vpop.eup %3620 }
 0x29a   :  { %201 = vrot.lane.b32.xlu1 %v138_v56, %s3928_s1  ;;  %v433_v14 = vpop.f32.mrf.mxu0  ;;  %v191_v20 = vsel %vm178_vm9, %v3621_v17, 0.0 }
 0x29b   :  { %v439_v15 = vsel %vm178_vm9, %v433_v14, -inf  ;;  %3622 = vpow2.f32 %v189_v16 }
 0x29c   :  { %440 = vmax.xlane.f32.xlu2 %v439_v15 }
 0x2a1   :  { %v3623_v21 = vpop.eup %3622 }
 0x2a2   :  { %v4006_v18 = vpop.f32.mrf.mxu0  ;;  %v194_v22 = vsel %vm178_vm9, %v3623_v21, 0.0 }
 0x2a3   :  { %v442_v19 = vsel %vm178_vm9, %v4006_v18, -inf }
 0x2a4   :  { %443 = vmax.xlane.f32.xlu0 %v442_v19  ;;  %192 = vadd.xlane.f32.xlu2 %v191_v20 }
 0x2ac   :  { %195 = vadd.xlane.f32.xlu2 %v194_v22 }
 0x2b8   :  { %290 = vrot.lane.b32.xlu0 %v138_v56, %s3929_s21 }
 0x2f4   :  { %v270_v23 = vpop.xlane.xlu1 %269 }
 0x2f5   :  { %v274_v24 = vsub.f32 %v262_v4, %v270_v23 }
 0x2f7   :  { %v276_v25 = vmul.f32 1.442695, %v274_v24 }
 0x2f9   :  { %3624 = vpow2.f32 %v276_v25 }
 0x2fc   :  { %v273_v26 = vpop.xlane.xlu2 %272 }
 0x2fd   :  { %v275_v27 = vsub.f32 %v265_v6, %v273_v26 }
 0x2ff   :  { %v3625_v28 = vpop.eup %3624  ;;  %v278_v29 = vmul.f32 1.442695, %v275_v27  ;;  %v506_v27 = vld [vmem:[#allocation5 + $0x68] sm:$0xff] }
 0x300   :  { %v280_v30 = vsel %vm178_vm9, %v3625_v28, 0.0  ;;  %533 = vmatpush.msra.mxu1 %v506_v27 }
 0x301   :  { %3626 = vpow2.f32 %v278_v29  ;;  %281 = vadd.xlane.f32.xlu0 %v280_v30  ;;  %v504_v29 = vld [vmem:[#allocation5 + $0x58] sm:$0xff]  ;;  %v503_v30 = vld [vmem:[#allocation5 + $0x50] sm:$0xff] }
 0x307   :  { %v3627_v31 = vpop.eup %3626 }
 0x308   :  { %v283_v32 = vsel %vm178_vm9, %v3627_v31, 0.0 }
 0x309   :  { %284 = vadd.xlane.f32.xlu2 %v283_v32 }
 0x30c   :  { %v202_v34 = vpop.permute.xlu1 %201 }
 0x30d   :  { %225 = vmatpush.msrb.mxu2 %v202_v34 }
 0x30f   :  { %v441_v36 = vpop.xlane.xlu2 %440 }
 0x310   :  { %v445_v37 = vsub.f32 %v433_v14, %v441_v36 }
 0x311   :  { %359 = vmax.xlane.f32.xlu2 %v358_v35 }
 0x312   :  { %v447_v38 = vmul.f32 1.442695, %v445_v37 }
 0x314   :  { %3628 = vpow2.f32 %v447_v38 }
 0x315   :  { %461 = vrot.lane.b32.xlu0 %v3986_v59, %s3929_s21 }
 0x317   :  { %v193_v41 = vpop.xlane.xlu2 %192  ;;  %v444_v47 = vpop.xlane.xlu0 %443 }
 0x318   :  { %3630 = vrcp.f32 %v193_v41  ;;  %v446_v60 = vsub.f32 %v4006_v18, %v444_v47 }
 0x319   :  { %362 = vmax.xlane.f32.xlu2 %v361_v40  ;;  %v46_v40 = vld [vmem:[#allocation5] sm:$0xff] }
 0x31a   :  { %v3629_v42 = vpop.eup %3628  ;;  %v449_v63 = vmul.f32 1.442695, %v446_v60 }
 0x31b   :  { %v451_v43 = vsel %vm178_vm9, %v3629_v42, 0.0 }
 0x31c   :  { %452 = vadd.xlane.f32.xlu1 %v451_v43 }
 0x31e   :  { %v3631_v44 = vpop.eup %3630 }
 0x31f   :  { %v196_v45 = vpop.xlane.xlu2 %195  ;;  %v199_v46 = vmul.f32 %v3631_v44, %v3621_v17 }
 0x320   :  { %3632 = vrcp.f32 %v196_v45  ;;  %v47_v45 = vld [vmem:[#allocation5 + $0x8] sm:$0xff] }
 0x321   :  { %3330 = vmatmul.msk.f32.vlgmr.msrb.gmra.mxu2 %vm178_vm9, %v199_v46 }
 0x326   :  { %v3633_v48 = vpop.eup %3632 }
 0x327   :  { %v200_v49 = vmul.f32 %v3633_v48, %v3623_v21 }
 0x329   :  { %3331 = vmatmul.msk.f32.gmra.mxu2 %vm178_vm9, %v200_v49 }
 0x32a   :  { %v291_v50 = vpop.permute.xlu0 %290 }
 0x32b   :  { %314 = vmatpush.msra.mxu2 %v291_v50 }
 0x374   :  { %v282_v51 = vpop.xlane.xlu0 %281 }
 0x375   :  { %3634 = vrcp.f32 %v282_v51 }
 0x37b   :  { %v3635_v52 = vpop.eup %3634 }
 0x37c   :  { %v288_v53 = vmul.f32 %v3635_v52, %v3625_v28  ;;  %v285_v54 = vpop.xlane.xlu2 %284  ;;  %v505_v28 = vld [vmem:[#allocation5 + $0x60] sm:$0xff] }
 0x37d   :  { %3636 = vrcp.f32 %v285_v54  ;;  %534 = vmatpush.msra.mxu1 %v505_v28 }
 0x37e   :  { %3335 = vmatmul.msk.f32.vlgmr.msra.gmra.mxu2 %vm178_vm9, %v288_v53 }
 0x37f   :  { %535 = vmatpush.msra.mxu1 %v504_v29  ;;  %v4082_v29 = vld [vmem:[#allocation5 + $0x79] ss:$0 sm:$0xff] }
 0x381   :  { %536 = vmatpush.msra.mxu1 %v503_v30 }
 0x383   :  { %v3637_v55 = vpop.eup %3636 }
 0x384   :  { %v360_v56 = vpop.xlane.xlu2 %359  ;;  %v289_v57 = vmul.f32 %v3637_v55, %v3627_v31 }
 0x385   :  { %v364_v58 = vsub.f32 %v352_v33, %v360_v56 }
 0x386   :  { %3336 = vmatmul.msk.f32.gmra.mxu2 %vm178_vm9, %v289_v57 }
 0x387   :  { %v366_v61 = vmul.f32 1.442695, %v364_v58  ;;  %v462_v62 = vpop.permute.xlu0 %461 }
 0x388   :  { %485 = vmatpush.msrb.mxu2 %v462_v62 }
 0x389   :  { %3638 = vpow2.f32 %v366_v61 }
 0x38a   :  { %3640 = vpow2.f32 %v449_v63 }
 0x38c   :  { %v363_v0 = vpop.xlane.xlu2 %362 }
 0x38d   :  { %v365_v1 = vsub.f32 %v355_v39, %v363_v0  ;;  %v3593_v39 = vld [vmem:[#allocation5 + $0x70] ss:$0 sm:$0xff] }
 0x38f   :  { %v3639_v2 = vpop.eup %3638  ;;  %v368_v3 = vmul.f32 1.442695, %v365_v1  ;;  %v453_v4 = vpop.xlane.xlu1 %452 }
 0x390   :  { %3642 = vrcp.f32 %v453_v4  ;;  %v370_v5 = vsel %vm178_vm9, %v3639_v2, 0.0  ;;  %v3641_v6 = vpop.eup %3640 }
 0x391   :  { %3644 = vpow2.f32 %v368_v3  ;;  %371 = vadd.xlane.f32.xlu2 %v370_v5  ;;  %v454_v12 = vsel %vm178_vm9, %v3641_v6, 0.0 }
 0x396   :  { %v3643_v7 = vpop.eup %3642 }
 0x397   :  { %v3645_v8 = vpop.eup %3644  ;;  %v459_v9 = vmul.f32 %v3643_v7, %v3629_v42 }
 0x398   :  { %v373_v11 = vsel %vm178_vm9, %v3645_v8, 0.0 }
 0x399   :  { %374 = vadd.xlane.f32.xlu0 %v373_v11  ;;  %455 = vadd.xlane.f32.xlu2 %v454_v12 }
 0x39a   :  { %3345 = vmatmul.msk.f32.vlgmr.msrb.gmra.mxu2 %vm178_vm9, %v459_v9 }
 0x3a4   :  { %v227_v13 = vpop.f32.mrf.mxu2 }
 0x3ac   :  { %v230_v14 = vpop.f32.mrf.mxu2 }
 0x3b1   :  { %380 = vrot.lane.b32.xlu2 %v3986_v59, %s3928_s1 }
 0x401   :  { %v316_v15 = vpop.f32.mrf.mxu2 }
 0x402   :  { %324 = vrot.lane.b32.xlu1 %v316_v15, %s3930_s22  ;;  %v656_v15 = vld [vmem:[#allocation5 + $0x90] sm:$0xff] }
 0x404   :  { %v372_v16 = vpop.xlane.xlu2 %371 }
 0x405   :  { %3646 = vrcp.f32 %v372_v16  ;;  %v655_v16 = vld [vmem:[#allocation5 + $0x88] sm:$0xff] }
 0x409   :  { %v319_v17 = vpop.f32.mrf.mxu2 }
 0x40a   :  { %326 = vrot.lane.b32.xlu2 %v319_v17, %s3930_s22  ;;  %v654_v17 = vld [vmem:[#allocation5 + $0x80] sm:$0xff] }
 0x40b   :  { %v3647_v20 = vpop.eup %3646 }
 0x40c   :  { %v456_v18 = vpop.xlane.xlu2 %455  ;;  %v375_v19 = vpop.xlane.xlu0 %374  ;;  %v378_v23 = vmul.f32 %v3647_v20, %v3639_v2 }
 0x40d   :  { %3648 = vrcp.f32 %v456_v18 }
 0x40e   :  { %3650 = vrcp.f32 %v375_v19 }
 0x413   :  { %v3649_v21 = vpop.eup %3648 }
 0x414   :  { %v381_v22 = vpop.permute.xlu2 %380  ;;  %v460_v59 = vmul.f32 %v3649_v21, %v3641_v6  ;;  %v3651_v24 = vpop.eup %3650 }
 0x415   :  { %404 = vmatpush.msrb.mxu3 %v381_v22  ;;  %v379_v25 = vmul.f32 %v3651_v24, %v3645_v8 }
 0x416   :  { %3340 = vmatmul.msk.f32.vlgmr.msrb.gmra.mxu3 %vm178_vm9, %v378_v23  ;;  %3346 = vmatmul.msk.f32.gmra.mxu2 %vm178_vm9, %v460_v59 }
 0x41d   :  { %v487_v26 = vpop.f32.mrf.mxu2 }
 0x41e   :  { %495 = vrot.lane.b32.xlu2 %v487_v26, %s3930_s22  ;;  %3341 = vmatmul.msk.f32.gmra.mxu3 %vm178_vm9, %v379_v25  ;;  %v4080_v26 = vld [vmem:[#allocation5 + $0x78] ss:$0 sm:$0xff] }
 0x464   :  { %v327_v33 = vpop.permute.xlu2 %326 }
 0x465   :  { %v331_v34 = vsel %vm145_vm8, %v230_v14, %v327_v33  ;;  %v657_v14 = vld [vmem:[#allocation5 + $0x98] sm:$0xff] }
 0x466   :  { %689 = vmatpush.msra.mxu3 %v657_v14 }
 0x468   :  { %690 = vmatpush.msra.mxu3 %v656_v15 }
 0x46a   :  { %691 = vmatpush.msra.mxu3 %v655_v16 }
 0x46c   :  { %692 = vmatpush.msra.mxu3 %v654_v17 }
 0x474   :  { %v325_v31 = vpop.permute.xlu1 %324 }
 0x475   :  { %v330_v32 = vsel %vm145_vm8, %v227_v13, %v325_v31 }
 0x476   :  { %3347 = vmatmul.msk.f32.vlgmr.msra.gmra.mxu1 %vm50_vm0, %v330_v32 }
 0x478   :  { %v496_v35 = vpop.permute.xlu2 %495 }
 0x47e   :  { %3348 = vmatmul.msk.f32.gmra.mxu1 %vm50_vm0, %v331_v34 }
 0x499   :  { %v406_v36 = vpop.f32.mrf.mxu3  ;;  %v490_v37 = vpop.f32.mrf.mxu2 }
 0x49a   :  { %497 = vrot.lane.b32.xlu0 %v490_v37, %s3930_s22  ;;  %v501_v38 = vsel %vm145_vm8, %v406_v36, %v496_v35 }
 0x49b   :  { %3349 = vmatmul.msk.f32.gmra.mxu1 %vm50_vm0, %v501_v38 }
 0x4a1   :  { %v409_v50 = vpop.f32.mrf.mxu3 }
 0x4f3   :  { %v538_v41 = vpop.f32.mrf.mxu1 }
 0x4f4   :  { %v539_v42 = vadd.f32 %v3593_v39, %v538_v41 }
 0x4f6   :  { %v4044_v43 = vadd.f32 %v539_v42, %v46_v40 }
 0x4f8   :  { %v556_v44 = vsel %vm50_vm0, %v4044_v43, 0.0 }
 0x4f9   :  { %557 = vadd.xlane.f32.xlu2 %v556_v44 }
 0x4fb   :  { %v541_v46 = vpop.f32.mrf.mxu1 }
 0x4fc   :  { %v542_v47 = vadd.f32 %v3593_v39, %v541_v46 }
 0x4fe   :  { %v4048_v48 = vadd.f32 %v542_v47, %v47_v45 }
 0x500   :  { %v559_v49 = vsel %vm50_vm0, %v4048_v48, 0.0 }
 0x501   :  { %560 = vadd.xlane.f32.xlu1 %v559_v49 }
 0x50c   :  { %v498_v51 = vpop.permute.xlu0 %497 }
 0x50d   :  { %v502_v52 = vsel %vm145_vm8, %v409_v50, %v498_v51 }
 0x50e   :  { %3350 = vmatmul.msk.f32.gmra.mxu1 %vm50_vm0, %v502_v52 }
 0x518   :  { %v544_v53 = vpop.f32.mrf.mxu1 }
 0x519   :  { %v545_v54 = vadd.f32 %v3593_v39, %v544_v53 }
 0x51b   :  { %v4054_v55 = vadd.f32 %v545_v54, %v46_v40 }
 0x51d   :  { %v562_v56 = vsel %vm50_vm0, %v4054_v55, 0.0 }
 0x51e   :  { %563 = vadd.xlane.f32.xlu0 %v562_v56 }
 0x56c   :  { %v558_v57 = vpop.xlane.xlu2 %557 }
 0x56d   :  { %v568_v58 = vmul.f32 %v558_v57, %v3970_v10 }
 0x56f   :  { %v572_v60 = vsub.f32 %v4044_v43, %v568_v58 }
 0x571   :  { %v576_v61 = vmul.f32 %v572_v60, %v572_v60 }
 0x573   :  { %v580_v62 = vsel %vm50_vm0, %v576_v61, 0.0 }
 0x574   :  { %581 = vadd.xlane.f32.xlu1 %v580_v62  ;;  %v561_v63 = vpop.xlane.xlu1 %560 }
 0x575   :  { %v569_v1 = vmul.f32 %v561_v63, %v3970_v10 }
 0x577   :  { %v4065_v4 = vsub.f32 %v4048_v48, %v569_v1 }
 0x579   :  { %v577_v9 = vmul.f32 %v4065_v4, %v4065_v4 }
 0x57b   :  { %v583_v12 = vsel %vm50_vm0, %v577_v9, 0.0 }
 0x58b   :  { %v547_v0 = vpop.f32.mrf.mxu1 }
 0x58c   :  { %v548_v2 = vadd.f32 %v3593_v39, %v547_v0 }
 0x58e   :  { %v4062_v3 = vadd.f32 %v548_v2, %v47_v45 }
 0x590   :  { %v565_v5 = vsel %vm50_vm0, %v4062_v3, 0.0 }
 0x591   :  { %566 = vadd.xlane.f32.xlu2 %v565_v5  ;;  %v564_v6 = vpop.xlane.xlu0 %563  ;;  %v662_v5 = vld [vmem:[#allocation5 + $0xc0] sm:$0xff] }
 0x592   :  { %v570_v7 = vmul.f32 %v564_v6, %v3970_v10  ;;  %v661_v6 = vld [vmem:[#allocation5 + $0xb8] sm:$0xff]  ;;  %767 = vmatpush.msra.mxu0 %v662_v5 }
 0x594   :  { %v4071_v8 = vsub.f32 %v4054_v55, %v570_v7  ;;  %768 = vmatpush.msra.mxu0 %v661_v6  ;;  %v659_v7 = vld [vmem:[#allocation5 + $0xa8] sm:$0xff] }
 0x596   :  { %v578_v11 = vmul.f32 %v4071_v8, %v4071_v8 }
 0x598   :  { %v586_v13 = vsel %vm50_vm0, %v578_v11, 0.0 }
 0x599   :  { %584 = vadd.xlane.f32.xlu2 %v583_v12  ;;  %587 = vadd.xlane.f32.xlu1 %v586_v13  ;;  %v3596_v12 = vld [vmem:[#allocation5 + $0xa0] ss:$0 sm:$0xff] }
 0x5e7   :  { %v582_v18 = vpop.xlane.xlu1 %581 }
 0x5e8   :  { %v592_v19 = vmul.f32 %v582_v18, %v3970_v10 }
 0x5ea   :  { %v596_v20 = vadd.f32 1e-12, %v592_v19 }
 0x5ec   :  { %3652 = vrsqrt.f32 %v596_v20  ;;  %vm606_vm11 = vweird.f32 %v596_v20 }
 0x5f2   :  { %v3653_v21 = vpop.eup %3652 }
 0x5f3   :  { %v601_v22 = vmul.f32 %v3653_v21, %v596_v20  ;;  %vm607_vm10 = vweird.f32 %v3653_v21 }
 0x5f4   :  { %vm608_vm12 = vmor %vm606_vm11, %vm607_vm10 }
 0x5f5   :  { %v602_v23 = vmul.f32 %v3653_v21, %v601_v22 }
 0x5f7   :  { %v603_v59 = vmul.f32 0.5, %v602_v23 }
 0x5f9   :  { %v604_v24 = vsub.f32 1.5, %v603_v59 }
 0x5fb   :  { %v605_v25 = vmul.f32 %v3653_v21, %v604_v24 }
 0x5fd   :  { %v609_v27 = vsel %vm608_vm12, %v3653_v21, %v605_v25 }
 0x5fe   :  { %v640_v28 = vmul.f32 %v609_v27, %v572_v60 }
 0x600   :  { %v645_v30 = vmul.f32 %v4080_v26, %v640_v28 }
 0x602   :  { %v650_v31 = vadd.f32 %v4082_v29, %v645_v30 }
 0x604   :  { %3351 = vmatmul.msk.f32.vlgmr.msra.gmra.mxu3 %vm50_vm0, %v650_v31  ;;  %v567_v32 = vpop.xlane.xlu2 %566 }
 0x605   :  { %v571_v33 = vmul.f32 %v567_v32, %v3970_v10 }
 0x607   :  { %v4089_v34 = vsub.f32 %v4062_v3, %v571_v33 }
 0x609   :  { %v579_v35 = vmul.f32 %v4089_v34, %v4089_v34 }
 0x60b   :  { %v589_v36 = vsel %vm50_vm0, %v579_v35, 0.0 }
 0x60c   :  { %590 = vadd.xlane.f32.xlu0 %v589_v36  ;;  %v585_v37 = vpop.xlane.xlu2 %584  ;;  %v588_v38 = vpop.xlane.xlu1 %587 }
 0x60d   :  { %v593_v39 = vmul.f32 %v585_v37, %v3970_v10  ;;  %v594_v40 = vmul.f32 %v588_v38, %v3970_v10 }
 0x60f   :  { %v597_v41 = vadd.f32 1e-12, %v593_v39  ;;  %v598_v42 = vadd.f32 1e-12, %v594_v40 }
 0x611   :  { %3654 = vrsqrt.f32 %v597_v41  ;;  %vm616_vm14 = vweird.f32 %v597_v41  ;;  %vm626_vm2 = vweird.f32 %v598_v42 }
 0x612   :  { %3656 = vrsqrt.f32 %v598_v42 }
 0x617   :  { %v3655_v44 = vpop.eup %3654 }
 0x618   :  { %v3657_v45 = vpop.eup %3656  ;;  %v611_v46 = vmul.f32 %v3655_v44, %v597_v41  ;;  %vm617_vm13 = vweird.f32 %v3655_v44 }
 0x619   :  { %v621_v47 = vmul.f32 %v3657_v45, %v598_v42  ;;  %vm627_vm15 = vweird.f32 %v3657_v45  ;;  %vm618_vm1 = vmor %vm616_vm14, %vm617_vm13 }
 0x61a   :  { %v612_v49 = vmul.f32 %v3655_v44, %v611_v46  ;;  %vm628_vm3 = vmor %vm626_vm2, %vm627_vm15 }
 0x61b   :  { %v622_v50 = vmul.f32 %v3657_v45, %v621_v47 }
 0x61c   :  { %v613_v51 = vmul.f32 0.5, %v612_v49 }
 0x61d   :  { %v623_v52 = vmul.f32 0.5, %v622_v50 }
 0x61e   :  { %v614_v53 = vsub.f32 1.5, %v613_v51 }
 0x61f   :  { %v624_v54 = vsub.f32 1.5, %v623_v52 }
 0x620   :  { %v615_v56 = vmul.f32 %v3655_v44, %v614_v53 }
 0x621   :  { %v625_v57 = vmul.f32 %v3657_v45, %v624_v54 }
 0x622   :  { %v619_v58 = vsel %vm618_vm1, %v3655_v44, %v615_v56 }
 0x623   :  { %v641_v60 = vmul.f32 %v619_v58, %v4065_v4  ;;  %v629_v61 = vsel %vm628_vm3, %v3657_v45, %v625_v57  ;;  %v660_v4 = vld [vmem:[#allocation5 + $0xb0] sm:$0xff]  ;;  %v3597_v58 = vld [vmem:[#allocation5 + $0xc8] ss:$0 sm:$0xff] }
 0x624   :  { %v642_v0 = vmul.f32 %v629_v61, %v4071_v8  ;;  %769 = vmatpush.msra.mxu0 %v660_v4 }
 0x625   :  { %v646_v62 = vmul.f32 %v4080_v26, %v641_v60 }
 0x626   :  { %v647_v1 = vmul.f32 %v4080_v26, %v642_v0  ;;  %770 = vmatpush.msra.mxu0 %v659_v7 }
 0x627   :  { %v651_v63 = vadd.f32 %v4082_v29, %v646_v62 }
 0x628   :  { %v652_v2 = vadd.f32 %v4082_v29, %v647_v1 }
 0x629   :  { %3352 = vmatmul.msk.f32.gmra.mxu3 %vm50_vm0, %v651_v63 }
 0x631   :  { %3353 = vmatmul.msk.f32.gmra.mxu3 %vm50_vm0, %v652_v2 }
 0x67f   :  { %v591_v9 = vpop.xlane.xlu0 %590 }
 0x680   :  { %v595_v11 = vmul.f32 %v591_v9, %v3970_v10 }
 0x682   :  { %v599_v8 = vadd.f32 1e-12, %v595_v11 }
 0x684   :  { %3658 = vrsqrt.f32 %v599_v8  ;;  %vm636_vm5 = vweird.f32 %v599_v8 }
 0x687   :  { %v694_v13 = vpop.f32.mrf.mxu3 }
 0x688   :  { %v695_v14 = vadd.f32 %v3596_v12, %v694_v13 }
 0x68a   :  { %v3659_v15 = vpop.eup %3658  ;;  %v710_v16 = vmul.f32 0.044715, %v695_v14  ;;  %v706_v32 = vmul.f32 0.5, %v695_v14 }
 0x68b   :  { %v631_v17 = vmul.f32 %v3659_v15, %v599_v8  ;;  %vm637_vm4 = vweird.f32 %v3659_v15 }
 0x68c   :  { %v714_v18 = vmul.f32 %v710_v16, %v695_v14  ;;  %vm638_vm6 = vmor %vm636_vm5, %vm637_vm4 }
 0x68d   :  { %v632_v19 = vmul.f32 %v3659_v15, %v631_v17 }
 0x68e   :  { %v718_v20 = vmul.f32 %v714_v18, %v695_v14 }
 0x68f   :  { %v633_v21 = vmul.f32 0.5, %v632_v19 }
 0x690   :  { %v722_v22 = vadd.f32 %v718_v20, %v695_v14 }
 0x691   :  { %v634_v23 = vsub.f32 1.5, %v633_v21 }
 0x692   :  { %v726_v59 = vmul.f32 0.7978846, %v722_v22 }
 0x693   :  { %v635_v24 = vmul.f32 %v3659_v15, %v634_v23 }
 0x694   :  { %3660 = vtanh.f32 %v726_v59 }
 0x695   :  { %v639_v25 = vsel %vm638_vm6, %v3659_v15, %v635_v24  ;;  %vm1345_vm6 = vcmask 195584  }
 0x696   :  { %v643_v27 = vmul.f32 %v639_v25, %v4089_v34 }
 0x698   :  { %v648_v28 = vmul.f32 %v4080_v26, %v643_v27 }
 0x69a   :  { %v3661_v30 = vpop.eup %3660  ;;  %v653_v31 = vadd.f32 %v4082_v29, %v648_v28 }
 0x69b   :  { %v734_v33 = vadd.f32 1.0, %v3661_v30 }
 0x69c   :  { %3354 = vmatmul.msk.f32.gmra.mxu3 %vm50_vm0, %v653_v31 }
 0x69d   :  { %v738_v35 = vmul.f32 %v734_v33, %v706_v32 }
 0x69f   :  { %3355 = vmatmul.msk.f32.vlgmr.msra.gmra.mxu0 %vm50_vm0, %v738_v35 }
 0x6ac   :  { %v697_v36 = vpop.f32.mrf.mxu3 }
 0x6ad   :  { %v698_v37 = vadd.f32 %v3596_v12, %v697_v36 }
 0x6af   :  { %v711_v38 = vmul.f32 0.044715, %v698_v37  ;;  %v707_v50 = vmul.f32 0.5, %v698_v37 }
 0x6b1   :  { %v715_v39 = vmul.f32 %v711_v38, %v698_v37  ;;  %v891_v38 = vld [vmem:[#allocation5 + $0xf0] sm:$0xff] }
 0x6b2   :  { %918 = vmatpush.msra.mxu2 %v891_v38 }
 0x6b3   :  { %v719_v40 = vmul.f32 %v715_v39, %v698_v37  ;;  %v890_v39 = vld [vmem:[#allocation5 + $0xe8] sm:$0xff] }
 0x6b4   :  { %v700_v41 = vpop.f32.mrf.mxu3  ;;  %919 = vmatpush.msra.mxu2 %v890_v39 }
 0x6b5   :  { %v701_v42 = vadd.f32 %v3596_v12, %v700_v41  ;;  %v723_v34 = vadd.f32 %v719_v40, %v698_v37  ;;  %v889_v40 = vld [vmem:[#allocation5 + $0xe0] sm:$0xff]  ;;  %v888_v41 = vld [vmem:[#allocation5 + $0xd8] sm:$0xff] }
 0x6b6   :  { %920 = vmatpush.msra.mxu2 %v889_v40 }
 0x6b7   :  { %v712_v44 = vmul.f32 0.044715, %v701_v42  ;;  %v727_v26 = vmul.f32 0.7978846, %v723_v34  ;;  %v708_v54 = vmul.f32 0.5, %v701_v42 }
 0x6b8   :  { %921 = vmatpush.msra.mxu2 %v888_v41 }
 0x6b9   :  { %3662 = vtanh.f32 %v727_v26  ;;  %v716_v45 = vmul.f32 %v712_v44, %v701_v42 }
 0x6bb   :  { %v720_v29 = vmul.f32 %v716_v45, %v701_v42 }
 0x6bd   :  { %v724_v46 = vadd.f32 %v720_v29, %v701_v42 }
 0x6bf   :  { %v3663_v47 = vpop.eup %3662  ;;  %v728_v49 = vmul.f32 0.7978846, %v724_v46 }
 0x6c0   :  { %v735_v51 = vadd.f32 1.0, %v3663_v47 }
 0x6c1   :  { %3664 = vtanh.f32 %v728_v49 }
 0x6c2   :  { %v739_v52 = vmul.f32 %v735_v51, %v707_v50  ;;  %v4151_v50 = vld [vmem:[#allocation5 + $0xd0] ss:$0 sm:$0xff] }
 0x6c4   :  { %3356 = vmatmul.msk.f32.gmra.mxu0 %vm50_vm0, %v739_v52 }
 0x6c7   :  { %v3665_v53 = vpop.eup %3664 }
 0x6c8   :  { %v736_v56 = vadd.f32 1.0, %v3665_v53  ;;  %v4153_v53 = vld [vmem:[#allocation5 + $0xd1] ss:$0 sm:$0xff] }
 0x6ca   :  { %v740_v57 = vmul.f32 %v736_v56, %v708_v54 }
 0x6cc   :  { %3357 = vmatmul.msk.f32.gmra.mxu0 %vm50_vm0, %v740_v57 }
 0x71c   :  { %v772_v60 = vpop.f32.mrf.mxu0 }
 0x71d   :  { %v773_v61 = vadd.f32 %v3597_v58, %v772_v60 }
 0x71f   :  { %v4113_v62 = vadd.f32 %v773_v61, %v4044_v43  ;;  %v703_v63 = vpop.f32.mrf.mxu3 }
 0x720   :  { %v704_v0 = vadd.f32 %v3596_v12, %v703_v63 }
 0x721   :  { %v790_v1 = vsel %vm50_vm0, %v4113_v62, 0.0 }
 0x722   :  { %v713_v2 = vmul.f32 0.044715, %v704_v0  ;;  %791 = vadd.xlane.f32.xlu2 %v790_v1  ;;  %v709_v11 = vmul.f32 0.5, %v704_v0 }
 0x724   :  { %v717_v5 = vmul.f32 %v713_v2, %v704_v0 }
 0x726   :  { %v721_v6 = vmul.f32 %v717_v5, %v704_v0 }
 0x728   :  { %v725_v4 = vadd.f32 %v721_v6, %v704_v0 }
 0x72a   :  { %v729_v7 = vmul.f32 0.7978846, %v725_v4 }
 0x72c   :  { %3666 = vtanh.f32 %v729_v7 }
 0x732   :  { %v3667_v9 = vpop.eup %3666 }
 0x733   :  { %v737_v8 = vadd.f32 1.0, %v3667_v9 }
 0x735   :  { %v741_v13 = vmul.f32 %v737_v8, %v709_v11 }
 0x737   :  { %3358 = vmatmul.msk.f32.gmra.mxu0 %vm50_vm0, %v741_v13 }
 0x741   :  { %v775_v43 = vpop.f32.mrf.mxu0 }
 0x742   :  { %v776_v14 = vadd.f32 %v3597_v58, %v775_v43 }
 0x744   :  { %v4119_v12 = vadd.f32 %v776_v14, %v4048_v48 }
 0x746   :  { %v793_v15 = vsel %vm50_vm0, %v4119_v12, 0.0 }
 0x747   :  { %794 = vadd.xlane.f32.xlu1 %v793_v15 }
 0x749   :  { %v778_v16 = vpop.f32.mrf.mxu0 }
 0x74a   :  { %v779_v17 = vadd.f32 %v3597_v58, %v778_v16 }
 0x74c   :  { %v4124_v18 = vadd.f32 %v779_v17, %v4054_v55 }
 0x74e   :  { %v796_v19 = vsel %vm50_vm0, %v4124_v18, 0.0 }
 0x74f   :  { %797 = vadd.xlane.f32.xlu0 %v796_v19 }
 0x795   :  { %v792_v20 = vpop.xlane.xlu2 %791 }
 0x796   :  { %v802_v21 = vmul.f32 %v792_v20, %v3970_v10 }
 0x798   :  { %v806_v22 = vsub.f32 %v4113_v62, %v802_v21 }
 0x79a   :  { %v810_v48 = vmul.f32 %v806_v22, %v806_v22 }
 0x79c   :  { %v814_v23 = vsel %vm50_vm0, %v810_v48, 0.0 }
 0x79d   :  { %815 = vadd.xlane.f32.xlu1 %v814_v23 }
 0x7b4   :  { %v781_v59 = vpop.f32.mrf.mxu0 }
 0x7b5   :  { %v782_v24 = vadd.f32 %v3597_v58, %v781_v59 }
 0x7b7   :  { %v4132_v25 = vadd.f32 %v782_v24, %v4062_v3 }
 0x7b9   :  { %v799_v55 = vsel %vm50_vm0, %v4132_v25, 0.0 }
 0x7ba   :  { %v795_v27 = vpop.xlane.xlu1 %794  ;;  %800 = vadd.xlane.f32.xlu2 %v799_v55 }
 0x7bb   :  { %v803_v28 = vmul.f32 %v795_v27, %v3970_v10 }
 0x7bd   :  { %v4138_v30 = vsub.f32 %v4119_v12, %v803_v28 }
 0x7bf   :  { %v811_v31 = vmul.f32 %v4138_v30, %v4138_v30 }
 0x7c1   :  { %v817_v32 = vsel %vm50_vm0, %v811_v31, 0.0 }
 0x7c2   :  { %818 = vadd.xlane.f32.xlu0 %v817_v32  ;;  %v798_v33 = vpop.xlane.xlu0 %797  ;;  %v3600_v32 = vld [vmem:[#allocation5 + $0xf8] ss:$0 sm:$0xff] }
 0x7c3   :  { %v804_v3 = vmul.f32 %v798_v33, %v3970_v10 }
 0x7c5   :  { %v4145_v35 = vsub.f32 %v4124_v18, %v804_v3 }
 0x7c7   :  { %v812_v36 = vmul.f32 %v4145_v35, %v4145_v35 }
 0x7c9   :  { %v820_v37 = vsel %vm50_vm0, %v812_v36, 0.0 }
 0x7ca   :  { %821 = vadd.xlane.f32.xlu2 %v820_v37 }
 0x810   :  { %v816_v42 = vpop.xlane.xlu1 %815 }
 0x811   :  { %v826_v34 = vmul.f32 %v816_v42, %v3970_v10 }
 0x813   :  { %v830_v44 = vadd.f32 1e-12, %v826_v34 }
 0x815   :  { %3668 = vrsqrt.f32 %v830_v44  ;;  %vm840_vm10 = vweird.f32 %v830_v44 }
 0x81b   :  { %v3669_v26 = vpop.eup %3668 }
 0x81c   :  { %v835_v45 = vmul.f32 %v3669_v26, %v830_v44  ;;  %vm841_vm7 = vweird.f32 %v3669_v26 }
 0x81d   :  { %vm842_vm11 = vmor %vm840_vm10, %vm841_vm7 }
 0x81e   :  { %v836_v29 = vmul.f32 %v3669_v26, %v835_v45 }
 0x820   :  { %v837_v46 = vmul.f32 0.5, %v836_v29 }
 0x822   :  { %v838_v47 = vsub.f32 1.5, %v837_v46 }
 0x824   :  { %v839_v49 = vmul.f32 %v3669_v26, %v838_v47 }
 0x826   :  { %v843_v51 = vsel %vm842_vm11, %v3669_v26, %v839_v49 }
 0x827   :  { %v874_v52 = vmul.f32 %v843_v51, %v806_v22 }
 0x829   :  { %v879_v54 = vmul.f32 %v4151_v50, %v874_v52 }
 0x82b   :  { %v884_v56 = vadd.f32 %v4153_v53, %v879_v54 }
 0x82d   :  { %3359 = vmatmul.msk.f32.vlgmr.msra.gmra.mxu2 %vm50_vm0, %v884_v56  ;;  %v801_v57 = vpop.xlane.xlu2 %800 }
 0x82e   :  { %v805_v58 = vmul.f32 %v801_v57, %v3970_v10 }
 0x830   :  { %v4160_v60 = vsub.f32 %v4132_v25, %v805_v58 }
 0x832   :  { %v813_v61 = vmul.f32 %v4160_v60, %v4160_v60 }
 0x834   :  { %v823_v63 = vsel %vm50_vm0, %v813_v61, 0.0 }
 0x835   :  { %824 = vadd.xlane.f32.xlu1 %v823_v63  ;;  %v819_v0 = vpop.xlane.xlu0 %818 }
 0x836   :  { %v827_v1 = vmul.f32 %v819_v0, %v3970_v10 }
 0x838   :  { %v831_v2 = vadd.f32 1e-12, %v827_v1 }
 0x83a   :  { %3670 = vrsqrt.f32 %v831_v2  ;;  %vm850_vm13 = vweird.f32 %v831_v2 }
 0x83d   :  { %v822_v5 = vpop.xlane.xlu2 %821 }
 0x83e   :  { %v828_v6 = vmul.f32 %v822_v5, %v3970_v10 }
 0x840   :  { %v3671_v4 = vpop.eup %3670  ;;  %v832_v7 = vadd.f32 1e-12, %v828_v6 }
 0x841   :  { %v845_v9 = vmul.f32 %v3671_v4, %v831_v2  ;;  %vm851_vm12 = vweird.f32 %v3671_v4 }
 0x842   :  { %3672 = vrsqrt.f32 %v832_v7  ;;  %vm852_vm14 = vmor %vm850_vm13, %vm851_vm12  ;;  %vm860_vm1 = vweird.f32 %v832_v7 }
 0x843   :  { %v846_v11 = vmul.f32 %v3671_v4, %v845_v9 }
 0x845   :  { %v847_v8 = vmul.f32 0.5, %v846_v11 }
 0x847   :  { %v848_v13 = vsub.f32 1.5, %v847_v8 }
 0x848   :  { %v3673_v43 = vpop.eup %3672 }
 0x849   :  { %v849_v14 = vmul.f32 %v3671_v4, %v848_v13  ;;  %v855_v15 = vmul.f32 %v3673_v43, %v832_v7  ;;  %vm861_vm15 = vweird.f32 %v3673_v43 }
 0x84a   :  { %vm862_vm2 = vmor %vm860_vm1, %vm861_vm15 }
 0x84b   :  { %v856_v16 = vmul.f32 %v3673_v43, %v855_v15  ;;  %v853_v17 = vsel %vm852_vm14, %v3671_v4, %v849_v14 }
 0x84c   :  { %v875_v19 = vmul.f32 %v853_v17, %v4138_v30 }
 0x84d   :  { %v857_v20 = vmul.f32 0.5, %v856_v16 }
 0x84e   :  { %v880_v21 = vmul.f32 %v4151_v50, %v875_v19 }
 0x84f   :  { %v858_v22 = vsub.f32 1.5, %v857_v20 }
 0x850   :  { %v885_v48 = vadd.f32 %v4153_v53, %v880_v21 }
 0x851   :  { %v859_v23 = vmul.f32 %v3673_v43, %v858_v22 }
 0x852   :  { %3360 = vmatmul.msk.f32.gmra.mxu2 %vm50_vm0, %v885_v48 }
 0x853   :  { %v863_v59 = vsel %vm862_vm2, %v3673_v43, %v859_v23 }
 0x854   :  { %v876_v24 = vmul.f32 %v863_v59, %v4145_v35 }
 0x856   :  { %v881_v55 = vmul.f32 %v4151_v50, %v876_v24 }
 0x858   :  { %v886_v27 = vadd.f32 %v4153_v53, %v881_v55 }
 0x85a   :  { %3361 = vmatmul.msk.f32.gmra.mxu2 %vm50_vm0, %v886_v27 }
 0x8a8   :  { %v825_v28 = vpop.xlane.xlu1 %824 }
 0x8a9   :  { %v829_v30 = vmul.f32 %v825_v28, %v3970_v10 }
 0x8ab   :  { %v833_v31 = vadd.f32 1e-12, %v829_v30 }
 0x8ad   :  { %3674 = vrsqrt.f32 %v833_v31  ;;  %vm870_vm4 = vweird.f32 %v833_v31 }
 0x8b0   :  { %v923_v33 = vpop.f32.mrf.mxu2 }
 0x8b1   :  { %v4176_v3 = vadd.f32 %v3600_v32, %v923_v33 }
 0x8b3   :  { %v3675_v36 = vpop.eup %3674  ;;  %1033 = vrot.lane.b32.xlu0 %v4176_v3, %s3931_s23  ;;  %937 = vrot.lane.b32.xlu1 %v4176_v3, %s3928_s1 }
 0x8b4   :  { %v865_v35 = vmul.f32 %v3675_v36, %v833_v31  ;;  %1029 = vrot.lane.b32.xlu2 %v4176_v3, %s3932_s24  ;;  %vm871_vm3 = vweird.f32 %v3675_v36 }
 0x8b5   :  { %vm872_vm5 = vmor %vm870_vm4, %vm871_vm3 }
 0x8b6   :  { %v866_v37 = vmul.f32 %v3675_v36, %v865_v35 }
 0x8b8   :  { %v867_v38 = vmul.f32 0.5, %v866_v37 }
 0x8ba   :  { %v868_v39 = vsub.f32 1.5, %v867_v38 }
 0x8bb   :  { %1225 = vrot.lane.b32.xlu1 %v4176_v3, %s3933_s25 }
 0x8bc   :  { %v869_v40 = vmul.f32 %v3675_v36, %v868_v39 }
 0x8be   :  { %v873_v41 = vsel %vm872_vm5, %v3675_v36, %v869_v40 }
 0x8bf   :  { %v877_v42 = vmul.f32 %v873_v41, %v4160_v60 }
 0x8c1   :  { %v882_v34 = vmul.f32 %v4151_v50, %v877_v42 }
 0x8c3   :  { %v887_v44 = vadd.f32 %v4153_v53, %v882_v34 }
 0x8c5   :  { %3362 = vmatmul.msk.f32.gmra.mxu2 %vm50_vm0, %v887_v44 }
 0x8d5   :  { %v926_v26 = vpop.f32.mrf.mxu2 }
 0x8d6   :  { %v927_v45 = vadd.f32 %v3600_v32, %v926_v26 }
 0x8d8   :  { %1131 = vrot.lane.b32.xlu1 %v927_v45, %s3929_s21  ;;  %1035 = vrot.lane.b32.xlu2 %v927_v45, %s3931_s23  ;;  %v4235_v63 = vpack.i.bf16 %v4176_v3, %v927_v45 }
 0x8d9   :  { %939 = vrot.lane.b32.xlu0 %v927_v45, %s3928_s1 }
 0x8dd   :  { %v929_v29 = vpop.f32.mrf.mxu2 }
 0x8de   :  { %v4203_v46 = vadd.f32 %v3600_v32, %v929_v29 }
 0x8e0   :  { %1127 = vrot.lane.b32.xlu1 %v927_v45, %s3927_s0  ;;  %1125 = vrot.lane.b32.xlu2 %v4176_v3, %s3927_s0 }
 0x8e1   :  { %1129 = vrot.lane.b32.xlu0 %v4176_v3, %s3929_s21 }
 0x8e8   :  { %1227 = vrot.lane.b32.xlu2 %v927_v45, %s3933_s25 }
 0x8e9   :  { %1031 = vrot.lane.b32.xlu0 %v927_v45, %s3932_s24 }
 0x8f0   :  { %1223 = vrot.lane.b32.xlu2 %v927_v45, %s3934_s26 }
 0x8f1   :  { %1221 = vrot.lane.b32.xlu0 %v4176_v3, %s3934_s26 }
 0x8f8   :  { %1350 = vrot.lane.b32.xlu2 %v4203_v46, %s3928_s1 }
 0x900   :  { %1542 = vrot.lane.b32.xlu2 %v4203_v46, %s3929_s21 }
 0x90e   :  { %v1030_v47 = vpop.permute.xlu2 %1029 }
 0x925   :  { %v1034_v50 = vpop.permute.xlu0 %1033  ;;  %v938_v52 = vpop.permute.xlu1 %937 }
 0x92d   :  { %v1226_v54 = vpop.permute.xlu1 %1225 }
 0x932   :  { %v1036_v49 = vpop.permute.xlu2 %1035 }
 0x933   :  { %3369 = vmatpush.xpose.msk.msrb.mxu0 %vm178_vm9, %v1036_v49 }
 0x937   :  { %3370 = vmatpush.xpose.msk.msrb.mxu0 %vm178_vm9, %v1034_v50 }
 0x93a   :  { %v1126_v51 = vpop.permute.xlu2 %1125  ;;  %3371 = vmatmul.msk.f32.vlgmr.msrb.gmra.mxu0 %vm178_vm9, %v1030_v47 }
 0x942   :  { %v1228_v53 = vpop.permute.xlu2 %1227 }
 0x943   :  { %3381 = vmatpush.xpose.msk.msra.mxu0 %vm178_vm9, %v1228_v53 }
 0x947   :  { %3382 = vmatpush.xpose.msk.msra.mxu0 %vm178_vm9, %v1226_v54 }
 0x948   :  { %v932_v56 = vpop.f32.mrf.mxu2 }
 0x949   :  { %v4214_v57 = vadd.f32 %v3600_v32, %v932_v56 }
 0x94a   :  { %v1132_v60 = vpop.permute.xlu1 %1131  ;;  %v1224_v5 = vpop.permute.xlu2 %1223 }
 0x94b   :  { %v940_v58 = vpop.permute.xlu0 %939  ;;  %1448 = vrot.lane.b32.xlu1 %v4214_v57, %s3931_s23  ;;  %1444 = vrot.lane.b32.xlu2 %v4214_v57, %s3932_s24 }
 0x94c   :  { %1352 = vrot.lane.b32.xlu0 %v4214_v57, %s3928_s1  ;;  %3363 = vmatpush.xpose.msk.msrb.mxu1 %vm178_vm9, %v940_v58 }
 0x950   :  { %3364 = vmatpush.xpose.msk.msrb.mxu1 %vm178_vm9, %v938_v52 }
 0x952   :  { %v1128_v2 = vpop.permute.xlu1 %1127  ;;  %v1351_v6 = vpop.permute.xlu2 %1350 }
 0x953   :  { %3365 = vmatmul.msk.f32.vlgmr.msrb.gmra.mxu1 %vm178_vm9, %v4176_v3  ;;  %v1130_v61 = vpop.permute.xlu0 %1129  ;;  %1442 = vrot.lane.b32.xlu1 %v4203_v46, %s3932_s24 }
 0x954   :  { %3375 = vmatpush.xpose.msk.msra.mxu1 %vm178_vm9, %v1132_v60  ;;  %1634 = vrot.lane.b32.xlu2 %v4203_v46, %s3934_s26 }
 0x955   :  { %1446 = vrot.lane.b32.xlu0 %v4203_v46, %s3931_s23 }
 0x958   :  { %3376 = vmatpush.xpose.msk.msra.mxu1 %vm178_vm9, %v1130_v61 }
 0x95a   :  { %v1543_v4 = vpop.permute.xlu2 %1542 }
 0x95b   :  { %3366 = vmatmul.msk.f32.gmra.mxu1 %vm178_vm9, %v927_v45  ;;  %v1032_v0 = vpop.permute.xlu0 %1031  ;;  %1640 = vrot.lane.b32.xlu1 %v4214_v57, %s3933_s25 }
 0x95c   :  { %3516 = vrot.lane.b32.xlu2 %v4235_v63, %s3935_s27  ;;  %3372 = vmatmul.msk.f32.gmra.mxu0 %vm178_vm9, %v1032_v0 }
 0x95d   :  { %1544 = vrot.lane.b32.xlu0 %v4214_v57, %s3929_s21 }
 0x963   :  { %3377 = vmatmul.msk.f32.vlgmr.msra.gmra.mxu1 %vm178_vm9, %v1126_v51  ;;  %v1222_v1 = vpop.permute.xlu0 %1221  ;;  %1538 = vrot.lane.b32.xlu1 %v4203_v46, %s3927_s0 }
 0x964   :  { %3383 = vmatmul.msk.f32.vlgmr.msra.gmra.mxu0 %vm178_vm9, %v1222_v1 }
 0x965   :  { %1638 = vrot.lane.b32.xlu0 %v4203_v46, %s3933_s25 }
 0x96b   :  { %3378 = vmatmul.msk.f32.gmra.mxu1 %vm178_vm9, %v1128_v2  ;;  %1636 = vrot.lane.b32.xlu1 %v4214_v57, %s3934_s26 }
 0x96c   :  { %3384 = vmatmul.msk.f32.gmra.mxu0 %vm178_vm9, %v1224_v5 }
 0x96d   :  { %1540 = vrot.lane.b32.xlu0 %v4214_v57, %s3927_s0 }
 0x973   :  { %3511 = vrot.lane.b32.xlu1 %v4235_v63, %s3936_s28 }
 0x975   :  { %3521 = vrot.lane.b32.xlu0 %v4235_v63, %s3937_s29 }
 0x9a5   :  { %v1445_v7 = vpop.permute.xlu2 %1444 }
 0x9ae   :  { %v1635_v9 = vpop.permute.xlu2 %1634 }
 0x9b6   :  { %v3517_v11 = vpop.permute.xlu2 %3516 }
 0x9b7   :  { %v3518_v8 = vunpack.i.l.bf16 %v3517_v11  ;;  %v4261_v13 = vpop.f32.mrf.mxu0  ;;  %v3519_v14 = vunpack.i.h.bf16 %v3517_v11 }
 0x9b8   :  { %v1068_v43 = vsel %vm145_vm8, %v4261_v13, -inf }
 0x9b9   :  { %1116 = vmatpush.msrb.mxu2 %v3518_v8  ;;  %1069 = vmax.xlane.f32.xlu0 %v1068_v43 }
 0x9bb   :  { %1117 = vmatpush.msrb.mxu2 %v3519_v14 }
 0x9bd   :  { %v1449_v15 = vpop.permute.xlu1 %1448 }
 0x9be   :  { %v1353_v16 = vpop.permute.xlu0 %1352  ;;  %3393 = vmatpush.xpose.msk.msrb.mxu0 %vm178_vm9, %v1449_v15 }
 0x9bf   :  { %3387 = vmatpush.xpose.msk.msrb.mxu1 %vm178_vm9, %v1353_v16 }
 0x9c3   :  { %3388 = vmatpush.xpose.msk.msrb.mxu1 %vm178_vm9, %v1351_v6 }
 0x9c5   :  { %v1443_v17 = vpop.permute.xlu1 %1442 }
 0x9c6   :  { %3389 = vmatmul.msk.f32.vlgmr.msrb.gmra.mxu1 %vm178_vm9, %v4203_v46 }
 0x9c7   :  { %v1447_v19 = vpop.permute.xlu0 %1446 }
 0x9c8   :  { %3394 = vmatpush.xpose.msk.msrb.mxu0 %vm178_vm9, %v1447_v19 }
 0x9cb   :  { %3395 = vmatmul.msk.f32.vlgmr.msrb.gmra.mxu0 %vm178_vm9, %v1443_v17 }
 0x9cd   :  { %v1641_v20 = vpop.permute.xlu1 %1640 }
 0x9ce   :  { %3390 = vmatmul.msk.f32.gmra.mxu1 %vm178_vm9, %v4214_v57  ;;  %3405 = vmatpush.xpose.msk.msra.mxu0 %vm178_vm9, %v1641_v20 }
 0x9cf   :  { %v1545_v21 = vpop.permute.xlu0 %1544 }
 0x9d0   :  { %3399 = vmatpush.xpose.msk.msra.mxu1 %vm178_vm9, %v1545_v21  ;;  %v4276_v22 = vpop.f32.mrf.mxu1 }
 0x9d1   :  { %v972_v48 = vsel %vm145_vm8, %v4276_v22, -inf }
 0x9d2   :  { %973 = vmax.xlane.f32.xlu2 %v972_v48 }
 0x9d3   :  { %3396 = vmatmul.msk.f32.gmra.mxu0 %vm178_vm9, %v1445_v7 }
 0x9d4   :  { %3400 = vmatpush.xpose.msk.msra.mxu1 %vm178_vm9, %v1543_v4 }
 0x9d5   :  { %v1539_v23 = vpop.permute.xlu1 %1538 }
 0x9d7   :  { %v1639_v59 = vpop.permute.xlu0 %1638  ;;  %3401 = vmatmul.msk.f32.vlgmr.msra.gmra.mxu1 %vm178_vm9, %v1539_v23 }
 0x9d8   :  { %3406 = vmatpush.xpose.msk.msra.mxu0 %vm178_vm9, %v1639_v59  ;;  %v4284_v24 = vpop.f32.mrf.mxu1 }
 0x9d9   :  { %v975_v55 = vsel %vm145_vm8, %v4284_v24, -inf  ;;  %v4288_v27 = vpop.f32.mrf.mxu0 }
 0x9da   :  { %976 = vmax.xlane.f32.xlu1 %v975_v55  ;;  %v1071_v28 = vsel %vm145_vm8, %v4288_v27, -inf }
 0x9db   :  { %3407 = vmatmul.msk.f32.vlgmr.msra.gmra.mxu0 %vm178_vm9, %v1635_v9  ;;  %1072 = vmax.xlane.f32.xlu2 %v1071_v28 }
 0x9dd   :  { %v1637_v30 = vpop.permute.xlu1 %1636 }
 0x9df   :  { %v1541_v31 = vpop.permute.xlu0 %1540 }
 0x9e0   :  { %3402 = vmatmul.msk.f32.gmra.mxu1 %vm178_vm9, %v1541_v31  ;;  %v4294_v32 = vpop.f32.mrf.mxu1 }
 0x9e1   :  { %v1164_v33 = vsel %vm145_vm8, %v4294_v32, -inf  ;;  %v1254_v3 = vpop.f32.mrf.mxu0 }
 0x9e2   :  { %1165 = vmax.xlane.f32.xlu0 %v1164_v33  ;;  %v1260_v36 = vsel %vm145_vm8, %v1254_v3, -inf }
 0x9e3   :  { %3408 = vmatmul.msk.f32.gmra.mxu0 %vm178_vm9, %v1637_v30  ;;  %1261 = vmax.xlane.f32.xlu2 %v1260_v36 }
 0x9e5   :  { %v3512_v35 = vpop.permute.xlu1 %3511 }
 0x9e6   :  { %v3513_v37 = vunpack.i.l.bf16 %v3512_v35  ;;  %v3514_v39 = vunpack.i.h.bf16 %v3512_v35 }
 0x9e7   :  { %v3522_v38 = vpop.permute.xlu0 %3521 }
 0x9e8   :  { %v1161_v40 = vpop.f32.mrf.mxu1  ;;  %1020 = vmatpush.msrb.mxu3 %v3513_v37  ;;  %v3523_v41 = vunpack.i.l.bf16 %v3522_v38  ;;  %v3524_v44 = vunpack.i.h.bf16 %v3522_v38 }
 0x9e9   :  { %v1167_v42 = vsel %vm145_vm8, %v1161_v40, -inf  ;;  %v4301_v34 = vpop.f32.mrf.mxu0 }
 0x9ea   :  { %1168 = vmax.xlane.f32.xlu1 %v1167_v42  ;;  %1021 = vmatpush.msrb.mxu3 %v3514_v39  ;;  %v1263_v26 = vsel %vm145_vm8, %v4301_v34, -inf }
 0x9eb   :  { %1264 = vmax.xlane.f32.xlu0 %v1263_v26 }
 0x9ec   :  { %1212 = vmatpush.msra.mxu3 %v3523_v41  ;;  %v4372_v41 = vpack.i.bf16 %v4203_v46, %v4214_v57 }
 0x9ee   :  { %1213 = vmatpush.msra.mxu3 %v3524_v44 }
 0xa2c   :  { %v1070_v50 = vpop.xlane.xlu0 %1069 }
 0xa2d   :  { %v1074_v52 = vsub.f32 %v4261_v13, %v1070_v50 }
 0xa2f   :  { %v1076_v56 = vmul.f32 1.442695, %v1074_v52 }
 0xa31   :  { %3676 = vpow2.f32 %v1076_v56 }
 0xa37   :  { %v4332_v8 = vpop.eup %3676 }
 0xa38   :  { %v1080_v15 = vsel %vm145_vm8, %v4332_v8, 0.0 }
 0xa43   :  { %v4305_v45 = vpop.f32.mrf.mxu1 }
 0xa44   :  { %v1385_v29 = vsel %vm145_vm8, %v4305_v45, -inf }
 0xa45   :  { %v974_v47 = vpop.xlane.xlu2 %973  ;;  %1386 = vmax.xlane.f32.xlu2 %v1385_v29 }
 0xa46   :  { %v978_v5 = vsub.f32 %v4276_v22, %v974_v47 }
 0xa48   :  { %v4309_v49 = vpop.f32.mrf.mxu0  ;;  %v980_v13 = vmul.f32 1.442695, %v978_v5 }
 0xa49   :  { %v1481_v51 = vsel %vm145_vm8, %v4309_v49, -inf }
 0xa4a   :  { %1482 = vmax.xlane.f32.xlu1 %v1481_v51 }
 0xa4b   :  { %v4314_v53 = vpop.f32.mrf.mxu1 }
 0xa4c   :  { %v1388_v54 = vsel %vm145_vm8, %v4314_v53, -inf }
 0xa4d   :  { %1389 = vmax.xlane.f32.xlu0 %v1388_v54  ;;  %v977_v1 = vpop.xlane.xlu1 %976 }
 0xa4e   :  { %v1073_v58 = vpop.xlane.xlu2 %1072  ;;  %v979_v6 = vsub.f32 %v4284_v24, %v977_v1 }
 0xa4f   :  { %v1075_v19 = vsub.f32 %v4288_v27, %v1073_v58 }
 0xa50   :  { %v4318_v60 = vpop.f32.mrf.mxu0  ;;  %v982_v14 = vmul.f32 1.442695, %v979_v6 }
 0xa51   :  { %v1484_v61 = vsel %vm145_vm8, %v4318_v60, -inf  ;;  %v1078_v59 = vmul.f32 1.442695, %v1075_v19 }
 0xa52   :  { %1485 = vmax.xlane.f32.xlu2 %v1484_v61 }
 0xa54   :  { %v4322_v0 = vpop.f32.mrf.mxu1 }
 0xa55   :  { %v1577_v2 = vsel %vm145_vm8, %v4322_v0, -inf  ;;  %v1166_v28 = vpop.xlane.xlu0 %1165 }
 0xa56   :  { %1578 = vmax.xlane.f32.xlu1 %v1577_v2  ;;  %v1262_v4 = vpop.xlane.xlu2 %1261  ;;  %v1170_v31 = vsub.f32 %v4294_v32, %v1166_v28 }
 0xa57   :  { %v1266_v9 = vsub.f32 %v1254_v3, %v1262_v4 }
 0xa58   :  { %v4328_v7 = vpop.f32.mrf.mxu0  ;;  %v1172_v36 = vmul.f32 1.442695, %v1170_v31 }
 0xa59   :  { %v1673_v11 = vsel %vm145_vm8, %v4328_v7, -inf  ;;  %v1268_v43 = vmul.f32 1.442695, %v1266_v9 }
 0xa5a   :  { %1674 = vmax.xlane.f32.xlu0 %v1673_v11 }
 0xa5b   :  { %3678 = vpow2.f32 %v1268_v43 }
 0xa5c   :  { %3680 = vpow2.f32 %v980_v13 }
 0xa5d   :  { %v4336_v16 = vpop.f32.mrf.mxu1  ;;  %v1169_v17 = vpop.xlane.xlu1 %1168  ;;  %3682 = vpow2.f32 %v982_v14 }
 0xa5e   :  { %1081 = vadd.xlane.f32.xlu1 %v1080_v15  ;;  %v1171_v20 = vsub.f32 %v1161_v40, %v1169_v17  ;;  %v1580_v48 = vsel %vm145_vm8, %v4336_v16, -inf  ;;  %3684 = vpow2.f32 %v1078_v59  ;;  %v1265_v42 = vpop.xlane.xlu0 %1264 }
 0xa5f   :  { %v1267_v44 = vsub.f32 %v4301_v34, %v1265_v42 }
 0xa60   :  { %v4339_v21 = vpop.f32.mrf.mxu0  ;;  %v1174_v24 = vmul.f32 1.442695, %v1171_v20 }
 0xa61   :  { %v1676_v22 = vsel %vm145_vm8, %v4339_v21, -inf  ;;  %v4345_v23 = vpop.eup %3678  ;;  %v1270_v26 = vmul.f32 1.442695, %v1267_v44 }
 0xa62   :  { %1677 = vmax.xlane.f32.xlu2 %v1676_v22  ;;  %1581 = vmax.xlane.f32.xlu0 %v1580_v48  ;;  %v4347_v55 = vpop.eup %3680  ;;  %v1272_v27 = vsel %vm145_vm8, %v4345_v23, 0.0  ;;  %3686 = vpow2.f32 %v1174_v24 }
 0xa63   :  { %v4351_v30 = vpop.eup %3682  ;;  %v984_v33 = vsel %vm145_vm8, %v4347_v55, 0.0  ;;  %3688 = vpow2.f32 %v1172_v36 }
 0xa64   :  { %v987_v3 = vsel %vm145_vm8, %v4351_v30, 0.0  ;;  %v4358_v35 = vpop.eup %3684  ;;  %3690 = vpow2.f32 %v1270_v26 }
 0xa65   :  { %v1083_v32 = vsel %vm145_vm8, %v4358_v35, 0.0 }
 0xa66   :  { %1273 = vadd.xlane.f32.xlu1 %v1272_v27 }
 0xa68   :  { %v4360_v37 = vpop.eup %3686 }
 0xa69   :  { %v1179_v38 = vsel %vm145_vm8, %v4360_v37, 0.0  ;;  %v4366_v39 = vpop.eup %3688 }
 0xa6a   :  { %985 = vadd.xlane.f32.xlu2 %v984_v33  ;;  %988 = vadd.xlane.f32.xlu0 %v987_v3  ;;  %v1176_v40 = vsel %vm145_vm8, %v4366_v39, 0.0  ;;  %v4379_v29 = vpop.eup %3690 }
 0xa6b   :  { %v1275_v47 = vsel %vm145_vm8, %v4379_v29, 0.0 }
 0xa72   :  { %1180 = vadd.xlane.f32.xlu2 %v1179_v38  ;;  %1084 = vadd.xlane.f32.xlu0 %v1083_v32 }
 0xa7a   :  { %1177 = vadd.xlane.f32.xlu0 %v1176_v40 }
 0xa8a   :  { %3536 = vrot.lane.b32.xlu2 %v4372_v41, %s3935_s27 }
 0xa8e   :  { %3526 = vrot.lane.b32.xlu0 %v4235_v63, %s3938_s30 }
 0xab8   :  { %1276 = vadd.xlane.f32.xlu0 %v1275_v47  ;;  %v1387_v46 = vpop.xlane.xlu2 %1386 }
 0xab9   :  { %v1391_v57 = vsub.f32 %v4305_v45, %v1387_v46 }
 0xabb   :  { %v1393_v50 = vmul.f32 1.442695, %v1391_v57 }
 0xabd   :  { %v1483_v51 = vpop.xlane.xlu1 %1482  ;;  %3692 = vpow2.f32 %v1393_v50 }
 0xabe   :  { %v1487_v52 = vsub.f32 %v4309_v49, %v1483_v51 }
 0xac0   :  { %v1489_v63 = vmul.f32 1.442695, %v1487_v52  ;;  %v1390_v54 = vpop.xlane.xlu0 %1389 }
 0xac1   :  { %v1392_v34 = vsub.f32 %v4314_v53, %v1390_v54 }
 0xac2   :  { %3694 = vpow2.f32 %v1489_v63 }
 0xac3   :  { %v4386_v56 = vpop.eup %3692  ;;  %v1395_v58 = vmul.f32 1.442695, %v1392_v34 }
 0xac4   :  { %v1397_v1 = vsel %vm145_vm8, %v4386_v56, 0.0 }
 0xac5   :  { %v1486_v61 = vpop.xlane.xlu2 %1485  ;;  %1398 = vadd.xlane.f32.xlu1 %v1397_v1  ;;  %3696 = vpow2.f32 %v1395_v58 }
 0xac6   :  { %v1488_v2 = vsub.f32 %v4318_v60, %v1486_v61 }
 0xac8   :  { %v4391_v45 = vpop.eup %3694  ;;  %v1491_v5 = vmul.f32 1.442695, %v1488_v2 }
 0xac9   :  { %v4393_v49 = vpop.xlane.xlu1 %1578  ;;  %v1493_v6 = vsel %vm145_vm8, %v4391_v45, 0.0 }
 0xaca   :  { %3698 = vpow2.f32 %v1491_v5  ;;  %1494 = vadd.xlane.f32.xlu2 %v1493_v6  ;;  %v1583_v57 = vsub.f32 %v4322_v0, %v4393_v49 }
 0xacb   :  { %v4397_v4 = vpop.eup %3696 }
 0xacc   :  { %v1400_v14 = vsel %vm145_vm8, %v4397_v4, 0.0 }
 0xacd   :  { %v1675_v53 = vpop.xlane.xlu0 %1674 }
 0xace   :  { %v1679_v9 = vsub.f32 %v4328_v7, %v1675_v53 }
 0xad0   :  { %v4400_v11 = vpop.eup %3698  ;;  %v1681_v60 = vmul.f32 1.442695, %v1679_v9 }
 0xad1   :  { %v1082_v13 = vpop.xlane.xlu1 %1081  ;;  %v1496_v43 = vsel %vm145_vm8, %v4400_v11, 0.0 }
 0xad2   :  { %3700 = vpow2.f32 %v1681_v60  ;;  %1497 = vadd.xlane.f32.xlu0 %v1496_v43  ;;  %1401 = vadd.xlane.f32.xlu2 %v1400_v14 }
 0xad3   :  { %3702 = vrcp.f32 %v1082_v13 }
 0xad5   :  { %v1678_v15 = vpop.xlane.xlu2 %1677  ;;  %v1582_v17 = vpop.xlane.xlu0 %1581 }
 0xad6   :  { %v1584_v19 = vsub.f32 %v4336_v16, %v1582_v17  ;;  %v1680_v48 = vsub.f32 %v4339_v21, %v1678_v15 }
 0xad8   :  { %v4407_v20 = vpop.eup %3700  ;;  %v1587_v7 = vmul.f32 1.442695, %v1584_v19  ;;  %v1683_v28 = vmul.f32 1.442695, %v1680_v48 }
 0xad9   :  { %v3703_v22 = vpop.eup %3702  ;;  %v1685_v59 = vsel %vm145_vm8, %v4407_v20, 0.0 }
 0xada   :  { %v1088_v24 = vmul.f32 %v3703_v22, %v4332_v8  ;;  %1686 = vadd.xlane.f32.xlu0 %v1685_v59  ;;  %3704 = vpow2.f32 %v1587_v7 }
 0xadc   :  { %3373 = vmatmul.msk.f32.vlgmr.msrb.gmra.mxu2 %vm145_vm8, %v1088_v24 }
 0xadd   :  { %v986_v27 = vpop.xlane.xlu2 %985  ;;  %v989_v31 = vpop.xlane.xlu0 %988 }
 0xade   :  { %3706 = vrcp.f32 %v986_v27  ;;  %3531 = vrot.lane.b32.xlu1 %v4372_v41, %s3936_s28 }
 0xadf   :  { %3708 = vpow2.f32 %v1683_v28 }
 0xae0   :  { %v4416_v16 = vpop.eup %3704  ;;  %3710 = vrcp.f32 %v989_v31 }
 0xae1   :  { %v1592_v21 = vsel %vm145_vm8, %v4416_v16, 0.0 }
 0xae2   :  { %1593 = vadd.xlane.f32.xlu0 %v1592_v21 }
 0xae4   :  { %v3707_v33 = vpop.eup %3706 }
 0xae5   :  { %v992_v8 = vmul.f32 %v3707_v33, %v4347_v55  ;;  %v1085_v3 = vpop.xlane.xlu0 %1084  ;;  %v4421_v36 = vpop.eup %3708 }
 0xae6   :  { %3712 = vrcp.f32 %v1085_v3  ;;  %v3711_v38 = vpop.eup %3710  ;;  %v1688_v32 = vsel %vm145_vm8, %v4421_v36, 0.0  ;;  %v1181_v26 = vpop.xlane.xlu2 %1180 }
 0xae7   :  { %3367 = vmatmul.msk.f32.vlgmr.msrb.gmra.mxu3 %vm145_vm8, %v992_v8  ;;  %v993_v44 = vmul.f32 %v3711_v38, %v4351_v30  ;;  %v1274_v30 = vpop.xlane.xlu1 %1273 }
 0xaea   :  { %3541 = vrot.lane.b32.xlu2 %v4372_v41, %s3937_s29  ;;  %1689 = vadd.xlane.f32.xlu0 %v1688_v32 }
 0xaec   :  { %v3713_v40 = vpop.eup %3712 }
 0xaed   :  { %v1178_v42 = vpop.xlane.xlu0 %1177  ;;  %v1089_v55 = vmul.f32 %v3713_v40, %v4358_v35  ;;  %v1585_v35 = vmul.f32 1.442695, %v1583_v57 }
 0xaee   :  { %3714 = vrcp.f32 %v1178_v42  ;;  %v3537_v54 = vpop.permute.xlu2 %3536 }
 0xaef   :  { %3368 = vmatmul.msk.f32.gmra.mxu3 %vm145_vm8, %v993_v44  ;;  %3374 = vmatmul.msk.f32.gmra.mxu2 %vm145_vm8, %v1089_v55  ;;  %3716 = vrcp.f32 %v1181_v26  ;;  %v3538_v58 = vunpack.i.l.bf16 %v3537_v54  ;;  %v3539_v61 = vunpack.i.h.bf16 %v3537_v54 }
 0xaf0   :  { %3718 = vrcp.f32 %v1274_v30  ;;  %v1763_v30 = vld [vmem:[#allocation5 + $0x118] sm:$0xff] }
 0xaf1   :  { %3720 = vpow2.f32 %v1585_v35  ;;  %1790 = vmatpush.msrb.mxu1 %v1763_v30  ;;  %v1762_v35 = vld [vmem:[#allocation5 + $0x110] sm:$0xff] }
 0xaf2   :  { %3546 = vrot.lane.b32.xlu2 %v4372_v41, %s3938_s30 }
 0xaf3   :  { %1791 = vmatpush.msrb.mxu1 %v1762_v35  ;;  %v1913_v35 = vld [vmem:[#allocation5 + $0x140] sm:$0xff] }
 0xaf4   :  { %v3715_v47 = vpop.eup %3714 }
 0xaf5   :  { %v1184_v46 = vmul.f32 %v3715_v47, %v4366_v39  ;;  %v3717_v50 = vpop.eup %3716 }
 0xaf6   :  { %v1185_v51 = vmul.f32 %v3717_v50, %v4360_v37  ;;  %v3719_v41 = vpop.eup %3718 }
 0xaf7   :  { %3379 = vmatmul.msk.f32.vlgmr.msra.gmra.mxu3 %vm145_vm8, %v1184_v46  ;;  %v1280_v39 = vmul.f32 %v3719_v41, %v4345_v23  ;;  %v4441_v0 = vpop.eup %3720 }
 0xaf8   :  { %v1589_v37 = vsel %vm145_vm8, %v4441_v0, 0.0 }
 0xaff   :  { %3380 = vmatmul.msk.f32.gmra.mxu3 %vm145_vm8, %v1185_v51  ;;  %v1761_v51 = vld [vmem:[#allocation5 + $0x108] sm:$0xff] }
 0xb00   :  { %v3527_v52 = vpop.permute.xlu0 %3526  ;;  %1792 = vmatpush.msrb.mxu1 %v1761_v51  ;;  %v1912_v51 = vld [vmem:[#allocation5 + $0x138] sm:$0xff] }
 0xb01   :  { %v3528_v63 = vunpack.i.l.bf16 %v3527_v52  ;;  %v3529_v34 = vunpack.i.h.bf16 %v3527_v52  ;;  %v1760_v52 = vld [vmem:[#allocation5 + $0x100] sm:$0xff] }
 0xb02   :  { %1793 = vmatpush.msrb.mxu1 %v1760_v52 }
 0xb03   :  { %1308 = vmatpush.msra.mxu2 %v3528_v63 }
 0xb05   :  { %1309 = vmatpush.msra.mxu2 %v3529_v34 }
 0xb06   :  { %3385 = vmatmul.msk.f32.vlgmr.msra.gmra.mxu2 %vm145_vm8, %v1280_v39 }
 0xb07   :  { %1529 = vmatpush.msrb.mxu2 %v3538_v58 }
 0xb08   :  { %1590 = vadd.xlane.f32.xlu1 %v1589_v37 }
 0xb09   :  { %1530 = vmatpush.msrb.mxu2 %v3539_v61 }
 0xb2b   :  { %v1277_v1 = vpop.xlane.xlu0 %1276 }
 0xb2c   :  { %3722 = vrcp.f32 %v1277_v1 }
 0xb32   :  { %v3723_v2 = vpop.eup %3722 }
 0xb33   :  { %v1281_v5 = vmul.f32 %v3723_v2, %v4379_v29 }
 0xb35   :  { %3386 = vmatmul.msk.f32.gmra.mxu2 %vm145_vm8, %v1281_v5 }
 0xb38   :  { %v1399_v60 = vpop.xlane.xlu1 %1398 }
 0xb3d   :  { %v1495_v23 = vpop.xlane.xlu2 %1494 }
 0xb3e   :  { %3724 = vrcp.f32 %v1495_v23 }
 0xb44   :  { %v3725_v49 = vpop.eup %3724 }
 0xb45   :  { %v1501_v6 = vmul.f32 %v3725_v49, %v4391_v45  ;;  %v1402_v53 = vpop.xlane.xlu2 %1401  ;;  %v1498_v9 = vpop.xlane.xlu0 %1497 }
 0xb46   :  { %3726 = vrcp.f32 %v1498_v9 }
 0xb47   :  { %3397 = vmatmul.msk.f32.vlgmr.msrb.gmra.mxu2 %vm145_vm8, %v1501_v6  ;;  %3728 = vrcp.f32 %v1399_v60 }
 0xb4c   :  { %v3727_v13 = vpop.eup %3726 }
 0xb4d   :  { %v3542_v43 = vpop.permute.xlu2 %3541  ;;  %v1687_v14 = vpop.xlane.xlu0 %1686  ;;  %v1502_v15 = vmul.f32 %v3727_v13, %v4400_v11  ;;  %v3601_v13 = vld [vmem:[#allocation5 + $0x120] ss:$0 sm:$0xff] }
 0xb4e   :  { %3730 = vrcp.f32 %v1687_v14  ;;  %v3729_v17 = vpop.eup %3728  ;;  %v3543_v59 = vunpack.i.l.bf16 %v3542_v43  ;;  %v3544_v11 = vunpack.i.h.bf16 %v3542_v43 }
 0xb4f   :  { %3398 = vmatmul.msk.f32.gmra.mxu2 %vm145_vm8, %v1502_v15  ;;  %3732 = vrcp.f32 %v1402_v53  ;;  %v1405_v7 = vmul.f32 %v3729_v17, %v4386_v56 }
 0xb50   :  { %v3532_v29 = vpop.permute.xlu1 %3531 }
 0xb51   :  { %v3533_v19 = vunpack.i.l.bf16 %v3532_v29  ;;  %v3534_v45 = vunpack.i.h.bf16 %v3532_v29 }
 0xb53   :  { %1433 = vmatpush.msrb.mxu3 %v3533_v19 }
 0xb54   :  { %v3731_v48 = vpop.eup %3730 }
 0xb55   :  { %v3547_v22 = vpop.permute.xlu2 %3546  ;;  %v1594_v28 = vpop.xlane.xlu0 %1593  ;;  %1434 = vmatpush.msrb.mxu3 %v3534_v45  ;;  %v1693_v31 = vmul.f32 %v3731_v48, %v4407_v20 }
 0xb56   :  { %v3548_v24 = vunpack.i.l.bf16 %v3547_v22  ;;  %3391 = vmatmul.msk.f32.vlgmr.msrb.gmra.mxu3 %vm145_vm8, %v1405_v7  ;;  %v3549_v27 = vunpack.i.h.bf16 %v3547_v22  ;;  %v3733_v21 = vpop.eup %3732 }
 0xb57   :  { %1625 = vmatpush.msra.mxu3 %v3543_v59  ;;  %v1406_v56 = vmul.f32 %v3733_v21, %v4397_v4 }
 0xb58   :  { %1721 = vmatpush.msra.mxu2 %v3548_v24 }
 0xb59   :  { %1626 = vmatpush.msra.mxu3 %v3544_v11 }
 0xb5a   :  { %1722 = vmatpush.msra.mxu2 %v3549_v27 }
 0xb5b   :  { %3409 = vmatmul.msk.f32.vlgmr.msra.gmra.mxu2 %vm145_vm8, %v1693_v31 }
 0xb5d   :  { %v1690_v33 = vpop.xlane.xlu0 %1689 }
 0xb5e   :  { %3734 = vrcp.f32 %v1690_v33  ;;  %3392 = vmatmul.msk.f32.gmra.mxu3 %vm145_vm8, %v1406_v56 }
 0xb5f   :  { %v1119_v8 = vpop.f32.mrf.mxu2 }
 0xb60   :  { %1319 = vrot.lane.b32.xlu2 %v1119_v8, %s3924_s18 }
 0xb64   :  { %v3735_v3 = vpop.eup %3734 }
 0xb65   :  { %v1694_v38 = vmul.f32 %v3735_v3, %v4421_v36 }
 0xb67   :  { %3410 = vmatmul.msk.f32.gmra.mxu2 %vm145_vm8, %v1694_v38 }
 0xb6a   :  { %v1023_v20 = vpop.f32.mrf.mxu3 }
 0xb72   :  { %v1026_v32 = vpop.f32.mrf.mxu3  ;;  %v1122_v40 = vpop.f32.mrf.mxu2 }
 0xb73   :  { %1321 = vrot.lane.b32.xlu1 %v1122_v40, %s3924_s18 }
 0xb7a   :  { %v1215_v42 = vpop.f32.mrf.mxu3 }
 0xb7b   :  { %1327 = vrot.lane.b32.xlu0 %v1215_v42, %s3930_s22  ;;  %v1591_v4 = vpop.xlane.xlu1 %1590 }
 0xb7c   :  { %3736 = vrcp.f32 %v1591_v4 }
 0xb7d   :  { %3738 = vrcp.f32 %v1594_v28 }
 0xb82   :  { %v3737_v44 = vpop.eup %3736  ;;  %v1218_v46 = vpop.f32.mrf.mxu3 }
 0xb83   :  { %v1597_v55 = vmul.f32 %v3737_v44, %v4441_v0  ;;  %v3739_v26 = vpop.eup %3738 }
 0xb84   :  { %v1598_v47 = vmul.f32 %v3739_v26, %v4416_v16 }
 0xb85   :  { %3403 = vmatmul.msk.f32.vlgmr.msra.gmra.mxu3 %vm145_vm8, %v1597_v55 }
 0xb89   :  { %v1311_v36 = vpop.f32.mrf.mxu2 }
 0xb8a   :  { %1335 = vrot.lane.b32.xlu2 %v1311_v36, %s3939_s3 }
 0xb8d   :  { %3404 = vmatmul.msk.f32.gmra.mxu3 %vm145_vm8, %v1598_v47 }
 0xb92   :  { %1329 = vrot.lane.b32.xlu2 %v1218_v46, %s3930_s22 }
 0xbb8   :  { %v1314_v57 = vpop.f32.mrf.mxu2 }
 0xbb9   :  { %1337 = vrot.lane.b32.xlu0 %v1314_v57, %s3939_s3 }
 0xbba   :  { %v1320_v63 = vpop.permute.xlu2 %1319 }
 0xbbb   :  { %v1341_v34 = vsel %vm178_vm9, %v1023_v20, %v1320_v63 }
 0xbca   :  { %v1532_v50 = vpop.f32.mrf.mxu2 }
 0xbcb   :  { %1732 = vrot.lane.b32.xlu2 %v1532_v50, %s3924_s18  ;;  %v1914_v50 = vld [vmem:[#allocation5 + $0x148] sm:$0xff] }
 0xbcc   :  { %1946 = vmatpush.msrb.mxu3 %v1914_v50 }
 0xbce   :  { %1947 = vmatpush.msrb.mxu3 %v1913_v35 }
 0xbd0   :  { %1948 = vmatpush.msrb.mxu3 %v1912_v51 }
 0xbd2   :  { %v1535_v16 = vpop.f32.mrf.mxu2 }
 0xbd9   :  { %v1436_v37 = vpop.f32.mrf.mxu3 }
 0xbde   :  { %v1724_v41 = vpop.f32.mrf.mxu2 }
 0xbdf   :  { %1748 = vrot.lane.b32.xlu2 %v1724_v41, %s3939_s3 }
 0xbe1   :  { %v1439_v1 = vpop.f32.mrf.mxu3 }
 0xbe4   :  { %v1336_v0 = vpop.permute.xlu2 %1335 }
 0xbe5   :  { %v1322_v23 = vpop.permute.xlu1 %1321 }
 0xbe6   :  { %v1342_v6 = vsel %vm178_vm9, %v1026_v32, %v1322_v23 }
 0xbea   :  { %v1727_v54 = vpop.f32.mrf.mxu2 }
 0xbeb   :  { %1750 = vrot.lane.b32.xlu2 %v1727_v54, %s3939_s3 }
 0xbec   :  { %v1330_v49 = vpop.permute.xlu2 %1329 }
 0xbed   :  { %v1328_v39 = vpop.permute.xlu0 %1327  ;;  %v1344_v53 = vsel %vm145_vm8, %v1342_v6, %v1330_v49  ;;  %v4525_v49 = vld [vmem:[#allocation5 + $0x129] ss:$0 sm:$0xff] }
 0xbee   :  { %v1343_v58 = vsel %vm145_vm8, %v1341_v34, %v1328_v39 }
 0xbef   :  { %v1346_v61 = vsel %vm1345_vm6, %v1343_v58, %v1336_v0 }
 0xbf0   :  { %3411 = vmatmul.msk.f32.vlgmr.msrb.gmra.mxu1 %vm50_vm0, %v1346_v61 }
 0xc08   :  { %v1628_v2 = vpop.f32.mrf.mxu3 }
 0xc09   :  { %1740 = vrot.lane.b32.xlu0 %v1628_v2, %s3930_s22 }
 0xc10   :  { %v1631_v5 = vpop.f32.mrf.mxu3 }
 0xc11   :  { %1734 = vrot.lane.b32.xlu0 %v1535_v16, %s3924_s18  ;;  %1742 = vrot.lane.b32.xlu1 %v1631_v5, %s3930_s22 }
 0xc25   :  { %v1733_v17 = vpop.permute.xlu2 %1732 }
 0xc26   :  { %v1754_v19 = vsel %vm178_vm9, %v1436_v37, %v1733_v17  ;;  %v4519_v37 = vld [vmem:[#allocation5 + $0x128] ss:$0 sm:$0xff] }
 0xc2b   :  { %v1338_v9 = vpop.permute.xlu0 %1337 }
 0xc2c   :  { %v1347_v60 = vsel %vm1345_vm6, %v1344_v53, %v1338_v9 }
 0xc2d   :  { %3412 = vmatmul.msk.f32.gmra.mxu1 %vm50_vm0, %v1347_v60 }
 0xc39   :  { %v1749_v7 = vpop.permute.xlu2 %1748 }
 0xc45   :  { %v1751_v28 = vpop.permute.xlu2 %1750 }
 0xc6d   :  { %v1795_v43 = vpop.f32.mrf.mxu1 }
 0xc6e   :  { %v1796_v14 = vadd.f32 %v3601_v13, %v1795_v43 }
 0xc70   :  { %v4485_v15 = vadd.f32 %v1796_v14, %v4113_v62 }
 0xc72   :  { %v1813_v29 = vsel %vm50_vm0, %v4485_v15, 0.0 }
 0xc73   :  { %1814 = vadd.xlane.f32.xlu0 %v1813_v29 }
 0xc7b   :  { %v1741_v45 = vpop.permute.xlu0 %1740 }
 0xc7c   :  { %v1756_v22 = vsel %vm145_vm8, %v1754_v19, %v1741_v45 }
 0xc7d   :  { %v1758_v48 = vsel %vm1345_vm6, %v1756_v22, %v1749_v7 }
 0xc7e   :  { %3413 = vmatmul.msk.f32.gmra.mxu1 %vm50_vm0, %v1758_v48 }
 0xc83   :  { %v1735_v59 = vpop.permute.xlu0 %1734  ;;  %v1743_v24 = vpop.permute.xlu1 %1742 }
 0xc84   :  { %v1755_v62 = vsel %vm178_vm9, %v1439_v1, %v1735_v59 }
 0xc85   :  { %v1757_v11 = vsel %vm145_vm8, %v1755_v62, %v1743_v24 }
 0xc86   :  { %v1759_v27 = vsel %vm1345_vm6, %v1757_v11, %v1751_v28 }
 0xc87   :  { %3414 = vmatmul.msk.f32.gmra.mxu1 %vm50_vm0, %v1759_v27 }
 0xcaa   :  { %v1798_v31 = vpop.f32.mrf.mxu1 }
 0xcab   :  { %v1799_v21 = vadd.f32 %v3601_v13, %v1798_v31 }
 0xcad   :  { %v4498_v56 = vadd.f32 %v1799_v21, %v4119_v12 }
 0xcaf   :  { %v1816_v33 = vsel %vm50_vm0, %v4498_v56, 0.0 }
 0xcb0   :  { %1817 = vadd.xlane.f32.xlu1 %v1816_v33  ;;  %v1919_v33 = vld [vmem:[#allocation5 + $0x170] sm:$0xff] }
 0xcb1   :  { %2024 = vmatpush.msrb.mxu0 %v1919_v33 }
 0xce6   :  { %v1815_v8 = vpop.xlane.xlu0 %1814 }
 0xce7   :  { %v1825_v3 = vmul.f32 %v1815_v8, %v3970_v10  ;;  %v1918_v8 = vld [vmem:[#allocation5 + $0x168] sm:$0xff] }
 0xce8   :  { %2025 = vmatpush.msrb.mxu0 %v1918_v8 }
 0xce9   :  { %v1829_v38 = vsub.f32 %v4485_v15, %v1825_v3 }
 0xceb   :  { %v1833_v20 = vmul.f32 %v1829_v38, %v1829_v38 }
 0xced   :  { %v1837_v32 = vsel %vm50_vm0, %v1833_v20, 0.0 }
 0xcee   :  { %1838 = vadd.xlane.f32.xlu1 %v1837_v32  ;;  %v1917_v32 = vld [vmem:[#allocation5 + $0x160] sm:$0xff] }
 0xcef   :  { %2026 = vmatpush.msrb.mxu0 %v1917_v32 }
 0xcfb   :  { %v1801_v40 = vpop.f32.mrf.mxu1 }
 0xcfc   :  { %v1802_v42 = vadd.f32 %v3601_v13, %v1801_v40  ;;  %v1916_v40 = vld [vmem:[#allocation5 + $0x158] sm:$0xff] }
 0xcfd   :  { %2027 = vmatpush.msrb.mxu0 %v1916_v40 }
 0xcfe   :  { %v4506_v4 = vadd.f32 %v1802_v42, %v4124_v18 }
 0xd00   :  { %v1819_v12 = vsel %vm50_vm0, %v4506_v4, 0.0 }
 0xd01   :  { %1820 = vadd.xlane.f32.xlu2 %v1819_v12 }
 0xd04   :  { %v1804_v44 = vpop.f32.mrf.mxu1 }
 0xd05   :  { %v1805_v55 = vadd.f32 %v3601_v13, %v1804_v44 }
 0xd07   :  { %v4511_v26 = vadd.f32 %v1805_v55, %v4132_v25  ;;  %v1911_v25 = vld [vmem:[#allocation5 + $0x130] sm:$0xff] }
 0xd08   :  { %1949 = vmatpush.msrb.mxu3 %v1911_v25 }
 0xd09   :  { %v1822_v36 = vsel %vm50_vm0, %v4511_v26, 0.0 }
 0xd0a   :  { %1823 = vadd.xlane.f32.xlu0 %v1822_v36 }
 0xd23   :  { %v1818_v47 = vpop.xlane.xlu1 %1817 }
 0xd24   :  { %v1826_v46 = vmul.f32 %v1818_v47, %v3970_v10 }
 0xd26   :  { %v1830_v57 = vsub.f32 %v4498_v56, %v1826_v46  ;;  %v4546_v46 = vld [vmem:[#allocation5 + $0x150] ss:$0 sm:$0xff] }
 0xd28   :  { %v1834_v18 = vmul.f32 %v1830_v57, %v1830_v57 }
 0xd2a   :  { %v1840_v30 = vsel %vm50_vm0, %v1834_v18, 0.0 }
 0xd2b   :  { %1841 = vadd.xlane.f32.xlu2 %v1840_v30 }
 0xd61   :  { %v1839_v52 = vpop.xlane.xlu1 %1838 }
 0xd62   :  { %v1849_v16 = vmul.f32 %v1839_v52, %v3970_v10 }
 0xd64   :  { %v1853_v41 = vadd.f32 1e-12, %v1849_v16 }
 0xd66   :  { %3740 = vrsqrt.f32 %v1853_v41  ;;  %vm1863_vm10 = vweird.f32 %v1853_v41 }
 0xd6c   :  { %v3741_v63 = vpop.eup %3740 }
 0xd6d   :  { %v1858_v54 = vmul.f32 %v3741_v63, %v1853_v41  ;;  %vm1864_vm7 = vweird.f32 %v3741_v63 }
 0xd6e   :  { %vm1865_vm11 = vmor %vm1863_vm10, %vm1864_vm7 }
 0xd6f   :  { %v1859_v34 = vmul.f32 %v3741_v63, %v1858_v54 }
 0xd71   :  { %v1860_v39 = vmul.f32 0.5, %v1859_v34 }
 0xd73   :  { %v1861_v0 = vsub.f32 1.5, %v1860_v39 }
 0xd74   :  { %v1821_v61 = vpop.xlane.xlu2 %1820 }
 0xd75   :  { %v1862_v58 = vmul.f32 %v3741_v63, %v1861_v0  ;;  %v1827_v1 = vmul.f32 %v1821_v61, %v3970_v10 }
 0xd77   :  { %v1866_v2 = vsel %vm1865_vm11, %v3741_v63, %v1862_v58  ;;  %v4523_v23 = vsub.f32 %v4506_v4, %v1827_v1 }
 0xd78   :  { %v1897_v5 = vmul.f32 %v1866_v2, %v1829_v38 }
 0xd79   :  { %v1835_v53 = vmul.f32 %v4523_v23, %v4523_v23 }
 0xd7a   :  { %v1902_v6 = vmul.f32 %v4519_v37, %v1897_v5 }
 0xd7b   :  { %v1843_v9 = vsel %vm50_vm0, %v1835_v53, 0.0 }
 0xd7c   :  { %v1907_v60 = vadd.f32 %v4525_v49, %v1902_v6  ;;  %1844 = vadd.xlane.f32.xlu0 %v1843_v9 }
 0xd7d   :  { %v1824_v13 = vpop.xlane.xlu0 %1823 }
 0xd7e   :  { %3415 = vmatmul.msk.f32.vlgmr.msrb.gmra.mxu3 %vm50_vm0, %v1907_v60  ;;  %v1828_v43 = vmul.f32 %v1824_v13, %v3970_v10 }
 0xd80   :  { %v4535_v14 = vsub.f32 %v4511_v26, %v1828_v43 }
 0xd82   :  { %v1836_v29 = vmul.f32 %v4535_v14, %v4535_v14 }
 0xd84   :  { %v1846_v17 = vsel %vm50_vm0, %v1836_v29, 0.0 }
 0xd85   :  { %1847 = vadd.xlane.f32.xlu1 %v1846_v17 }
 0xd9e   :  { %v1842_v19 = vpop.xlane.xlu2 %1841 }
 0xd9f   :  { %v1850_v45 = vmul.f32 %v1842_v19, %v3970_v10 }
 0xda1   :  { %v1854_v7 = vadd.f32 1e-12, %v1850_v45 }
 0xda3   :  { %3742 = vrsqrt.f32 %v1854_v7  ;;  %vm1873_vm13 = vweird.f32 %v1854_v7 }
 0xda9   :  { %v3743_v22 = vpop.eup %3742 }
 0xdaa   :  { %v1868_v48 = vmul.f32 %v3743_v22, %v1854_v7  ;;  %vm1874_vm12 = vweird.f32 %v3743_v22 }
 0xdab   :  { %vm1875_vm14 = vmor %vm1873_vm13, %vm1874_vm12 }
 0xdac   :  { %v1869_v59 = vmul.f32 %v3743_v22, %v1868_v48 }
 0xdae   :  { %v1870_v24 = vmul.f32 0.5, %v1869_v59 }
 0xdb0   :  { %v1871_v62 = vsub.f32 1.5, %v1870_v24 }
 0xdb2   :  { %v1872_v28 = vmul.f32 %v3743_v22, %v1871_v62 }
 0xdb4   :  { %v1876_v11 = vsel %vm1875_vm14, %v3743_v22, %v1872_v28 }
 0xdb5   :  { %v1898_v27 = vmul.f32 %v1876_v11, %v1830_v57 }
 0xdb7   :  { %v1903_v31 = vmul.f32 %v4519_v37, %v1898_v27  ;;  %v3605_v27 = vld [vmem:[#allocation5 + $0x178] ss:$0 sm:$0xff] }
 0xdb9   :  { %v1908_v21 = vadd.f32 %v4525_v49, %v1903_v31 }
 0xdbb   :  { %3416 = vmatmul.msk.f32.gmra.mxu3 %vm50_vm0, %v1908_v21 }
 0xdef   :  { %v1845_v3 = vpop.xlane.xlu0 %1844 }
 0xdf0   :  { %v1851_v38 = vmul.f32 %v1845_v3, %v3970_v10 }
 0xdf2   :  { %v1855_v20 = vadd.f32 1e-12, %v1851_v38 }
 0xdf4   :  { %3744 = vrsqrt.f32 %v1855_v20  ;;  %vm1883_vm1 = vweird.f32 %v1855_v20 }
 0xdf8   :  { %v1848_v42 = vpop.xlane.xlu1 %1847 }
 0xdf9   :  { %v1852_v12 = vmul.f32 %v1848_v42, %v3970_v10 }
 0xdfa   :  { %v3745_v44 = vpop.eup %3744 }
 0xdfb   :  { %v1878_v55 = vmul.f32 %v3745_v44, %v1855_v20  ;;  %v1856_v36 = vadd.f32 1e-12, %v1852_v12  ;;  %vm1884_vm15 = vweird.f32 %v3745_v44 }
 0xdfc   :  { %vm1885_vm2 = vmor %vm1883_vm1, %vm1884_vm15 }
 0xdfd   :  { %v1879_v47 = vmul.f32 %v3745_v44, %v1878_v55  ;;  %3746 = vrsqrt.f32 %v1856_v36  ;;  %vm1893_vm4 = vweird.f32 %v1856_v36 }
 0xdff   :  { %v1880_v57 = vmul.f32 0.5, %v1879_v47 }
 0xe01   :  { %v1951_v18 = vpop.f32.mrf.mxu3  ;;  %v1881_v30 = vsub.f32 1.5, %v1880_v57 }
 0xe02   :  { %v1952_v50 = vadd.f32 %v4546_v46, %v1951_v18 }
 0xe03   :  { %v3747_v35 = vpop.eup %3746  ;;  %v1882_v51 = vmul.f32 %v3745_v44, %v1881_v30 }
 0xe04   :  { %v1967_v25 = vmul.f32 0.044715, %v1952_v50  ;;  %v1888_v52 = vmul.f32 %v3747_v35, %v1856_v36  ;;  %vm1894_vm3 = vweird.f32 %v3747_v35  ;;  %v1963_v13 = vmul.f32 0.5, %v1952_v50 }
 0xe05   :  { %v1886_v16 = vsel %vm1885_vm2, %v3745_v44, %v1882_v51  ;;  %vm1895_vm5 = vmor %vm1893_vm4, %vm1894_vm3 }
 0xe06   :  { %v1971_v41 = vmul.f32 %v1967_v25, %v1952_v50  ;;  %v1889_v63 = vmul.f32 %v3747_v35, %v1888_v52  ;;  %v1899_v54 = vmul.f32 %v1886_v16, %v4523_v23 }
 0xe08   :  { %v1975_v34 = vmul.f32 %v1971_v41, %v1952_v50  ;;  %v1890_v39 = vmul.f32 0.5, %v1889_v63  ;;  %v1904_v0 = vmul.f32 %v4519_v37, %v1899_v54 }
 0xe0a   :  { %v1979_v58 = vadd.f32 %v1975_v34, %v1952_v50  ;;  %v1891_v61 = vsub.f32 1.5, %v1890_v39  ;;  %v1909_v1 = vadd.f32 %v4525_v49, %v1904_v0 }
 0xe0c   :  { %v1983_v2 = vmul.f32 0.7978846, %v1979_v58  ;;  %v1892_v5 = vmul.f32 %v3747_v35, %v1891_v61  ;;  %3417 = vmatmul.msk.f32.gmra.mxu3 %vm50_vm0, %v1909_v1 }
 0xe0e   :  { %3748 = vtanh.f32 %v1983_v2  ;;  %v1896_v6 = vsel %vm1895_vm5, %v3747_v35, %v1892_v5 }
 0xe0f   :  { %v1900_v53 = vmul.f32 %v1896_v6, %v4535_v14 }
 0xe11   :  { %v1905_v23 = vmul.f32 %v4519_v37, %v1900_v53 }
 0xe13   :  { %v1910_v60 = vadd.f32 %v4525_v49, %v1905_v23 }
 0xe14   :  { %v3749_v9 = vpop.eup %3748 }
 0xe15   :  { %v1991_v43 = vadd.f32 1.0, %v3749_v9  ;;  %3418 = vmatmul.msk.f32.gmra.mxu3 %vm50_vm0, %v1910_v60 }
 0xe17   :  { %v1995_v29 = vmul.f32 %v1991_v43, %v1963_v13  ;;  %v2148_v43 = vld [vmem:[#allocation5 + $0x1a0] sm:$0xff] }
 0xe18   :  { %2175 = vmatpush.msrb.mxu2 %v2148_v43 }
 0xe19   :  { %3419 = vmatmul.msk.f32.vlgmr.msrb.gmra.mxu0 %vm50_vm0, %v1995_v29  ;;  %v2147_v29 = vld [vmem:[#allocation5 + $0x198] sm:$0xff] }
 0xe1a   :  { %2176 = vmatpush.msrb.mxu2 %v2147_v29 }
 0xe3e   :  { %v1954_v17 = vpop.f32.mrf.mxu3 }
 0xe3f   :  { %v1955_v19 = vadd.f32 %v4546_v46, %v1954_v17  ;;  %v2146_v17 = vld [vmem:[#allocation5 + $0x190] sm:$0xff] }
 0xe40   :  { %2177 = vmatpush.msrb.mxu2 %v2146_v17 }
 0xe41   :  { %v1968_v45 = vmul.f32 0.044715, %v1955_v19  ;;  %v1964_v59 = vmul.f32 0.5, %v1955_v19 }
 0xe43   :  { %v1972_v7 = vmul.f32 %v1968_v45, %v1955_v19 }
 0xe45   :  { %v1976_v22 = vmul.f32 %v1972_v7, %v1955_v19 }
 0xe47   :  { %v1980_v48 = vadd.f32 %v1976_v22, %v1955_v19 }
 0xe49   :  { %v1984_v14 = vmul.f32 0.7978846, %v1980_v48 }
 0xe4b   :  { %3750 = vtanh.f32 %v1984_v14 }
 0xe51   :  { %v3751_v37 = vpop.eup %3750 }
 0xe52   :  { %v1992_v24 = vadd.f32 1.0, %v3751_v37 }
 0xe54   :  { %v1996_v49 = vmul.f32 %v1992_v24, %v1964_v59 }
 0xe56   :  { %3420 = vmatmul.msk.f32.gmra.mxu0 %vm50_vm0, %v1996_v49 }
 0xe8f   :  { %v1957_v62 = vpop.f32.mrf.mxu3 }
 0xe90   :  { %v1958_v28 = vadd.f32 %v4546_v46, %v1957_v62  ;;  %v4591_v62 = vld [vmem:[#allocation5 + $0x180] ss:$0 sm:$0xff] }
 0xe92   :  { %v1969_v11 = vmul.f32 0.044715, %v1958_v28  ;;  %v1965_v57 = vmul.f32 0.5, %v1958_v28 }
 0xe94   :  { %v1973_v31 = vmul.f32 %v1969_v11, %v1958_v28 }
 0xe96   :  { %v2029_v21 = vpop.f32.mrf.mxu0  ;;  %v1977_v8 = vmul.f32 %v1973_v31, %v1958_v28 }
 0xe97   :  { %v2030_v33 = vadd.f32 %v3605_v27, %v2029_v21  ;;  %v4595_v21 = vld [vmem:[#allocation5 + $0x181] ss:$0 sm:$0xff] }
 0xe98   :  { %v1960_v38 = vpop.f32.mrf.mxu3  ;;  %v1981_v20 = vadd.f32 %v1977_v8, %v1958_v28 }
 0xe99   :  { %v4562_v3 = vadd.f32 %v2030_v33, %v4485_v15  ;;  %v1961_v32 = vadd.f32 %v4546_v46, %v1960_v38 }
 0xe9a   :  { %v1985_v42 = vmul.f32 0.7978846, %v1981_v20 }
 0xe9b   :  { %v2047_v40 = vsel %vm50_vm0, %v4562_v3, 0.0  ;;  %v1970_v12 = vmul.f32 0.044715, %v1961_v32  ;;  %v1966_v46 = vmul.f32 0.5, %v1961_v32 }
 0xe9c   :  { %2048 = vadd.xlane.f32.xlu2 %v2047_v40  ;;  %3752 = vtanh.f32 %v1985_v42 }
 0xe9d   :  { %v1974_v44 = vmul.f32 %v1970_v12, %v1961_v32 }
 0xe9f   :  { %v1978_v55 = vmul.f32 %v1974_v44, %v1961_v32 }
 0xea1   :  { %v1982_v36 = vadd.f32 %v1978_v55, %v1961_v32 }
 0xea2   :  { %v3753_v47 = vpop.eup %3752 }
 0xea3   :  { %v1993_v18 = vadd.f32 1.0, %v3753_v47  ;;  %v1986_v30 = vmul.f32 0.7978846, %v1982_v36 }
 0xea5   :  { %v1997_v15 = vmul.f32 %v1993_v18, %v1965_v57  ;;  %3754 = vtanh.f32 %v1986_v30 }
 0xea7   :  { %3421 = vmatmul.msk.f32.gmra.mxu0 %vm50_vm0, %v1997_v15 }
 0xeab   :  { %v3755_v50 = vpop.eup %3754 }
 0xeac   :  { %v1994_v35 = vadd.f32 1.0, %v3755_v50 }
 0xeae   :  { %v1998_v51 = vmul.f32 %v1994_v35, %v1966_v46 }
 0xeb0   :  { %3422 = vmatmul.msk.f32.gmra.mxu0 %vm50_vm0, %v1998_v51 }
 0xed3   :  { %v2032_v25 = vpop.f32.mrf.mxu0 }
 0xed4   :  { %v2033_v52 = vadd.f32 %v3605_v27, %v2032_v25 }
 0xed6   :  { %v4570_v16 = vadd.f32 %v2033_v52, %v4498_v56 }
 0xed8   :  { %v2050_v41 = vsel %vm50_vm0, %v4570_v16, 0.0 }
 0xed9   :  { %2051 = vadd.xlane.f32.xlu0 %v2050_v41 }
 0xf0f   :  { %v2049_v63 = vpop.xlane.xlu2 %2048 }
 0xf10   :  { %v2059_v54 = vmul.f32 %v2049_v63, %v3970_v10 }
 0xf12   :  { %v2063_v34 = vsub.f32 %v4562_v3, %v2059_v54 }
 0xf14   :  { %v2067_v39 = vmul.f32 %v2063_v34, %v2063_v34 }
 0xf16   :  { %v2071_v0 = vsel %vm50_vm0, %v2067_v39, 0.0 }
 0xf17   :  { %2072 = vadd.xlane.f32.xlu0 %v2071_v0 }
 0xf24   :  { %v2035_v58 = vpop.f32.mrf.mxu0 }
 0xf25   :  { %v2036_v61 = vadd.f32 %v3605_v27, %v2035_v58 }
 0xf27   :  { %v4578_v1 = vadd.f32 %v2036_v61, %v4506_v4 }
 0xf29   :  { %v2053_v56 = vsel %vm50_vm0, %v4578_v1, 0.0 }
 0xf2a   :  { %2054 = vadd.xlane.f32.xlu1 %v2053_v56 }
 0xf2d   :  { %v2038_v2 = vpop.f32.mrf.mxu0 }
 0xf2e   :  { %v2039_v5 = vadd.f32 %v3605_v27, %v2038_v2  ;;  %v3608_v2 = vld [vmem:[#allocation5 + $0x1a8] ss:$0 sm:$0xff] }
 0xf30   :  { %v4583_v6 = vadd.f32 %v2039_v5, %v4511_v26  ;;  %v2145_v26 = vld [vmem:[#allocation5 + $0x188] sm:$0xff] }
 0xf31   :  { %2178 = vmatpush.msrb.mxu2 %v2145_v26 }
 0xf32   :  { %v2056_v53 = vsel %vm50_vm0, %v4583_v6, 0.0 }
 0xf33   :  { %2057 = vadd.xlane.f32.xlu2 %v2056_v53 }
 0xf4c   :  { %v2052_v23 = vpop.xlane.xlu0 %2051 }
 0xf4d   :  { %v2060_v9 = vmul.f32 %v2052_v23, %v3970_v10 }
 0xf4f   :  { %v2064_v60 = vsub.f32 %v4570_v16, %v2060_v9 }
 0xf51   :  { %v2068_v4 = vmul.f32 %v2064_v60, %v2064_v60 }
 0xf53   :  { %v2074_v13 = vsel %vm50_vm0, %v2068_v4, 0.0 }
 0xf54   :  { %2075 = vadd.xlane.f32.xlu1 %v2074_v13 }
 0xf8a   :  { %v2073_v19 = vpop.xlane.xlu0 %2072 }
 0xf8b   :  { %v2083_v45 = vmul.f32 %v2073_v19, %v3970_v10 }
 0xf8d   :  { %v2087_v7 = vadd.f32 1e-12, %v2083_v45 }
 0xf8f   :  { %3756 = vrsqrt.f32 %v2087_v7  ;;  %vm2097_vm10 = vweird.f32 %v2087_v7 }
 0xf95   :  { %v3757_v22 = vpop.eup %3756 }
 0xf96   :  { %v2092_v48 = vmul.f32 %v3757_v22, %v2087_v7  ;;  %vm2098_vm7 = vweird.f32 %v3757_v22 }
 0xf97   :  { %vm2099_vm11 = vmor %vm2097_vm10, %vm2098_vm7 }
 0xf98   :  { %v2093_v14 = vmul.f32 %v3757_v22, %v2092_v48 }
 0xf9a   :  { %v2094_v37 = vmul.f32 0.5, %v2093_v14 }
 0xf9c   :  { %v2095_v59 = vsub.f32 1.5, %v2094_v37 }
 0xf9d   :  { %v2055_v49 = vpop.xlane.xlu1 %2054 }
 0xf9e   :  { %v2096_v24 = vmul.f32 %v3757_v22, %v2095_v59  ;;  %v2061_v28 = vmul.f32 %v2055_v49, %v3970_v10 }
 0xfa0   :  { %v2100_v11 = vsel %vm2099_vm11, %v3757_v22, %v2096_v24  ;;  %v2065_v31 = vsub.f32 %v4578_v1, %v2061_v28 }
 0xfa1   :  { %v2131_v27 = vmul.f32 %v2100_v11, %v2063_v34 }
 0xfa2   :  { %v2069_v8 = vmul.f32 %v2065_v31, %v2065_v31 }
 0xfa3   :  { %v2136_v33 = vmul.f32 %v4591_v62, %v2131_v27 }
 0xfa4   :  { %v2077_v38 = vsel %vm50_vm0, %v2069_v8, 0.0 }
 0xfa5   :  { %v2141_v20 = vadd.f32 %v4595_v21, %v2136_v33  ;;  %2078 = vadd.xlane.f32.xlu2 %v2077_v38 }
 0xfa6   :  { %v2058_v32 = vpop.xlane.xlu2 %2057 }
 0xfa7   :  { %3423 = vmatmul.msk.f32.vlgmr.msrb.gmra.mxu2 %vm50_vm0, %v2141_v20  ;;  %v2062_v40 = vmul.f32 %v2058_v32, %v3970_v10 }
 0xfa9   :  { %v2066_v42 = vsub.f32 %v4583_v6, %v2062_v40 }
 0xfab   :  { %v2070_v12 = vmul.f32 %v2066_v42, %v2066_v42 }
 0xfad   :  { %v2080_v44 = vsel %vm50_vm0, %v2070_v12, 0.0 }
 0xfae   :  { %2081 = vadd.xlane.f32.xlu0 %v2080_v44 }
 0xfc7   :  { %v2076_v55 = vpop.xlane.xlu1 %2075 }
 0xfc8   :  { %v2084_v36 = vmul.f32 %v2076_v55, %v3970_v10 }
 0xfca   :  { %v2088_v47 = vadd.f32 1e-12, %v2084_v36 }
 0xfcc   :  { %3758 = vrsqrt.f32 %v2088_v47  ;;  %vm2107_vm13 = vweird.f32 %v2088_v47 }
 0xfd2   :  { %v3759_v57 = vpop.eup %3758 }
 0xfd3   :  { %v2102_v18 = vmul.f32 %v3759_v57, %v2088_v47  ;;  %vm2108_vm12 = vweird.f32 %v3759_v57 }
 0xfd4   :  { %vm2109_vm14 = vmor %vm2107_vm13, %vm2108_vm12 }
 0xfd5   :  { %v2103_v30 = vmul.f32 %v3759_v57, %v2102_v18 }
 0xfd7   :  { %v2104_v15 = vmul.f32 0.5, %v2103_v30 }
 0xfd9   :  { %v2105_v50 = vsub.f32 1.5, %v2104_v15 }
 0xfdb   :  { %v2106_v46 = vmul.f32 %v3759_v57, %v2105_v50 }
 0xfdd   :  { %v2110_v35 = vsel %vm2109_vm14, %v3759_v57, %v2106_v46 }
 0xfde   :  { %v2132_v51 = vmul.f32 %v2110_v35, %v2064_v60 }
 0xfe0   :  { %v2137_v25 = vmul.f32 %v4591_v62, %v2132_v51 }
 0xfe2   :  { %v2142_v52 = vadd.f32 %v4595_v21, %v2137_v25 }
 0xfe4   :  { %3424 = vmatmul.msk.f32.gmra.mxu2 %vm50_vm0, %v2142_v52 }
0x1018   :  { %v2079_v41 = vpop.xlane.xlu2 %2078 }
0x1019   :  { %v2085_v63 = vmul.f32 %v2079_v41, %v3970_v10 }
0x101b   :  { %v2089_v54 = vadd.f32 1e-12, %v2085_v63 }
0x101d   :  { %3760 = vrsqrt.f32 %v2089_v54  ;;  %vm2117_vm1 = vweird.f32 %v2089_v54 }
0x1021   :  { %v2082_v34 = vpop.xlane.xlu0 %2081 }
0x1022   :  { %v2086_v39 = vmul.f32 %v2082_v34, %v3970_v10 }
0x1023   :  { %v3761_v0 = vpop.eup %3760 }
0x1024   :  { %v2112_v58 = vmul.f32 %v3761_v0, %v2089_v54  ;;  %v2090_v61 = vadd.f32 1e-12, %v2086_v39  ;;  %vm2118_vm15 = vweird.f32 %v3761_v0 }
0x1025   :  { %vm2119_vm2 = vmor %vm2117_vm1, %vm2118_vm15 }
0x1026   :  { %v2113_v56 = vmul.f32 %v3761_v0, %v2112_v58  ;;  %3762 = vrsqrt.f32 %v2090_v61  ;;  %vm2127_vm4 = vweird.f32 %v2090_v61 }
0x1028   :  { %v2114_v5 = vmul.f32 0.5, %v2113_v56 }
0x102a   :  { %v2180_v53 = vpop.f32.mrf.mxu2  ;;  %v2115_v23 = vsub.f32 1.5, %v2114_v5 }
0x102b   :  { %v4610_v9 = vadd.f32 %v3608_v2, %v2180_v53 }
0x102c   :  { %v3763_v60 = vpop.eup %3762  ;;  %v2116_v4 = vmul.f32 %v3761_v0, %v2115_v23 }
0x102d   :  { %2286 = vrot.lane.b32.xlu1 %v4610_v9, %s3932_s24  ;;  %2194 = vrot.lane.b32.xlu0 %v4610_v9, %s3928_s1  ;;  %v2122_v13 = vmul.f32 %v3763_v60, %v2090_v61  ;;  %vm2128_vm3 = vweird.f32 %v3763_v60 }
0x102e   :  { %2290 = vrot.lane.b32.xlu2 %v4610_v9, %s3931_s23  ;;  %v2120_v43 = vsel %vm2119_vm2, %v3761_v0, %v2116_v4  ;;  %vm2129_vm5 = vmor %vm2127_vm4, %vm2128_vm3 }
0x102f   :  { %v2123_v29 = vmul.f32 %v3763_v60, %v2122_v13  ;;  %v2133_v17 = vmul.f32 %v2120_v43, %v2065_v31 }
0x1031   :  { %v2124_v26 = vmul.f32 0.5, %v2123_v29  ;;  %v2138_v19 = vmul.f32 %v4591_v62, %v2133_v17 }
0x1033   :  { %v2125_v45 = vsub.f32 1.5, %v2124_v26  ;;  %v2143_v7 = vadd.f32 %v4595_v21, %v2138_v19 }
0x1035   :  { %2386 = vrot.lane.b32.xlu0 %v4610_v9, %s3929_s21  ;;  %v2126_v22 = vmul.f32 %v3763_v60, %v2125_v45  ;;  %3425 = vmatmul.msk.f32.gmra.mxu2 %vm50_vm0, %v2143_v7 }
0x1037   :  { %v2130_v48 = vsel %vm2129_vm5, %v3763_v60, %v2126_v22 }
0x1038   :  { %v2134_v14 = vmul.f32 %v2130_v48, %v2066_v42 }
0x103a   :  { %v2139_v37 = vmul.f32 %v4591_v62, %v2134_v14 }
0x103c   :  { %v2144_v59 = vadd.f32 %v4595_v21, %v2139_v37 }
0x103e   :  { %3426 = vmatmul.msk.f32.gmra.mxu2 %vm50_vm0, %v2144_v59 }
0x1067   :  { %v2183_v24 = vpop.f32.mrf.mxu2 }
0x1068   :  { %v2184_v49 = vadd.f32 %v3608_v2, %v2183_v24 }
0x106a   :  { %2288 = vrot.lane.b32.xlu0 %v2184_v49, %s3932_s24  ;;  %2292 = vrot.lane.b32.xlu2 %v2184_v49, %s3931_s23  ;;  %v4667_v32 = vpack.i.bf16 %v4610_v9, %v2184_v49 }
0x106b   :  { %2196 = vrot.lane.b32.xlu1 %v2184_v49, %s3928_s1 }
0x1072   :  { %2478 = vrot.lane.b32.xlu0 %v4610_v9, %s3934_s26  ;;  %2482 = vrot.lane.b32.xlu2 %v4610_v9, %s3933_s25 }
0x1073   :  { %2382 = vrot.lane.b32.xlu1 %v4610_v9, %s3927_s0 }
0x107a   :  { %2388 = vrot.lane.b32.xlu2 %v2184_v49, %s3929_s21 }
0x107b   :  { %2484 = vrot.lane.b32.xlu1 %v2184_v49, %s3933_s25 }
0x1082   :  { %2384 = vrot.lane.b32.xlu2 %v2184_v49, %s3927_s0 }
0x1083   :  { %2480 = vrot.lane.b32.xlu1 %v2184_v49, %s3934_s26 }
0x1088   :  { %v2291_v11 = vpop.permute.xlu2 %2290 }
0x109f   :  { %v2195_v33 = vpop.permute.xlu0 %2194  ;;  %v2287_v8 = vpop.permute.xlu1 %2286 }
0x10a7   :  { %v2387_v38 = vpop.permute.xlu0 %2386 }
0x10b8   :  { %v2186_v62 = vpop.f32.mrf.mxu2 }
0x10b9   :  { %v4639_v28 = vadd.f32 %v3608_v2, %v2186_v62 }
0x10bb   :  { %2606 = vrot.lane.b32.xlu1 %v4639_v28, %s3928_s1 }
0x10c1   :  { %v2189_v27 = vpop.f32.mrf.mxu2 }
0x10c2   :  { %v4643_v31 = vadd.f32 %v3608_v2, %v2189_v27 }
0x10c3   :  { %2798 = vrot.lane.b32.xlu1 %v4639_v28, %s3929_s21 }
0x10c4   :  { %v2293_v21 = vpop.permute.xlu2 %2292  ;;  %2608 = vrot.lane.b32.xlu0 %v4643_v31, %s3928_s1  ;;  %2704 = vrot.lane.b32.xlu2 %v4643_v31, %s3931_s23 }
0x10c5   :  { %3433 = vmatpush.xpose.msk.msra.mxu0 %vm178_vm9, %v2293_v21 }
0x10c9   :  { %3434 = vmatpush.xpose.msk.msra.mxu0 %vm178_vm9, %v2291_v11 }
0x10cb   :  { %2700 = vrot.lane.b32.xlu1 %v4643_v31, %s3932_s24 }
0x10cc   :  { %3435 = vmatmul.msk.f32.vlgmr.msra.gmra.mxu0 %vm178_vm9, %v2287_v8  ;;  %2702 = vrot.lane.b32.xlu0 %v4639_v28, %s3931_s23  ;;  %v2483_v20 = vpop.permute.xlu2 %2482 }
0x10cd   :  { %2698 = vrot.lane.b32.xlu2 %v4639_v28, %s3932_s24 }
0x10d3   :  { %2890 = vrot.lane.b32.xlu1 %v4639_v28, %s3934_s26 }
0x10d4   :  { %2800 = vrot.lane.b32.xlu0 %v4643_v31, %s3929_s21  ;;  %v2389_v12 = vpop.permute.xlu2 %2388 }
0x10d5   :  { %2896 = vrot.lane.b32.xlu2 %v4643_v31, %s3933_s25 }
0x10db   :  { %3551 = vrot.lane.b32.xlu1 %v4667_v32, %s3936_s28 }
0x10dc   :  { %v2289_v40 = vpop.permute.xlu0 %2288  ;;  %2894 = vrot.lane.b32.xlu0 %v4639_v28, %s3933_s25  ;;  %v2385_v47 = vpop.permute.xlu2 %2384 }
0x10dd   :  { %v2197_v42 = vpop.permute.xlu1 %2196  ;;  %3436 = vmatmul.msk.f32.gmra.mxu0 %vm178_vm9, %v2289_v40  ;;  %2794 = vrot.lane.b32.xlu2 %v4639_v28, %s3927_s0 }
0x10de   :  { %3427 = vmatpush.xpose.msk.msra.mxu1 %vm178_vm9, %v2197_v42 }
0x10e2   :  { %3428 = vmatpush.xpose.msk.msra.mxu1 %vm178_vm9, %v2195_v33 }
0x10e4   :  { %2796 = vrot.lane.b32.xlu0 %v4643_v31, %s3927_s0  ;;  %v2479_v36 = vpop.permute.xlu0 %2478 }
0x10e5   :  { %3429 = vmatmul.msk.f32.vlgmr.msra.gmra.mxu1 %vm178_vm9, %v4610_v9  ;;  %v2383_v44 = vpop.permute.xlu1 %2382  ;;  %2892 = vrot.lane.b32.xlu2 %v4643_v31, %s3934_s26 }
0x10e6   :  { %3439 = vmatpush.xpose.msk.msrb.mxu1 %vm178_vm9, %v2389_v12 }
0x10ea   :  { %3440 = vmatpush.xpose.msk.msrb.mxu1 %vm178_vm9, %v2387_v38 }
0x10ec   :  { %3561 = vrot.lane.b32.xlu0 %v4667_v32, %s3937_s29 }
0x10ed   :  { %3430 = vmatmul.msk.f32.gmra.mxu1 %vm178_vm9, %v2184_v49  ;;  %v2485_v55 = vpop.permute.xlu1 %2484  ;;  %3556 = vrot.lane.b32.xlu2 %v4667_v32, %s3935_s27 }
0x10ee   :  { %3445 = vmatpush.xpose.msk.msrb.mxu0 %vm178_vm9, %v2485_v55 }
0x10f2   :  { %3446 = vmatpush.xpose.msk.msrb.mxu0 %vm178_vm9, %v2483_v20 }
0x10f5   :  { %3441 = vmatmul.msk.f32.vlgmr.msrb.gmra.mxu1 %vm178_vm9, %v2383_v44  ;;  %3447 = vmatmul.msk.f32.vlgmr.msrb.gmra.mxu0 %vm178_vm9, %v2479_v36  ;;  %v2481_v57 = vpop.permute.xlu1 %2480 }
0x10fd   :  { %3442 = vmatmul.msk.f32.gmra.mxu1 %vm178_vm9, %v2385_v47  ;;  %3448 = vmatmul.msk.f32.gmra.mxu0 %vm178_vm9, %v2481_v57 }
0x111e   :  { %v2705_v18 = vpop.permute.xlu2 %2704 }
0x111f   :  { %3457 = vmatpush.xpose.msk.msra.mxu0 %vm178_vm9, %v2705_v18 }
0x1127   :  { %v2699_v30 = vpop.permute.xlu2 %2698 }
0x112d   :  { %v2607_v15 = vpop.permute.xlu1 %2606 }
0x112f   :  { %v2897_v50 = vpop.permute.xlu2 %2896 }
0x1135   :  { %v2799_v46 = vpop.permute.xlu1 %2798 }
0x1136   :  { %v2609_v35 = vpop.permute.xlu0 %2608 }
0x1137   :  { %v2795_v51 = vpop.permute.xlu2 %2794  ;;  %3451 = vmatpush.xpose.msk.msra.mxu1 %vm178_vm9, %v2609_v35 }
0x113b   :  { %3452 = vmatpush.xpose.msk.msra.mxu1 %vm178_vm9, %v2607_v15 }
0x113d   :  { %v2701_v25 = vpop.permute.xlu1 %2700 }
0x113e   :  { %v2703_v52 = vpop.permute.xlu0 %2702  ;;  %3453 = vmatmul.msk.f32.vlgmr.msra.gmra.mxu1 %vm178_vm9, %v4639_v28 }
0x113f   :  { %v2893_v41 = vpop.permute.xlu2 %2892  ;;  %3458 = vmatpush.xpose.msk.msra.mxu0 %vm178_vm9, %v2703_v52 }
0x1142   :  { %3459 = vmatmul.msk.f32.vlgmr.msra.gmra.mxu0 %vm178_vm9, %v2699_v30 }
0x1143   :  { %3469 = vmatpush.xpose.msk.msrb.mxu0 %vm178_vm9, %v2897_v50 }
0x1145   :  { %v2891_v63 = vpop.permute.xlu1 %2890 }
0x1146   :  { %v2801_v54 = vpop.permute.xlu0 %2800  ;;  %3454 = vmatmul.msk.f32.gmra.mxu1 %vm178_vm9, %v4643_v31 }
0x1147   :  { %v3557_v34 = vpop.permute.xlu2 %3556  ;;  %3463 = vmatpush.xpose.msk.msrb.mxu1 %vm178_vm9, %v2801_v54 }
0x1148   :  { %v3558_v39 = vunpack.i.l.bf16 %v3557_v34  ;;  %v3559_v58 = vunpack.i.h.bf16 %v3557_v34 }
0x1149   :  { %v2319_v0 = vpop.f32.mrf.mxu0 }
0x114a   :  { %2373 = vmatpush.msra.mxu2 %v3558_v39  ;;  %v2325_v61 = vsel %vm145_vm8, %v2319_v0, -inf  ;;  %3460 = vmatmul.msk.f32.gmra.mxu0 %vm178_vm9, %v2701_v25 }
0x114b   :  { %2326 = vmax.xlane.f32.xlu0 %v2325_v61  ;;  %3464 = vmatpush.xpose.msk.msrb.mxu1 %vm178_vm9, %v2799_v46 }
0x114c   :  { %2374 = vmatpush.msra.mxu2 %v3559_v58 }
0x114d   :  { %v3552_v56 = vpop.permute.xlu1 %3551 }
0x114e   :  { %v3553_v2 = vunpack.i.l.bf16 %v3552_v56  ;;  %v2895_v5 = vpop.permute.xlu0 %2894  ;;  %3465 = vmatmul.msk.f32.vlgmr.msrb.gmra.mxu1 %vm178_vm9, %v2795_v51  ;;  %v3554_v53 = vunpack.i.h.bf16 %v3552_v56 }
0x114f   :  { %3470 = vmatpush.xpose.msk.msrb.mxu0 %vm178_vm9, %v2895_v5 }
0x1150   :  { %2277 = vmatpush.msra.mxu3 %v3553_v2 }
0x1152   :  { %2278 = vmatpush.msra.mxu3 %v3554_v53  ;;  %3471 = vmatmul.msk.f32.vlgmr.msrb.gmra.mxu0 %vm178_vm9, %v2891_v63 }
0x1156   :  { %v2797_v23 = vpop.permute.xlu0 %2796 }
0x1157   :  { %3466 = vmatmul.msk.f32.gmra.mxu1 %vm178_vm9, %v2797_v23 }
0x115a   :  { %3472 = vmatmul.msk.f32.gmra.mxu0 %vm178_vm9, %v2893_v41  ;;  %v2322_v29 = vpop.f32.mrf.mxu0 }
0x115b   :  { %v2328_v26 = vsel %vm145_vm8, %v2322_v29, -inf }
0x115e   :  { %v3562_v9 = vpop.permute.xlu0 %3561 }
0x115f   :  { %v3563_v60 = vunpack.i.l.bf16 %v3562_v9  ;;  %v3564_v4 = vunpack.i.h.bf16 %v3562_v9 }
0x1161   :  { %2469 = vmatpush.msrb.mxu3 %v3563_v60 }
0x1162   :  { %v2223_v13 = vpop.f32.mrf.mxu1 }
0x1163   :  { %v2229_v43 = vsel %vm145_vm8, %v2223_v13, -inf  ;;  %2470 = vmatpush.msrb.mxu3 %v3564_v4 }
0x1164   :  { %2230 = vmax.xlane.f32.xlu1 %v2229_v43 }
0x116a   :  { %v2226_v17 = vpop.f32.mrf.mxu1 }
0x116b   :  { %v2232_v19 = vsel %vm145_vm8, %v2226_v17, -inf }
0x116c   :  { %2329 = vmax.xlane.f32.xlu1 %v2328_v26  ;;  %2233 = vmax.xlane.f32.xlu2 %v2232_v19 }
0x1172   :  { %v4719_v45 = vpop.f32.mrf.mxu1  ;;  %v2511_v7 = vpop.f32.mrf.mxu0 }
0x1173   :  { %v2421_v22 = vsel %vm145_vm8, %v4719_v45, -inf  ;;  %v2517_v48 = vsel %vm145_vm8, %v2511_v7, -inf }
0x1174   :  { %2422 = vmax.xlane.f32.xlu0 %v2421_v22  ;;  %2518 = vmax.xlane.f32.xlu2 %v2517_v48  ;;  %v4798_v48 = vpack.i.bf16 %v4639_v28, %v4643_v31 }
0x117a   :  { %v4724_v14 = vpop.f32.mrf.mxu1  ;;  %v4726_v37 = vpop.f32.mrf.mxu0 }
0x117b   :  { %v2424_v59 = vsel %vm145_vm8, %v4724_v14, -inf  ;;  %v2520_v24 = vsel %vm145_vm8, %v4726_v37, -inf }
0x117c   :  { %2425 = vmax.xlane.f32.xlu1 %v2424_v59  ;;  %2521 = vmax.xlane.f32.xlu0 %v2520_v24 }
0x11bb   :  { %v4732_v49 = vpop.f32.mrf.mxu1 }
0x11bc   :  { %v2641_v62 = vsel %vm145_vm8, %v4732_v49, -inf }
0x11bd   :  { %2642 = vmax.xlane.f32.xlu2 %v2641_v62 }
0x11be   :  { %v2327_v27 = vpop.xlane.xlu0 %2326 }
0x11bf   :  { %v4736_v11 = vpop.f32.mrf.mxu0  ;;  %v2331_v33 = vsub.f32 %v2319_v0, %v2327_v27 }
0x11c0   :  { %v2737_v21 = vsel %vm145_vm8, %v4736_v11, -inf }
0x11c1   :  { %2738 = vmax.xlane.f32.xlu1 %v2737_v21  ;;  %v2333_v20 = vmul.f32 1.442695, %v2331_v33 }
0x11c3   :  { %v4740_v8 = vpop.f32.mrf.mxu1  ;;  %3764 = vpow2.f32 %v2333_v20 }
0x11c4   :  { %v2644_v38 = vsel %vm145_vm8, %v4740_v8, -inf }
0x11c5   :  { %2645 = vmax.xlane.f32.xlu0 %v2644_v38 }
0x11c7   :  { %v4744_v40 = vpop.f32.mrf.mxu0 }
0x11c8   :  { %v2740_v42 = vsel %vm145_vm8, %v4744_v40, -inf }
0x11c9   :  { %2741 = vmax.xlane.f32.xlu2 %v2740_v42  ;;  %v4756_v47 = vpop.eup %3764 }
0x11ca   :  { %v2337_v57 = vsel %vm145_vm8, %v4756_v47, 0.0 }
0x11cb   :  { %v4748_v12 = vpop.f32.mrf.mxu1 }
0x11cc   :  { %v2833_v44 = vsel %vm145_vm8, %v4748_v12, -inf }
0x11cd   :  { %2834 = vmax.xlane.f32.xlu1 %v2833_v44 }
0x11cf   :  { %v4752_v55 = vpop.f32.mrf.mxu0 }
0x11d0   :  { %v2929_v36 = vsel %vm145_vm8, %v4752_v55, -inf }
0x11d1   :  { %2930 = vmax.xlane.f32.xlu0 %v2929_v36 }
0x11d4   :  { %v4760_v18 = vpop.f32.mrf.mxu1 }
0x11d5   :  { %2338 = vadd.xlane.f32.xlu1 %v2337_v57  ;;  %v2836_v46 = vsel %vm145_vm8, %v4760_v18, -inf }
0x11d7   :  { %v2231_v30 = vpop.xlane.xlu1 %2230  ;;  %v4762_v50 = vpop.f32.mrf.mxu0 }
0x11d8   :  { %v2235_v15 = vsub.f32 %v2223_v13, %v2231_v30  ;;  %v2932_v35 = vsel %vm145_vm8, %v4762_v50, -inf }
0x11d9   :  { %2837 = vmax.xlane.f32.xlu0 %v2836_v46  ;;  %2933 = vmax.xlane.f32.xlu2 %v2932_v35 }
0x11da   :  { %v2237_v51 = vmul.f32 1.442695, %v2235_v15 }
0x11dc   :  { %3766 = vpow2.f32 %v2237_v51 }
0x11df   :  { %v2234_v25 = vpop.xlane.xlu2 %2233  ;;  %v2330_v52 = vpop.xlane.xlu1 %2329 }
0x11e0   :  { %v2236_v41 = vsub.f32 %v2226_v17, %v2234_v25  ;;  %v2332_v34 = vsub.f32 %v2322_v29, %v2330_v52 }
0x11e2   :  { %v4768_v63 = vpop.eup %3766  ;;  %v2239_v54 = vmul.f32 1.442695, %v2236_v41  ;;  %v2335_v0 = vmul.f32 1.442695, %v2332_v34 }
0x11e3   :  { %v2241_v39 = vsel %vm145_vm8, %v4768_v63, 0.0 }
0x11e4   :  { %3768 = vpow2.f32 %v2239_v54  ;;  %2242 = vadd.xlane.f32.xlu2 %v2241_v39 }
0x11e5   :  { %3770 = vpow2.f32 %v2335_v0 }
0x11e7   :  { %v2423_v58 = vpop.xlane.xlu0 %2422  ;;  %v2519_v61 = vpop.xlane.xlu2 %2518 }
0x11e8   :  { %v2523_v56 = vsub.f32 %v2511_v7, %v2519_v61  ;;  %v2427_v5 = vsub.f32 %v4719_v45, %v2423_v58 }
0x11ea   :  { %v4772_v2 = vpop.eup %3768  ;;  %v2525_v53 = vmul.f32 1.442695, %v2523_v56  ;;  %v2429_v9 = vmul.f32 1.442695, %v2427_v5 }
0x11eb   :  { %v2244_v23 = vsel %vm145_vm8, %v4772_v2, 0.0  ;;  %v4777_v4 = vpop.eup %3770 }
0x11ec   :  { %2245 = vadd.xlane.f32.xlu0 %v2244_v23  ;;  %3772 = vpow2.f32 %v2525_v53  ;;  %v2340_v17 = vsel %vm145_vm8, %v4777_v4, 0.0 }
0x11ed   :  { %3774 = vpow2.f32 %v2429_v9 }
0x11ef   :  { %v2426_v60 = vpop.xlane.xlu1 %2425 }
0x11f0   :  { %v2428_v13 = vsub.f32 %v4724_v14, %v2426_v60  ;;  %v2522_v14 = vpop.xlane.xlu0 %2521 }
0x11f1   :  { %v2524_v59 = vsub.f32 %v4726_v37, %v2522_v14 }
0x11f2   :  { %v2431_v43 = vmul.f32 1.442695, %v2428_v13  ;;  %v4780_v29 = vpop.eup %3772 }
0x11f3   :  { %v2529_v26 = vsel %vm145_vm8, %v4780_v29, 0.0  ;;  %v4786_v19 = vpop.eup %3774  ;;  %v2527_v24 = vmul.f32 1.442695, %v2524_v59 }
0x11f4   :  { %2341 = vadd.xlane.f32.xlu0 %v2340_v17  ;;  %3776 = vpow2.f32 %v2431_v43  ;;  %2530 = vadd.xlane.f32.xlu1 %v2529_v26  ;;  %v2433_v7 = vsel %vm145_vm8, %v4786_v19, 0.0 }
0x11f5   :  { %3778 = vpow2.f32 %v2527_v24 }
0x11fa   :  { %v4788_v45 = vpop.eup %3776 }
0x11fb   :  { %v2436_v22 = vsel %vm145_vm8, %v4788_v45, 0.0  ;;  %v4804_v38 = vpop.eup %3778 }
0x11fc   :  { %2434 = vadd.xlane.f32.xlu0 %v2433_v7  ;;  %2437 = vadd.xlane.f32.xlu2 %v2436_v22  ;;  %v2532_v20 = vsel %vm145_vm8, %v4804_v38, 0.0 }
0x1210   :  { %3566 = vrot.lane.b32.xlu0 %v4667_v32, %s3938_s30 }
0x1214   :  { %3576 = vrot.lane.b32.xlu2 %v4798_v48, %s3935_s27 }
0x1230   :  { %v2643_v62 = vpop.xlane.xlu2 %2642 }
0x1231   :  { %v2647_v27 = vsub.f32 %v4732_v49, %v2643_v62 }
0x1233   :  { %v2649_v21 = vmul.f32 1.442695, %v2647_v27 }
0x1234   :  { %v2739_v33 = vpop.xlane.xlu1 %2738 }
0x1235   :  { %3780 = vpow2.f32 %v2649_v21  ;;  %v2743_v32 = vsub.f32 %v4736_v11, %v2739_v33 }
0x1237   :  { %v2745_v28 = vmul.f32 1.442695, %v2743_v32 }
0x1238   :  { %v2646_v31 = vpop.xlane.xlu0 %2645 }
0x1239   :  { %3782 = vpow2.f32 %v2745_v28  ;;  %v2648_v37 = vsub.f32 %v4740_v8, %v2646_v31 }
0x123a   :  { %2533 = vadd.xlane.f32.xlu0 %v2532_v20 }
0x123b   :  { %v4810_v42 = vpop.eup %3780  ;;  %v2651_v44 = vmul.f32 1.442695, %v2648_v37 }
0x123c   :  { %v2742_v49 = vpop.xlane.xlu2 %2741  ;;  %v2653_v36 = vsel %vm145_vm8, %v4810_v42, 0.0 }
0x123d   :  { %v2744_v57 = vsub.f32 %v4744_v40, %v2742_v49  ;;  %2654 = vadd.xlane.f32.xlu1 %v2653_v36  ;;  %3784 = vpow2.f32 %v2651_v44 }
0x123f   :  { %v4815_v11 = vpop.eup %3782  ;;  %v2747_v30 = vmul.f32 1.442695, %v2744_v57 }
0x1240   :  { %v2835_v15 = vpop.xlane.xlu1 %2834  ;;  %v2749_v46 = vsel %vm145_vm8, %v4815_v11, 0.0 }
0x1241   :  { %3786 = vpow2.f32 %v2747_v30  ;;  %2750 = vadd.xlane.f32.xlu2 %v2749_v46  ;;  %v2839_v14 = vsub.f32 %v4748_v12, %v2835_v15 }
0x1243   :  { %v4819_v35 = vpop.eup %3784  ;;  %v2841_v62 = vmul.f32 1.442695, %v2839_v14 }
0x1244   :  { %v2931_v8 = vpop.xlane.xlu0 %2930  ;;  %v2656_v54 = vsel %vm145_vm8, %v4819_v35, 0.0 }
0x1245   :  { %v2935_v51 = vsub.f32 %v4752_v55, %v2931_v8 }
0x1247   :  { %v4822_v25 = vpop.eup %3786  ;;  %v2937_v52 = vmul.f32 1.442695, %v2935_v51 }
0x1248   :  { %v2339_v40 = vpop.xlane.xlu1 %2338  ;;  %v2752_v41 = vsel %vm145_vm8, %v4822_v25, 0.0 }
0x1249   :  { %3788 = vpow2.f32 %v2937_v52  ;;  %2753 = vadd.xlane.f32.xlu0 %v2752_v41  ;;  %2657 = vadd.xlane.f32.xlu2 %v2656_v54 }
0x124a   :  { %3790 = vrcp.f32 %v2339_v40 }
0x124c   :  { %v2838_v34 = vpop.xlane.xlu0 %2837  ;;  %v2934_v39 = vpop.xlane.xlu2 %2933 }
0x124d   :  { %v2840_v0 = vsub.f32 %v4760_v18, %v2838_v34  ;;  %v2936_v55 = vsub.f32 %v4762_v50, %v2934_v39 }
0x124f   :  { %v4830_v58 = vpop.eup %3788  ;;  %v2843_v61 = vmul.f32 1.442695, %v2840_v0  ;;  %v2939_v23 = vmul.f32 1.442695, %v2936_v55 }
0x1250   :  { %v3791_v56 = vpop.eup %3790  ;;  %v2941_v5 = vsel %vm145_vm8, %v4830_v58, 0.0 }
0x1251   :  { %v2345_v53 = vmul.f32 %v3791_v56, %v4756_v47  ;;  %3792 = vpow2.f32 %v2843_v61  ;;  %2942 = vadd.xlane.f32.xlu0 %v2941_v5 }
0x1252   :  { %3794 = vpow2.f32 %v2939_v23 }
0x1253   :  { %3437 = vmatmul.msk.f32.vlgmr.msra.gmra.mxu2 %vm145_vm8, %v2345_v53 }
0x1256   :  { %3571 = vrot.lane.b32.xlu1 %v4798_v48, %s3936_s28 }
0x1257   :  { %v2243_v9 = vpop.xlane.xlu2 %2242  ;;  %v4838_v18 = vpop.eup %3792 }
0x1258   :  { %3796 = vrcp.f32 %v2243_v9  ;;  %v2848_v50 = vsel %vm145_vm8, %v4838_v18, 0.0  ;;  %v4842_v60 = vpop.eup %3794 }
0x1259   :  { %2849 = vadd.xlane.f32.xlu0 %v2848_v50  ;;  %v2944_v17 = vsel %vm145_vm8, %v4842_v60, 0.0 }
0x125e   :  { %v3797_v47 = vpop.eup %3796 }
0x125f   :  { %v2249_v13 = vmul.f32 %v3797_v47, %v4768_v63  ;;  %v2246_v43 = vpop.xlane.xlu0 %2245 }
0x1260   :  { %3798 = vrcp.f32 %v2246_v43 }
0x1261   :  { %3431 = vmatmul.msk.f32.vlgmr.msra.gmra.mxu3 %vm145_vm8, %v2249_v13  ;;  %2945 = vadd.xlane.f32.xlu0 %v2944_v17 }
0x1262   :  { %3581 = vrot.lane.b32.xlu2 %v4798_v48, %s3937_s29 }
0x1266   :  { %v3799_v26 = vpop.eup %3798 }
0x1267   :  { %v2342_v7 = vpop.xlane.xlu0 %2341  ;;  %v2250_v22 = vmul.f32 %v3799_v26, %v4772_v2  ;;  %v2531_v33 = vpop.xlane.xlu1 %2530 }
0x1268   :  { %3800 = vrcp.f32 %v2342_v7 }
0x1269   :  { %3432 = vmatmul.msk.f32.gmra.mxu3 %vm145_vm8, %v2250_v22 }
0x126a   :  { %3586 = vrot.lane.b32.xlu2 %v4798_v48, %s3938_s30 }
0x126e   :  { %v3801_v63 = vpop.eup %3800 }
0x126f   :  { %v2435_v59 = vpop.xlane.xlu0 %2434  ;;  %v2346_v24 = vmul.f32 %v3801_v63, %v4777_v4  ;;  %v2438_v27 = vpop.xlane.xlu2 %2437 }
0x1270   :  { %3802 = vrcp.f32 %v2435_v59 }
0x1271   :  { %3438 = vmatmul.msk.f32.gmra.mxu2 %vm145_vm8, %v2346_v24  ;;  %3804 = vrcp.f32 %v2438_v27 }
0x1272   :  { %3806 = vpow2.f32 %v2841_v62 }
0x1273   :  { %3808 = vrcp.f32 %v2531_v33  ;;  %v3019_v33 = vld [vmem:[#allocation5 + $0x1c8] sm:$0xff] }
0x1274   :  { %3046 = vmatpush.msra.mxu1 %v3019_v33  ;;  %v3170_v33 = vld [vmem:[#allocation5 + $0x1f8] sm:$0xff] }
0x1276   :  { %v3803_v21 = vpop.eup %3802 }
0x1277   :  { %v2441_v2 = vmul.f32 %v3803_v21, %v4786_v19  ;;  %v3805_v48 = vpop.eup %3804  ;;  %v3577_v37 = vpop.permute.xlu2 %3576 }
0x1278   :  { %v4859_v32 = vpop.eup %3806  ;;  %v2442_v12 = vmul.f32 %v3805_v48, %v4788_v45  ;;  %v3578_v49 = vunpack.i.l.bf16 %v3577_v37  ;;  %v3579_v36 = vunpack.i.h.bf16 %v3577_v37  ;;  %v3018_v48 = vld [vmem:[#allocation5 + $0x1c0] sm:$0xff] }
0x1279   :  { %3443 = vmatmul.msk.f32.vlgmr.msrb.gmra.mxu3 %vm145_vm8, %v2441_v2  ;;  %v2845_v4 = vsel %vm145_vm8, %v4859_v32, 0.0  ;;  %v3809_v31 = vpop.eup %3808  ;;  %3047 = vmatpush.msra.mxu1 %v3018_v48 }
0x127a   :  { %v2537_v44 = vmul.f32 %v3809_v31, %v4780_v29 }
0x1280   :  { %2846 = vadd.xlane.f32.xlu1 %v2845_v4 }
0x1281   :  { %3444 = vmatmul.msk.f32.gmra.mxu3 %vm145_vm8, %v2442_v12  ;;  %v3016_v12 = vld [vmem:[#allocation5 + $0x1b0] sm:$0xff] }
0x1282   :  { %v3567_v28 = vpop.permute.xlu0 %3566 }
0x1283   :  { %v3568_v20 = vunpack.i.l.bf16 %v3567_v28  ;;  %v3569_v19 = vunpack.i.h.bf16 %v3567_v28 }
0x1285   :  { %2565 = vmatpush.msrb.mxu2 %v3568_v20 }
0x1287   :  { %2566 = vmatpush.msrb.mxu2 %v3569_v19 }
0x1288   :  { %3449 = vmatmul.msk.f32.vlgmr.msrb.gmra.mxu2 %vm145_vm8, %v2537_v44 }
0x1289   :  { %2785 = vmatpush.msra.mxu2 %v3578_v49 }
0x128b   :  { %2786 = vmatpush.msra.mxu2 %v3579_v36 }
0x12ad   :  { %v2534_v45 = vpop.xlane.xlu0 %2533 }
0x12ae   :  { %3810 = vrcp.f32 %v2534_v45 }
0x12b0   :  { %v2655_v52 = vpop.xlane.xlu1 %2654 }
0x12b4   :  { %v3811_v57 = vpop.eup %3810  ;;  %v2751_v30 = vpop.xlane.xlu2 %2750 }
0x12b5   :  { %v2538_v15 = vmul.f32 %v3811_v57, %v4804_v38  ;;  %3812 = vrcp.f32 %v2751_v30 }
0x12b7   :  { %3450 = vmatmul.msk.f32.gmra.mxu2 %vm145_vm8, %v2538_v15 }
0x12bb   :  { %v3813_v46 = vpop.eup %3812 }
0x12bc   :  { %v2757_v8 = vmul.f32 %v3813_v46, %v4815_v11  ;;  %v2754_v29 = vpop.xlane.xlu0 %2753  ;;  %v2658_v51 = vpop.xlane.xlu2 %2657 }
0x12bd   :  { %3814 = vrcp.f32 %v2754_v29 }
0x12be   :  { %3816 = vrcp.f32 %v2655_v52 }
0x12bf   :  { %3461 = vmatmul.msk.f32.vlgmr.msra.gmra.mxu2 %vm145_vm8, %v2757_v8 }
0x12c3   :  { %v3815_v40 = vpop.eup %3814 }
0x12c4   :  { %v2943_v41 = vpop.xlane.xlu0 %2942  ;;  %v3582_v54 = vpop.permute.xlu2 %3581  ;;  %v2758_v34 = vmul.f32 %v3815_v40, %v4822_v25  ;;  %v3609_v40 = vld [vmem:[#allocation5 + $0x1d0] ss:$0 sm:$0xff] }
0x12c5   :  { %3818 = vrcp.f32 %v2943_v41  ;;  %v3817_v39 = vpop.eup %3816  ;;  %v3583_v53 = vunpack.i.l.bf16 %v3582_v54  ;;  %v3584_v25 = vunpack.i.h.bf16 %v3582_v54 }
0x12c6   :  { %3820 = vrcp.f32 %v2658_v51  ;;  %v2661_v55 = vmul.f32 %v3817_v39, %v4810_v42 }
0x12c7   :  { %3462 = vmatmul.msk.f32.gmra.mxu2 %vm145_vm8, %v2758_v34 }
0x12c8   :  { %v3572_v38 = vpop.permute.xlu1 %3571 }
0x12c9   :  { %v3573_v0 = vunpack.i.l.bf16 %v3572_v38  ;;  %v3574_v11 = vunpack.i.h.bf16 %v3572_v38 }
0x12cb   :  { %2689 = vmatpush.msra.mxu3 %v3573_v0  ;;  %v3819_v5 = vpop.eup %3818 }
0x12cc   :  { %v2850_v61 = vpop.xlane.xlu0 %2849  ;;  %v3587_v56 = vpop.permute.xlu2 %3586  ;;  %v2949_v50 = vmul.f32 %v3819_v5, %v4830_v58 }
0x12cd   :  { %v3588_v23 = vunpack.i.l.bf16 %v3587_v56  ;;  %2690 = vmatpush.msra.mxu3 %v3574_v11  ;;  %v3589_v9 = vunpack.i.h.bf16 %v3587_v56  ;;  %v3821_v47 = vpop.eup %3820 }
0x12ce   :  { %3455 = vmatmul.msk.f32.vlgmr.msra.gmra.mxu3 %vm145_vm8, %v2661_v55  ;;  %v2662_v13 = vmul.f32 %v3821_v47, %v4819_v35 }
0x12cf   :  { %2881 = vmatpush.msrb.mxu3 %v3583_v53  ;;  %2977 = vmatpush.msrb.mxu2 %v3588_v23 }
0x12d1   :  { %2882 = vmatpush.msrb.mxu3 %v3584_v25  ;;  %2978 = vmatpush.msrb.mxu2 %v3589_v9 }
0x12d2   :  { %3473 = vmatmul.msk.f32.vlgmr.msrb.gmra.mxu2 %vm145_vm8, %v2949_v50 }
0x12d3   :  { %3202 = vmatpush.msra.mxu3 %v3170_v33 }
0x12d4   :  { %v2946_v42 = vpop.xlane.xlu0 %2945 }
0x12d5   :  { %3822 = vrcp.f32 %v2946_v42 }
0x12d6   :  { %v2376_v43 = vpop.f32.mrf.mxu2  ;;  %3456 = vmatmul.msk.f32.gmra.mxu3 %vm145_vm8, %v2662_v13 }
0x12d7   :  { %2576 = vrot.lane.b32.xlu2 %v2376_v43, %s3924_s18 }
0x12db   :  { %v3823_v17 = vpop.eup %3822 }
0x12dc   :  { %v2950_v26 = vmul.f32 %v3823_v17, %v4842_v60 }
0x12de   :  { %3474 = vmatmul.msk.f32.gmra.mxu2 %vm145_vm8, %v2950_v26 }
0x12e4   :  { %v2280_v58 = vpop.f32.mrf.mxu3 }
0x12ec   :  { %v2283_v7 = vpop.f32.mrf.mxu3 }
0x12f3   :  { %v2847_v63 = vpop.xlane.xlu1 %2846 }
0x12f4   :  { %v2379_v22 = vpop.f32.mrf.mxu2  ;;  %3824 = vrcp.f32 %v2847_v63 }
0x12f5   :  { %2578 = vrot.lane.b32.xlu1 %v2379_v22, %s3924_s18  ;;  %3826 = vrcp.f32 %v2850_v61 }
0x12fa   :  { %v3825_v14 = vpop.eup %3824 }
0x12fb   :  { %v2853_v35 = vmul.f32 %v3825_v14, %v4859_v32  ;;  %v3827_v24 = vpop.eup %3826 }
0x12fc   :  { %v2472_v59 = vpop.f32.mrf.mxu3  ;;  %v2854_v60 = vmul.f32 %v3827_v24, %v4838_v18  ;;  %v3017_v18 = vld [vmem:[#allocation5 + $0x1b8] sm:$0xff] }
0x12fd   :  { %2584 = vrot.lane.b32.xlu0 %v2472_v59, %s3930_s22  ;;  %3467 = vmatmul.msk.f32.vlgmr.msrb.gmra.mxu3 %vm145_vm8, %v2853_v35 }
0x12fe   :  { %3048 = vmatpush.msra.mxu1 %v3017_v18 }
0x1300   :  { %3049 = vmatpush.msra.mxu1 %v3016_v12  ;;  %v3168_v12 = vld [vmem:[#allocation5 + $0x1e8] sm:$0xff] }
0x1304   :  { %v2475_v27 = vpop.f32.mrf.mxu3 }
0x1305   :  { %3468 = vmatmul.msk.f32.gmra.mxu3 %vm145_vm8, %v2854_v60 }
0x130b   :  { %v2568_v62 = vpop.f32.mrf.mxu2 }
0x130c   :  { %2592 = vrot.lane.b32.xlu2 %v2568_v62, %s3939_s3 }
0x1314   :  { %2586 = vrot.lane.b32.xlu2 %v2475_v27, %s3930_s22 }
0x1331   :  { %v2577_v31 = vpop.permute.xlu2 %2576 }
0x1332   :  { %v2598_v20 = vsel %vm178_vm9, %v2280_v58, %v2577_v31 }
0x133a   :  { %v2571_v21 = vpop.f32.mrf.mxu2 }
0x133b   :  { %2594 = vrot.lane.b32.xlu0 %v2571_v21, %s3939_s3 }
0x1342   :  { %v2788_v2 = vpop.f32.mrf.mxu2 }
0x1343   :  { %2988 = vrot.lane.b32.xlu2 %v2788_v2, %s3924_s18 }
0x134a   :  { %v2791_v32 = vpop.f32.mrf.mxu2 }
0x1351   :  { %v2692_v37 = vpop.f32.mrf.mxu3 }
0x1355   :  { %v2980_v4 = vpop.f32.mrf.mxu2 }
0x1356   :  { %3004 = vrot.lane.b32.xlu2 %v2980_v4, %s3939_s3  ;;  %v3167_v4 = vld [vmem:[#allocation5 + $0x1e0] sm:$0xff] }
0x1359   :  { %v2695_v45 = vpop.f32.mrf.mxu3 }
0x1361   :  { %v2983_v28 = vpop.f32.mrf.mxu2 }
0x1362   :  { %3006 = vrot.lane.b32.xlu2 %v2983_v28, %s3939_s3 }
0x1366   :  { %v2593_v44 = vpop.permute.xlu2 %2592 }
0x1367   :  { %v2579_v15 = vpop.permute.xlu1 %2578 }
0x1368   :  { %v2599_v8 = vsel %vm178_vm9, %v2283_v7, %v2579_v15 }
0x136e   :  { %v2587_v46 = vpop.permute.xlu2 %2586 }
0x136f   :  { %v2585_v19 = vpop.permute.xlu0 %2584  ;;  %v2601_v29 = vsel %vm145_vm8, %v2599_v8, %v2587_v46 }
0x1370   :  { %v2600_v49 = vsel %vm145_vm8, %v2598_v20, %v2585_v19 }
0x1371   :  { %v2602_v36 = vsel %vm1345_vm6, %v2600_v49, %v2593_v44 }
0x1372   :  { %3475 = vmatmul.msk.f32.vlgmr.msra.gmra.mxu1 %vm50_vm0, %v2602_v36 }
0x1380   :  { %v2884_v57 = vpop.f32.mrf.mxu3 }
0x1381   :  { %2996 = vrot.lane.b32.xlu0 %v2884_v57, %s3930_s22 }
0x1388   :  { %v2887_v30 = vpop.f32.mrf.mxu3 }
0x1389   :  { %2990 = vrot.lane.b32.xlu0 %v2791_v32, %s3924_s18  ;;  %2998 = vrot.lane.b32.xlu1 %v2887_v30, %s3930_s22  ;;  %v3169_v32 = vld [vmem:[#allocation5 + $0x1f0] sm:$0xff] }
0x138a   :  { %3203 = vmatpush.msra.mxu3 %v3169_v32 }
0x138c   :  { %3204 = vmatpush.msra.mxu3 %v3168_v12 }
0x138e   :  { %3205 = vmatpush.msra.mxu3 %v3167_v4  ;;  %v3175_v4 = vld [vmem:[#allocation5 + $0x220] sm:$0xff] }
0x138f   :  { %3280 = vmatpush.msra.mxu0 %v3175_v4 }
0x139d   :  { %v2989_v41 = vpop.permute.xlu2 %2988 }
0x139e   :  { %v3010_v39 = vsel %vm178_vm9, %v2692_v37, %v2989_v41  ;;  %v4954_v41 = vld [vmem:[#allocation5 + $0x1d9] ss:$0 sm:$0xff] }
0x13ad   :  { %v2595_v51 = vpop.permute.xlu0 %2594 }
0x13ae   :  { %v2603_v52 = vsel %vm1345_vm6, %v2601_v29, %v2595_v51 }
0x13af   :  { %3476 = vmatmul.msk.f32.gmra.mxu1 %vm50_vm0, %v2603_v52  ;;  %v3610_v52 = vld [vmem:[#allocation5 + $0x1d8] ss:$0 sm:$0xff] }
0x13b0   :  { %v3005_v55 = vpop.permute.xlu2 %3004 }
0x13ef   :  { %v3051_v54 = vpop.f32.mrf.mxu1 }
0x13f0   :  { %v3052_v34 = vadd.f32 %v3609_v40, %v3051_v54 }
0x13f2   :  { %v4906_v38 = vadd.f32 %v3052_v34, %v4562_v3  ;;  %v3007_v3 = vpop.permute.xlu2 %3006 }
0x13f3   :  { %v2997_v11 = vpop.permute.xlu0 %2996 }
0x13f4   :  { %v3069_v0 = vsel %vm50_vm0, %v4906_v38, 0.0  ;;  %v3012_v61 = vsel %vm145_vm8, %v3010_v39, %v2997_v11 }
0x13f5   :  { %3070 = vadd.xlane.f32.xlu0 %v3069_v0  ;;  %v3014_v56 = vsel %vm1345_vm6, %v3012_v61, %v3005_v55 }
0x13f6   :  { %3477 = vmatmul.msk.f32.gmra.mxu1 %vm50_vm0, %v3014_v56 }
0x13fb   :  { %v2991_v5 = vpop.permute.xlu0 %2990  ;;  %v2999_v53 = vpop.permute.xlu1 %2998 }
0x13fc   :  { %v3011_v23 = vsel %vm178_vm9, %v2695_v45, %v2991_v5 }
0x13fd   :  { %v3013_v25 = vsel %vm145_vm8, %v3011_v23, %v2999_v53 }
0x13fe   :  { %v3015_v9 = vsel %vm1345_vm6, %v3013_v25, %v3007_v3 }
0x13ff   :  { %3478 = vmatmul.msk.f32.gmra.mxu1 %vm50_vm0, %v3015_v9 }
0x142c   :  { %v3054_v50 = vpop.f32.mrf.mxu1 }
0x142d   :  { %v3055_v47 = vadd.f32 %v3609_v40, %v3054_v50 }
0x142f   :  { %v4919_v42 = vadd.f32 %v3055_v47, %v4570_v16 }
0x1431   :  { %v3072_v13 = vsel %vm50_vm0, %v4919_v42, 0.0 }
0x1432   :  { %3073 = vadd.xlane.f32.xlu1 %v3072_v13 }
0x1468   :  { %v3071_v43 = vpop.xlane.xlu0 %3070 }
0x1469   :  { %v3081_v26 = vmul.f32 %v3071_v43, %v3970_v10 }
0x146b   :  { %v3085_v22 = vsub.f32 %v4906_v38, %v3081_v26 }
0x146d   :  { %v3089_v14 = vmul.f32 %v3085_v22, %v3085_v22 }
0x146f   :  { %v3093_v24 = vsel %vm50_vm0, %v3089_v14, 0.0 }
0x1473   :  { %v3057_v17 = vpop.f32.mrf.mxu1 }
0x1474   :  { %v3058_v58 = vadd.f32 %v3609_v40, %v3057_v17 }
0x1476   :  { %v4925_v7 = vadd.f32 %v3058_v58, %v4578_v1 }
0x1478   :  { %v3075_v63 = vsel %vm50_vm0, %v4925_v7, 0.0 }
0x1479   :  { %3076 = vadd.xlane.f32.xlu2 %v3075_v63 }
0x147c   :  { %v3060_v16 = vpop.f32.mrf.mxu1 }
0x147d   :  { %v3061_v35 = vadd.f32 %v3609_v40, %v3060_v16 }
0x147f   :  { %v4931_v59 = vadd.f32 %v3061_v35, %v4583_v6 }
0x1481   :  { %3094 = vadd.xlane.f32.xlu2 %v3093_v24  ;;  %v3078_v60 = vsel %vm50_vm0, %v4931_v59, 0.0 }
0x1482   :  { %3079 = vadd.xlane.f32.xlu0 %v3078_v60 }
0x14a5   :  { %v3074_v1 = vpop.xlane.xlu1 %3073 }
0x14a6   :  { %v3082_v62 = vmul.f32 %v3074_v1, %v3970_v10 }
0x14a8   :  { %v3086_v27 = vsub.f32 %v4919_v42, %v3082_v62 }
0x14aa   :  { %v3090_v21 = vmul.f32 %v3086_v27, %v3086_v27 }
0x14ac   :  { %v3096_v2 = vsel %vm50_vm0, %v3090_v21, 0.0 }
0x14ad   :  { %3097 = vadd.xlane.f32.xlu1 %v3096_v2 }
0x14ec   :  { %v3077_v48 = vpop.xlane.xlu2 %3076 }
0x14ed   :  { %v3083_v6 = vmul.f32 %v3077_v48, %v3970_v10 }
0x14ef   :  { %v4941_v18 = vsub.f32 %v4925_v7, %v3083_v6 }
0x14f1   :  { %v3091_v28 = vmul.f32 %v4941_v18, %v4941_v18 }
0x14f3   :  { %v3099_v31 = vsel %vm50_vm0, %v3091_v28, 0.0 }
0x14f4   :  { %v3095_v20 = vpop.xlane.xlu2 %3094  ;;  %3100 = vadd.xlane.f32.xlu0 %v3099_v31  ;;  %v3174_v31 = vld [vmem:[#allocation5 + $0x218] sm:$0xff] }
0x14f5   :  { %v3105_v37 = vmul.f32 %v3095_v20, %v3970_v10  ;;  %v3080_v19 = vpop.xlane.xlu0 %3079  ;;  %3281 = vmatpush.msra.mxu0 %v3174_v31 }
0x14f6   :  { %v3084_v44 = vmul.f32 %v3080_v19, %v3970_v10 }
0x14f7   :  { %v3109_v49 = vadd.f32 1e-12, %v3105_v37  ;;  %v3172_v37 = vld [vmem:[#allocation5 + $0x208] sm:$0xff] }
0x14f8   :  { %v4949_v36 = vsub.f32 %v4931_v59, %v3084_v44  ;;  %v3612_v44 = vld [vmem:[#allocation5 + $0x200] ss:$0 sm:$0xff] }
0x14f9   :  { %3828 = vrsqrt.f32 %v3109_v49  ;;  %vm3119_vm9 = vweird.f32 %v3109_v49 }
0x14fa   :  { %v3092_v45 = vmul.f32 %v4949_v36, %v4949_v36 }
0x14fc   :  { %v3102_v57 = vsel %vm50_vm0, %v3092_v45, 0.0 }
0x14fd   :  { %3103 = vadd.xlane.f32.xlu2 %v3102_v57 }
0x14ff   :  { %v3829_v30 = vpop.eup %3828 }
0x1500   :  { %v3114_v15 = vmul.f32 %v3829_v30, %v3109_v49  ;;  %vm3120_vm8 = vweird.f32 %v3829_v30 }
0x1501   :  { %vm3121_vm6 = vmor %vm3119_vm9, %vm3120_vm8 }
0x1502   :  { %v3115_v46 = vmul.f32 %v3829_v30, %v3114_v15 }
0x1504   :  { %v3116_v8 = vmul.f32 0.5, %v3115_v46 }
0x1506   :  { %v3117_v29 = vsub.f32 1.5, %v3116_v8 }
0x1508   :  { %v3118_v51 = vmul.f32 %v3829_v30, %v3117_v29 }
0x150a   :  { %v3122_v40 = vsel %vm3121_vm6, %v3829_v30, %v3118_v51 }
0x150b   :  { %v3153_v54 = vmul.f32 %v3122_v40, %v3085_v22 }
0x150d   :  { %v3158_v34 = vmul.f32 %v3610_v52, %v3153_v54 }
0x150f   :  { %v3163_v39 = vadd.f32 %v4954_v41, %v3158_v34 }
0x1511   :  { %3479 = vmatmul.msk.f32.vlgmr.msra.gmra.mxu3 %vm50_vm0, %v3163_v39 }
0x1520   :  { %v3098_v0 = vpop.xlane.xlu1 %3097 }
0x1521   :  { %v3106_v11 = vmul.f32 %v3098_v0, %v3970_v10 }
0x1523   :  { %v3110_v55 = vadd.f32 1e-12, %v3106_v11 }
0x1525   :  { %3830 = vrsqrt.f32 %v3110_v55  ;;  %vm3129_vm10 = vweird.f32 %v3110_v55 }
0x152b   :  { %v3831_v61 = vpop.eup %3830 }
0x152c   :  { %v3124_v56 = vmul.f32 %v3831_v61, %v3110_v55  ;;  %vm3130_vm7 = vweird.f32 %v3831_v61 }
0x152d   :  { %vm3131_vm11 = vmor %vm3129_vm10, %vm3130_vm7 }
0x152e   :  { %v3125_v5 = vmul.f32 %v3831_v61, %v3124_v56 }
0x1530   :  { %v3126_v53 = vmul.f32 0.5, %v3125_v5 }
0x1532   :  { %v3127_v23 = vsub.f32 1.5, %v3126_v53 }
0x1534   :  { %v3128_v3 = vmul.f32 %v3831_v61, %v3127_v23 }
0x1536   :  { %v3132_v25 = vsel %vm3131_vm11, %v3831_v61, %v3128_v3 }
0x1537   :  { %v3154_v9 = vmul.f32 %v3132_v25, %v3086_v27 }
0x1539   :  { %v3159_v50 = vmul.f32 %v3610_v52, %v3154_v9 }
0x153b   :  { %v3164_v47 = vadd.f32 %v4954_v41, %v3159_v50 }
0x153d   :  { %3480 = vmatmul.msk.f32.gmra.mxu3 %vm50_vm0, %v3164_v47 }
0x1567   :  { %v3101_v13 = vpop.xlane.xlu0 %3100 }
0x1568   :  { %v3107_v43 = vmul.f32 %v3101_v13, %v3970_v10 }
0x156a   :  { %v3111_v17 = vadd.f32 1e-12, %v3107_v43 }
0x156c   :  { %3832 = vrsqrt.f32 %v3111_v17  ;;  %vm3139_vm13 = vweird.f32 %v3111_v17 }
0x1570   :  { %v3104_v26 = vpop.xlane.xlu2 %3103 }
0x1571   :  { %v3108_v58 = vmul.f32 %v3104_v26, %v3970_v10 }
0x1572   :  { %v3833_v22 = vpop.eup %3832 }
0x1573   :  { %v3134_v63 = vmul.f32 %v3833_v22, %v3111_v17  ;;  %v3112_v16 = vadd.f32 1e-12, %v3108_v58  ;;  %vm3140_vm12 = vweird.f32 %v3833_v22 }
0x1574   :  { %vm3141_vm14 = vmor %vm3139_vm13, %vm3140_vm12 }
0x1575   :  { %v3135_v14 = vmul.f32 %v3833_v22, %v3134_v63  ;;  %3834 = vrsqrt.f32 %v3112_v16  ;;  %vm3149_vm1 = vweird.f32 %v3112_v16 }
0x1577   :  { %v3136_v35 = vmul.f32 0.5, %v3135_v14 }
0x1579   :  { %v3137_v24 = vsub.f32 1.5, %v3136_v35 }
0x157b   :  { %v3835_v60 = vpop.eup %3834  ;;  %v3138_v1 = vmul.f32 %v3833_v22, %v3137_v24 }
0x157c   :  { %v3144_v62 = vmul.f32 %v3835_v60, %v3112_v16  ;;  %vm3150_vm15 = vweird.f32 %v3835_v60 }
0x157d   :  { %v3142_v27 = vsel %vm3141_vm14, %v3833_v22, %v3138_v1  ;;  %vm3151_vm2 = vmor %vm3149_vm1, %vm3150_vm15 }
0x157e   :  { %v3155_v21 = vmul.f32 %v3142_v27, %v4941_v18  ;;  %v3145_v2 = vmul.f32 %v3835_v60, %v3144_v62  ;;  %v3173_v18 = vld [vmem:[#allocation5 + $0x210] sm:$0xff] }
0x157f   :  { %3282 = vmatpush.msra.mxu0 %v3173_v18 }
0x1580   :  { %v3146_v33 = vmul.f32 0.5, %v3145_v2  ;;  %v3160_v48 = vmul.f32 %v3610_v52, %v3155_v21  ;;  %v3613_v21 = vld [vmem:[#allocation5 + $0x228] ss:$0 sm:$0xff] }
0x1581   :  { %3283 = vmatpush.msra.mxu0 %v3172_v37 }
0x1582   :  { %v3147_v10 = vsub.f32 1.5, %v3146_v33  ;;  %v3165_v6 = vadd.f32 %v4954_v41, %v3160_v48 }
0x1584   :  { %v3148_v32 = vmul.f32 %v3835_v60, %v3147_v10  ;;  %3481 = vmatmul.msk.f32.gmra.mxu3 %vm50_vm0, %v3165_v6 }
0x1586   :  { %v3152_v12 = vsel %vm3151_vm2, %v3835_v60, %v3148_v32 }
0x1587   :  { %v3156_v28 = vmul.f32 %v3152_v12, %v4949_v36 }
0x1589   :  { %v3161_v20 = vmul.f32 %v3610_v52, %v3156_v28 }
0x158b   :  { %v3166_v19 = vadd.f32 %v4954_v41, %v3161_v20 }
0x158d   :  { %3482 = vmatmul.msk.f32.gmra.mxu3 %vm50_vm0, %v3166_v19 }
0x1594   :  { %v3207_v49 = vpop.f32.mrf.mxu3 }
0x1595   :  { %v3208_v45 = vadd.f32 %v3612_v44, %v3207_v49 }
0x1597   :  { %v3223_v57 = vmul.f32 0.044715, %v3208_v45  ;;  %v3219_v29 = vmul.f32 0.5, %v3208_v45 }
0x1599   :  { %v3227_v30 = vmul.f32 %v3223_v57, %v3208_v45 }
0x159b   :  { %v3231_v15 = vmul.f32 %v3227_v30, %v3208_v45 }
0x159d   :  { %v3235_v46 = vadd.f32 %v3231_v15, %v3208_v45 }
0x159f   :  { %v3239_v36 = vmul.f32 0.7978846, %v3235_v46 }
0x15a1   :  { %3836 = vtanh.f32 %v3239_v36 }
0x15a7   :  { %v3837_v8 = vpop.eup %3836 }
0x15a8   :  { %v3247_v51 = vadd.f32 1.0, %v3837_v8 }
0x15aa   :  { %v3251_v52 = vmul.f32 %v3247_v51, %v3219_v29 }
0x15ac   :  { %3483 = vmatmul.msk.f32.vlgmr.msra.gmra.mxu0 %vm50_vm0, %v3251_v52 }
0x15c0   :  { %v3210_v40 = vpop.f32.mrf.mxu3 }
0x15c1   :  { %v3211_v41 = vadd.f32 %v3612_v44, %v3210_v40 }
0x15c3   :  { %v3224_v54 = vmul.f32 0.044715, %v3211_v41  ;;  %v3220_v61 = vmul.f32 0.5, %v3211_v41 }
0x15c5   :  { %v3228_v34 = vmul.f32 %v3224_v54, %v3211_v41 }
0x15c7   :  { %v3232_v39 = vmul.f32 %v3228_v34, %v3211_v41 }
0x15c9   :  { %v3236_v0 = vadd.f32 %v3232_v39, %v3211_v41 }
0x15cb   :  { %v3240_v11 = vmul.f32 0.7978846, %v3236_v0 }
0x15cd   :  { %3838 = vtanh.f32 %v3240_v11 }
0x15d3   :  { %v3839_v55 = vpop.eup %3838 }
0x15d4   :  { %v3248_v56 = vadd.f32 1.0, %v3839_v55 }
0x15d6   :  { %v3252_v5 = vmul.f32 %v3248_v56, %v3220_v61 }
0x15d8   :  { %3484 = vmatmul.msk.f32.gmra.mxu0 %vm50_vm0, %v3252_v5 }
0x1607   :  { %v3213_v53 = vpop.f32.mrf.mxu3 }
0x1608   :  { %v3214_v23 = vadd.f32 %v3612_v44, %v3213_v53 }
0x160a   :  { %v3225_v3 = vmul.f32 0.044715, %v3214_v23  ;;  %v3221_v16 = vmul.f32 0.5, %v3214_v23 }
0x160c   :  { %v3229_v25 = vmul.f32 %v3225_v3, %v3214_v23 }
0x160e   :  { %v3233_v9 = vmul.f32 %v3229_v25, %v3214_v23 }
0x1610   :  { %v3216_v50 = vpop.f32.mrf.mxu3  ;;  %v3237_v47 = vadd.f32 %v3233_v9, %v3214_v23 }
0x1611   :  { %v3217_v13 = vadd.f32 %v3612_v44, %v3216_v50 }
0x1612   :  { %v3241_v43 = vmul.f32 0.7978846, %v3237_v47 }
0x1613   :  { %v3226_v17 = vmul.f32 0.044715, %v3217_v13  ;;  %v3222_v1 = vmul.f32 0.5, %v3217_v13 }
0x1614   :  { %3840 = vtanh.f32 %v3241_v43 }
0x1615   :  { %v3230_v26 = vmul.f32 %v3226_v17, %v3217_v13 }
0x1617   :  { %v3234_v58 = vmul.f32 %v3230_v26, %v3217_v13 }
0x1619   :  { %v3238_v22 = vadd.f32 %v3234_v58, %v3217_v13 }
0x161a   :  { %v3841_v63 = vpop.eup %3840 }
0x161b   :  { %v3249_v14 = vadd.f32 1.0, %v3841_v63  ;;  %v3242_v35 = vmul.f32 0.7978846, %v3238_v22 }
0x161d   :  { %v3253_v24 = vmul.f32 %v3249_v14, %v3221_v16  ;;  %3842 = vtanh.f32 %v3242_v35 }
0x161f   :  { %3485 = vmatmul.msk.f32.gmra.mxu0 %vm50_vm0, %v3253_v24 }
0x1623   :  { %v3843_v60 = vpop.eup %3842 }
0x1624   :  { %v3250_v62 = vadd.f32 1.0, %v3843_v60 }
0x1626   :  { %v3254_v27 = vmul.f32 %v3250_v62, %v3222_v1 }
0x1628   :  { %3486 = vmatmul.msk.f32.gmra.mxu0 %vm50_vm0, %v3254_v27 }
0x1629   :  { %v3285_v2 = vpop.f32.mrf.mxu0 }
0x162a   :  { %v3286_v33 = vadd.f32 %v3613_v21, %v3285_v2 }
0x162c   :  { %v3297_v48 = vadd.f32 %v3286_v33, %v4906_v38 }
0x162e   :  { %3301 = vst.msk [vmem:[#allocation7] sm:$0xff] %vm50_vm0, %v3297_v48 }
0x1655   :  { %v3288_v10 = vpop.f32.mrf.mxu0 }
0x1656   :  { %v3289_v6 = vadd.f32 %v3613_v21, %v3288_v10 }
0x1658   :  { %v3298_v32 = vadd.f32 %v3289_v6, %v4919_v42 }
0x165a   :  { %3302 = vst.msk [vmem:[#allocation7 + $0x8] sm:$0xff] %vm50_vm0, %v3298_v32 }
0x169c   :  { %v3291_v12 = vpop.f32.mrf.mxu0 }
0x169d   :  { %v3292_v4 = vadd.f32 %v3613_v21, %v3291_v12 }
0x169f   :  { %v3299_v28 = vadd.f32 %v3292_v4, %v4925_v7 }
0x16a1   :  { %3303 = vst.msk [vmem:[#allocation7 + $0x10] sm:$0xff] %vm50_vm0, %v3299_v28 }
0x16a5   :  { %v3294_v31 = vpop.f32.mrf.mxu0 }
0x16a6   :  { %v3295_v38 = vadd.f32 %v3613_v21, %v3294_v31 }
0x16a8   :  { %v3300_v20 = vadd.f32 %v3295_v38, %v4931_v59 }
0x16aa   :  { %3304 = vst.msk [vmem:[#allocation7 + $0x18] sm:$0xff] %vm50_vm0, %v3300_v20 }
0x16ab   :  { %3317 = dma.vmem_to_hbm [thread:$0]  %s3310_s5, 512, %s3312_s8, [#allocation4], %s3923_s17, %s3923_s17, %s3924_s18  }
0x16ac   :  { %3920 = dma.done.wait [#allocation4], 512  }
0x16ad   :  { %3921 = vsyncadd [#allocation4], 4294966784 }
0x16ae   :  { %3322 = vsyncpa [#allocation3], 1 }
0x16af   :  { %3323 = vsyncpa [#allocation6], 1 }
0x16b0   :  { %3324 = vsyncpa [#allocation4], 1 }

</bundles_post_ra>
